<compile_context>
chip_gen: v6e
topology: v6e:2x2x1
jax: 0.10.0
libtpu: 0.0.40
codegen_flags: <defaults>
</compile_context>

<pallas_src>
import math

import jax
import jax.numpy as jnp
from jax import lax
from jax.experimental import pallas as pl
from jax.experimental.pallas import tpu as pltpu


# ---------------------------------------------------------------------------
# Host-side helpers
# ---------------------------------------------------------------------------
def _bilinear_matrix(n, n2):
    """1-D bilinear interpolation matrix (n2, n), align_corners=True."""
    if n2 == 1:
        return jnp.ones((1, n), jnp.float32) / n  # degenerate guard
    i = jnp.arange(n2, dtype=jnp.float32)
    src = i * (n - 1) / (n2 - 1)
    i0 = jnp.clip(jnp.floor(src), 0, n - 1).astype(jnp.int32)
    i1 = jnp.clip(i0 + 1, 0, n - 1)
    f = src - i0.astype(jnp.float32)
    m = jnp.zeros((n2, n), jnp.float32)
    m = m.at[jnp.arange(n2), i0].add(1.0 - f)
    m = m.at[jnp.arange(n2), i1].add(f)
    return m


def _bilinear_coeffs(n, n2):
    """Python-level (i0, i1, frac) per output row, align_corners=True."""
    out = []
    for p in range(n2):
        src = p * (n - 1) / (n2 - 1) if n2 > 1 else 0.0
        i0 = min(int(math.floor(src)), n - 1)
        i1 = min(i0 + 1, n - 1)
        out.append((i0, i1, float(src - i0)))
    return out


def _w_to_mat(w):
    """(3, 3, Cin, Cout) HWIO -> (Cout, 9*Cin), column order = (dy, dx, cin)."""
    cout = w.shape[-1]
    return jnp.transpose(w, (3, 0, 1, 2)).reshape(cout, -1)


def fold_bn(gamma, beta, mean, var, eps=1e-5):
    s = gamma / jnp.sqrt(var + eps)
    return s, beta - mean * s


# ---------------------------------------------------------------------------
# Fused kernel
# ---------------------------------------------------------------------------
def _make_expansive_kernel(Cin, Cprev, Cout, H, W):
    H2, W2 = 2 * H, 2 * W
    Wp = W2 + 2                    # padded row width (1-px halo each side)
    L = H2 * Wp                    # flat length of a conv output row-block
    Spad = (H2 + 2) * Wp + 2       # flat padded image (+2 so the last tap slice is in-bounds)
    offs = tuple(dy * Wp + dx for dy in range(3) for dx in range(3))
    hcoef = _bilinear_coeffs(H, H2)

    def _conv3x3(src_ref, wmat):
        # im2col done once: 9 lane-shifted views of the flat padded image,
        # concatenated along the contraction axis -> one MXU matmul, K = 9*C.
        taps = [src_ref[:, o:o + L] for o in offs]            # 9 x (C, L) bf16
        patches = jnp.concatenate(taps, axis=0)               # (9*C, L)
        return jnp.dot(wmat, patches,
                       preferred_element_type=jnp.float32)    # (Cout, L) f32

    def kernel(x_ref, xprev_ref, mwt_ref, mask_ref,
               wup_ref, bup_ref, w1_ref, b1_ref, w2_ref, b2_ref,
               o_ref, s_up, s_cat, s_y1):
        valid = mask_ref[...] > 0.5                            # (1, L) real-pixel lanes

        # Zero the padded scratches: this IS the conv zero padding.
        s_up[...] = jnp.zeros_like(s_up)
        s_cat[...] = jnp.zeros_like(s_cat)
        s_y1[...] = jnp.zeros_like(s_y1)

        # ---- 1) separable bilinear x2 upsample (align_corners=True) -------------
        # width pass: one matmul against the zero-edged interpolation matrix, so
        # each row already carries its left/right halo zeros.
        x2d = x_ref[0].reshape(Cin * H, W)
        xw = jnp.dot(x2d, mwt_ref[...],
                     preferred_element_type=jnp.float32)       # (Cin*H, Wp)
        xw3 = xw.reshape(Cin, H, Wp)
        # height pass: 2-tap row blend, written straight into the padded scratch.
        for p, (h0, h1, f) in enumerate(hcoef):
            row = (1.0 - f) * xw3[:, h0, :] + f * xw3[:, h1, :]   # (Cin, Wp)
            s_up[:, (p + 1) * Wp:(p + 2) * Wp] = row.astype(s_up.dtype)

        # ---- 2) skip connection -> channels [0, Cprev) of the fused-concat buffer
        xprev = xprev_ref[0]                                      # (Cprev, H2, W2)
        for r in range(H2):
            seg = (r + 1) * Wp + 1
            s_cat[0:Cprev, seg:seg + W2] = xprev[:, r, :].astype(s_cat.dtype)

        # ---- 3) up-conv: Conv2d(Cin -> Cout, k=3, pad=1, bias) ------------------
        yup = _conv3x3(s_up, wup_ref[...]) + bup_ref[...]
        yup = jnp.where(valid, yup, 0.0)   # wrap columns land exactly on halo cells
        s_cat[Cprev:Cprev + Cout, Wp + 1:Wp + 1 + L] = yup.astype(s_cat.dtype)

        # ---- 4) conv1 (+ folded BN1) + ReLU on the fused concat ------------------
        y1 = jnp.maximum(_conv3x3(s_cat, w1_ref[...]) + b1_ref[...], 0.0)
        y1 = jnp.where(valid, y1, 0.0)
        s_y1[:, Wp + 1:Wp + 1 + L] = y1.astype(s_y1.dtype)

        # ---- 5) conv2 (+ folded BN2) + ReLU, lane-dense (Cout, H2*Wp) store ------
        y2 = jnp.maximum(_conv3x3(s_y1, w2_ref[...]) + b2_ref[...], 0.0)
        o_ref[0] = jnp.where(valid, y2, 0.0).astype(o_ref.dtype)

    return kernel, Wp, L, Spad


def expansive_forward(x, x_prev, params):
    """x: (N, Cin, H, W) NCHW.  x_prev: (N, Cin - Cout, 2H, 2W) NCHW."""
    N, Cin, H, W = x.shape
    Np, Cprev, H2, W2 = x_prev.shape
    Cout = params["w_up"].shape[-1]
    assert (Np, H2, W2) == (N, 2 * H, 2 * W) and Cprev + Cout == Cin

    kernel, Wp, L, Spad = _make_expansive_kernel(Cin, Cprev, Cout, H, W)

    # --- host-side parameter prep: fold BN into weights, cast matmul operands to bf16
    s1, t1 = fold_bn(*params["bn1"])
    s2, t2 = fold_bn(*params["bn2"])
    wup_m = _w_to_mat(params["w_up"]).astype(jnp.bfloat16)
    w1_m = _w_to_mat(params["w1"] * s1[None, None, None, :]).astype(jnp.bfloat16)
    w2_m = _w_to_mat(params["w2"] * s2[None, None, None, :]).astype(jnp.bfloat16)
    bup = params["b_up"].reshape(Cout, 1).astype(jnp.float32)
    b1 = t1.reshape(Cout, 1).astype(jnp.float32)
    b2 = t2.reshape(Cout, 1).astype(jnp.float32)

    # width interpolation matrix with zero halo columns: (W, 2W+2)
    mw = _bilinear_matrix(W, W2)                               # (W2, W)
    mwt = jnp.zeros((W, Wp), jnp.float32).at[:, 1:W2 + 1].set(mw.T)

    # lane-validity mask for the padded-stride flat layout (x < W2 within each row)
    col = jnp.arange(L, dtype=jnp.int32) % Wp
    mask = (col < W2).astype(jnp.float32).reshape(1, L)

    def full(shape):
        return pl.BlockSpec(shape, lambda n, _s=shape: (0,) * len(_s))

    out_flat = pl.pallas_call(
        kernel,
        out_shape=jax.ShapeDtypeStruct((N, Cout, L), jnp.float32),
        grid=(N,),
        in_specs=[
            pl.BlockSpec((1, Cin, H, W), lambda n: (n, 0, 0, 0)),
            pl.BlockSpec((1, Cprev, H2, W2), lambda n: (n, 0, 0, 0)),
            full((W, Wp)),               # padded width-interp matrix
            full((1, L)),                # lane validity mask
            full((Cout, 9 * Cin)),       # up-conv weights
            full((Cout, 1)),             # up-conv bias
            full((Cout, 9 * Cin)),       # conv1 weights (BN1 folded)
            full((Cout, 1)),             # conv1 bias (BN1 shift)
            full((Cout, 9 * Cout)),      # conv2 weights (BN2 folded)
            full((Cout, 1)),             # conv2 bias (BN2 shift)
        ],
        out_specs=pl.BlockSpec((1, Cout, L), lambda n: (n, 0, 0)),
        scratch_shapes=[
            pltpu.VMEM((Cin, Spad), jnp.bfloat16),    # padded upsampled x
            pltpu.VMEM((Cin, Spad), jnp.bfloat16),    # padded cat([x_prev, up(x)])
            pltpu.VMEM((Cout, Spad), jnp.bfloat16),   # padded conv1 output
        ],
        compiler_params=pltpu.CompilerParams(
            dimension_semantics=("parallel",),
            vmem_limit_bytes=32 * 1024 * 1024,
        ),
    )(x.astype(jnp.float32), x_prev.astype(jnp.float32), mwt, mask,
      wup_m, bup, w1_m, b1, w2_m, b2)

    # padded-stride flat (N, Cout, H2*(W2+2)) -> dense NCHW (N, Cout, H2, W2)
    return out_flat.reshape(N, Cout, H2, Wp)[:, :, :, :W2]


# ---------------------------------------------------------------------------
# Parameters (deterministic init) and a pure-JAX f32 reference
# ---------------------------------------------------------------------------
def init_params(key, in_channels, out_channels):
    ks = jax.random.split(key, 12)

    def conv_w(k, cin, cout):
        return 0.1 * jax.random.normal(k, (3, 3, cin, cout), jnp.float32)

    def bn(k1, k2, k3, k4, c):
        gamma = 1.0 + 0.1 * jax.random.normal(k1, (c,), jnp.float32)
        beta = 0.1 * jax.random.normal(k2, (c,), jnp.float32)
        mean = 0.1 * jax.random.normal(k3, (c,), jnp.float32)
        var = jax.random.uniform(k4, (c,), jnp.float32, minval=0.5, maxval=1.5)
        return gamma, beta, mean, var

    return {
        "w_up": conv_w(ks[0], in_channels, out_channels),
        "b_up": 0.1 * jax.random.normal(ks[1], (out_channels,), jnp.float32),
        "w1": conv_w(ks[2], in_channels, out_channels),
        "bn1": bn(ks[3], ks[4], ks[5], ks[6], out_channels),
        "w2": conv_w(ks[7], out_channels, out_channels),
        "bn2": bn(ks[8], ks[9], ks[10], ks[11], out_channels),
    }


def reference_forward(x, x_prev, params):
    """Plain-JAX f32 reference with identical math (eval-mode BN / Dropout)."""
    N, Cin, H, W = x.shape
    H2, W2 = 2 * H, 2 * W
    mh = _bilinear_matrix(H, H2)
    mw = _bilinear_matrix(W, W2)
    xu = jnp.einsum("ph,qw,nchw->ncpq", mh, mw, x)

    def conv(a, w):
        return lax.conv_general_dilated(
            a, w, (1, 1), "SAME", dimension_numbers=("NCHW", "HWIO", "NCHW"))

    y = conv(xu, params["w_up"]) + params["b_up"][None, :, None, None]
    y = jnp.concatenate([x_prev, y], axis=1)
    s1, t1 = fold_bn(*params["bn1"])
    y = jnp.maximum(conv(y, params["w1"]) * s1[None, :, None, None]
                    + t1[None, :, None, None], 0.0)
    s2, t2 = fold_bn(*params["bn2"])
    y = jnp.maximum(conv(y, params["w2"]) * s2[None, :, None, None]
                    + t2[None, :, None, None], 0.0)
    return y


# ---------------------------------------------------------------------------
if __name__ == "__main__":
    in_channels, out_channels, p = 8, 4, 0.2
    N, H, W = 2, 8, 8   # x is the coarse feature map; x_prev is the skip (2x spatial)

    key = jax.random.PRNGKey(0)
    kx, kprev, kparam = jax.random.split(key, 3)
    x = jax.random.normal(kx, (N, in_channels, H, W), jnp.float32)
    x_prev = jax.random.normal(
        kprev, (N, in_channels - out_channels, 2 * H, 2 * W), jnp.float32)
    params = init_params(kparam, in_channels, out_channels)

    out = jax.block_until_ready(expansive_forward(x, x_prev, params))

    assert out.shape == (N, out_channels, 2 * H, 2 * W), out.shape
    assert bool(jnp.all(jnp.isfinite(out)))
    assert bool(jnp.all(out >= 0.0))          # final ReLU

    ref = reference_forward(x, x_prev, params)
    err = float(jnp.max(jnp.abs(out - ref)))
    assert err < 0.25, f"max |pallas - reference| too large: {err}"

    print("KERNEL_OK")
</pallas_src>

<mosaic_0001>
module attributes {stable_mosaic.version = 11 : i64} {
  func.func @kernel(%arg0: i32, %arg1: memref<1x8x8x8xf32, #tpu.memory_space<vmem>>, %arg2: memref<1x4x16x16xf32, #tpu.memory_space<vmem>>, %arg3: memref<8x18xf32, #tpu.memory_space<vmem>>, %arg4: memref<1x288xf32, #tpu.memory_space<vmem>>, %arg5: memref<4x72xbf16, #tpu.memory_space<vmem>>, %arg6: memref<4x1xf32, #tpu.memory_space<vmem>>, %arg7: memref<4x72xbf16, #tpu.memory_space<vmem>>, %arg8: memref<4x1xf32, #tpu.memory_space<vmem>>, %arg9: memref<4x36xbf16, #tpu.memory_space<vmem>>, %arg10: memref<4x1xf32, #tpu.memory_space<vmem>>, %arg11: memref<1x4x288xf32, #tpu.memory_space<vmem>>, %arg12: memref<8x326xbf16, #tpu.memory_space<vmem>>, %arg13: memref<8x326xbf16, #tpu.memory_space<vmem>>, %arg14: memref<4x326xbf16, #tpu.memory_space<vmem>>) attributes {dimension_semantics = [#tpu.dimension_semantics<parallel>], iteration_bounds = array<i64: 2>, scalar_prefetch = 0 : i64, scratch_operands = 3 : i64, tpu.core_type = #tpu.core_type<tc>, window_params = [{transform_indices = @transform_0, window_bounds = array<i64: 1, 8, 8, 8>}, {transform_indices = @transform_1, window_bounds = array<i64: 1, 4, 16, 16>}, {pipeline_mode = #tpu.pipeline_mode<synchronous>, transform_indices = @transform_2, window_bounds = array<i64: 8, 18>}, {pipeline_mode = #tpu.pipeline_mode<synchronous>, transform_indices = @transform_3, window_bounds = array<i64: 1, 288>}, {pipeline_mode = #tpu.pipeline_mode<synchronous>, transform_indices = @transform_4, window_bounds = array<i64: 4, 72>}, {pipeline_mode = #tpu.pipeline_mode<synchronous>, transform_indices = @transform_5, window_bounds = array<i64: 4, 1>}, {pipeline_mode = #tpu.pipeline_mode<synchronous>, transform_indices = @transform_6, window_bounds = array<i64: 4, 72>}, {pipeline_mode = #tpu.pipeline_mode<synchronous>, transform_indices = @transform_7, window_bounds = array<i64: 4, 1>}, {pipeline_mode = #tpu.pipeline_mode<synchronous>, transform_indices = @transform_8, window_bounds = array<i64: 4, 36>}, {pipeline_mode = #tpu.pipeline_mode<synchronous>, transform_indices = @transform_9, window_bounds = array<i64: 4, 1>}, {transform_indices = @transform_10, window_bounds = array<i64: 1, 4, 288>}]} {
    %c0 = arith.constant 0 : index
    %c0_0 = arith.constant 0 : index
    %0 = vector.load %arg4[%c0, %c0_0] : memref<1x288xf32, #tpu.memory_space<vmem>>, vector<1x288xf32>
    %cst = arith.constant 5.000000e-01 : f32
    %1 = vector.broadcast %cst : f32 to vector<1x288xf32>
    %2 = arith.cmpf ogt, %0, %1 : vector<1x288xf32>
    %cst_1 = arith.constant 0.000000e+00 : bf16
    %3 = vector.broadcast %cst_1 : bf16 to vector<8x326xbf16>
    %c0_2 = arith.constant 0 : index
    %c0_3 = arith.constant 0 : index
    %4 = vector.load %arg12[%c0_2, %c0_3] : memref<8x326xbf16, #tpu.memory_space<vmem>>, vector<8x326xbf16>
    tpu.vector_store %arg12[%c0_2, %c0_3], %3 {strides = array<i32>} : memref<8x326xbf16, #tpu.memory_space<vmem>>, vector<8x326xbf16>,
    %cst_4 = arith.constant 0.000000e+00 : bf16
    %5 = vector.broadcast %cst_4 : bf16 to vector<8x326xbf16>
    %c0_5 = arith.constant 0 : index
    %c0_6 = arith.constant 0 : index
    %6 = vector.load %arg13[%c0_5, %c0_6] : memref<8x326xbf16, #tpu.memory_space<vmem>>, vector<8x326xbf16>
    tpu.vector_store %arg13[%c0_5, %c0_6], %5 {strides = array<i32>} : memref<8x326xbf16, #tpu.memory_space<vmem>>, vector<8x326xbf16>,
    %cst_7 = arith.constant 0.000000e+00 : bf16
    %7 = vector.broadcast %cst_7 : bf16 to vector<4x326xbf16>
    %c0_8 = arith.constant 0 : index
    %c0_9 = arith.constant 0 : index
    %8 = vector.load %arg14[%c0_8, %c0_9] : memref<4x326xbf16, #tpu.memory_space<vmem>>, vector<4x326xbf16>
    tpu.vector_store %arg14[%c0_8, %c0_9], %7 {strides = array<i32>} : memref<4x326xbf16, #tpu.memory_space<vmem>>, vector<4x326xbf16>,
    %c0_10 = arith.constant 0 : index
    %c0_11 = arith.constant 0 : index
    %c0_12 = arith.constant 0 : index
    %c0_13 = arith.constant 0 : index
    %9 = vector.load %arg1[%c0_10, %c0_11, %c0_12, %c0_13] : memref<1x8x8x8xf32, #tpu.memory_space<vmem>>, vector<1x8x8x8xf32>
    %10 = vector.shape_cast %9 : vector<1x8x8x8xf32> to vector<8x8x8xf32>
    %11 = vector.shape_cast %10 : vector<8x8x8xf32> to vector<64x8xf32>
    %c0_14 = arith.constant 0 : index
    %c0_15 = arith.constant 0 : index
    %12 = vector.load %arg3[%c0_14, %c0_15] : memref<8x18xf32, #tpu.memory_space<vmem>>, vector<8x18xf32>
    %cst_16 = arith.constant dense<0.000000e+00> : vector<64x18xf32>
    %13 = tpu.matmul %11, %12, %cst_16 {dimension_numbers = #tpu.dot_dimension_numbers<[1], [0], [0], [1], [0, 0, 1, 1], [], []>} : vector<64x8xf32>, vector<8x18xf32>, vector<64x18xf32> -> vector<64x18xf32>
    %14 = vector.shape_cast %13 : vector<64x18xf32> to vector<8x8x18xf32>
    %15 = vector.extract_strided_slice %14 {offsets = [0, 0, 0], sizes = [8, 1, 18], strides = [1, 1, 1]} : vector<8x8x18xf32> to vector<8x1x18xf32>
    %16 = vector.shape_cast %15 : vector<8x1x18xf32> to vector<8x18xf32>
    %cst_17 = arith.constant 1.000000e+00 : f32
    %17 = vector.broadcast %cst_17 : f32 to vector<8x18xf32>
    %18 = arith.mulf %17, %16 : vector<8x18xf32>
    %19 = vector.extract_strided_slice %14 {offsets = [0, 1, 0], sizes = [8, 1, 18], strides = [1, 1, 1]} : vector<8x8x18xf32> to vector<8x1x18xf32>
    %20 = vector.shape_cast %19 : vector<8x1x18xf32> to vector<8x18xf32>
    %cst_18 = arith.constant 0.000000e+00 : f32
    %21 = vector.broadcast %cst_18 : f32 to vector<8x18xf32>
    %22 = arith.mulf %21, %20 : vector<8x18xf32>
    %23 = arith.addf %18, %22 : vector<8x18xf32>
    %24 = arith.truncf %23 : vector<8x18xf32> to vector<8x18xbf16>
    %c0_19 = arith.constant 0 : index
    %c18 = arith.constant 18 : index
    %25 = vector.load %arg12[%c0_19, %c18] : memref<8x326xbf16, #tpu.memory_space<vmem>>, vector<8x18xbf16>
    tpu.vector_store %arg12[%c0_19, %c18], %24 {strides = array<i32>} : memref<8x326xbf16, #tpu.memory_space<vmem>>, vector<8x18xbf16>,
    %26 = vector.extract_strided_slice %14 {offsets = [0, 0, 0], sizes = [8, 1, 18], strides = [1, 1, 1]} : vector<8x8x18xf32> to vector<8x1x18xf32>
    %27 = vector.shape_cast %26 : vector<8x1x18xf32> to vector<8x18xf32>
    %cst_20 = arith.constant 0.533333361 : f32
    %28 = vector.broadcast %cst_20 : f32 to vector<8x18xf32>
    %29 = arith.mulf %28, %27 : vector<8x18xf32>
    %30 = vector.extract_strided_slice %14 {offsets = [0, 1, 0], sizes = [8, 1, 18], strides = [1, 1, 1]} : vector<8x8x18xf32> to vector<8x1x18xf32>
    %31 = vector.shape_cast %30 : vector<8x1x18xf32> to vector<8x18xf32>
    %cst_21 = arith.constant 0.466666669 : f32
    %32 = vector.broadcast %cst_21 : f32 to vector<8x18xf32>
    %33 = arith.mulf %32, %31 : vector<8x18xf32>
    %34 = arith.addf %29, %33 : vector<8x18xf32>
    %35 = arith.truncf %34 : vector<8x18xf32> to vector<8x18xbf16>
    %c0_22 = arith.constant 0 : index
    %c36 = arith.constant 36 : index
    %36 = vector.load %arg12[%c0_22, %c36] : memref<8x326xbf16, #tpu.memory_space<vmem>>, vector<8x18xbf16>
    tpu.vector_store %arg12[%c0_22, %c36], %35 {strides = array<i32>} : memref<8x326xbf16, #tpu.memory_space<vmem>>, vector<8x18xbf16>,
    %37 = vector.extract_strided_slice %14 {offsets = [0, 0, 0], sizes = [8, 1, 18], strides = [1, 1, 1]} : vector<8x8x18xf32> to vector<8x1x18xf32>
    %38 = vector.shape_cast %37 : vector<8x1x18xf32> to vector<8x18xf32>
    %cst_23 = arith.constant 0.0666666701 : f32
    %39 = vector.broadcast %cst_23 : f32 to vector<8x18xf32>
    %40 = arith.mulf %39, %38 : vector<8x18xf32>
    %41 = vector.extract_strided_slice %14 {offsets = [0, 1, 0], sizes = [8, 1, 18], strides = [1, 1, 1]} : vector<8x8x18xf32> to vector<8x1x18xf32>
    %42 = vector.shape_cast %41 : vector<8x1x18xf32> to vector<8x18xf32>
    %cst_24 = arith.constant 0.933333337 : f32
    %43 = vector.broadcast %cst_24 : f32 to vector<8x18xf32>
    %44 = arith.mulf %43, %42 : vector<8x18xf32>
    %45 = arith.addf %40, %44 : vector<8x18xf32>
    %46 = arith.truncf %45 : vector<8x18xf32> to vector<8x18xbf16>
    %c0_25 = arith.constant 0 : index
    %c54 = arith.constant 54 : index
    %47 = vector.load %arg12[%c0_25, %c54] : memref<8x326xbf16, #tpu.memory_space<vmem>>, vector<8x18xbf16>
    tpu.vector_store %arg12[%c0_25, %c54], %46 {strides = array<i32>} : memref<8x326xbf16, #tpu.memory_space<vmem>>, vector<8x18xbf16>,
    %48 = vector.extract_strided_slice %14 {offsets = [0, 1, 0], sizes = [8, 1, 18], strides = [1, 1, 1]} : vector<8x8x18xf32> to vector<8x1x18xf32>
    %49 = vector.shape_cast %48 : vector<8x1x18xf32> to vector<8x18xf32>
    %cst_26 = arith.constant 6.000000e-01 : f32
    %50 = vector.broadcast %cst_26 : f32 to vector<8x18xf32>
    %51 = arith.mulf %50, %49 : vector<8x18xf32>
    %52 = vector.extract_strided_slice %14 {offsets = [0, 2, 0], sizes = [8, 1, 18], strides = [1, 1, 1]} : vector<8x8x18xf32> to vector<8x1x18xf32>
    %53 = vector.shape_cast %52 : vector<8x1x18xf32> to vector<8x18xf32>
    %cst_27 = arith.constant 4.000000e-01 : f32
    %54 = vector.broadcast %cst_27 : f32 to vector<8x18xf32>
    %55 = arith.mulf %54, %53 : vector<8x18xf32>
    %56 = arith.addf %51, %55 : vector<8x18xf32>
    %57 = arith.truncf %56 : vector<8x18xf32> to vector<8x18xbf16>
    %c0_28 = arith.constant 0 : index
    %c72 = arith.constant 72 : index
    %58 = vector.load %arg12[%c0_28, %c72] : memref<8x326xbf16, #tpu.memory_space<vmem>>, vector<8x18xbf16>
    tpu.vector_store %arg12[%c0_28, %c72], %57 {strides = array<i32>} : memref<8x326xbf16, #tpu.memory_space<vmem>>, vector<8x18xbf16>,
    %59 = vector.extract_strided_slice %14 {offsets = [0, 1, 0], sizes = [8, 1, 18], strides = [1, 1, 1]} : vector<8x8x18xf32> to vector<8x1x18xf32>
    %60 = vector.shape_cast %59 : vector<8x1x18xf32> to vector<8x18xf32>
    %cst_29 = arith.constant 0.13333334 : f32
    %61 = vector.broadcast %cst_29 : f32 to vector<8x18xf32>
    %62 = arith.mulf %61, %60 : vector<8x18xf32>
    %63 = vector.extract_strided_slice %14 {offsets = [0, 2, 0], sizes = [8, 1, 18], strides = [1, 1, 1]} : vector<8x8x18xf32> to vector<8x1x18xf32>
    %64 = vector.shape_cast %63 : vector<8x1x18xf32> to vector<8x18xf32>
    %cst_30 = arith.constant 0.866666674 : f32
    %65 = vector.broadcast %cst_30 : f32 to vector<8x18xf32>
    %66 = arith.mulf %65, %64 : vector<8x18xf32>
    %67 = arith.addf %62, %66 : vector<8x18xf32>
    %68 = arith.truncf %67 : vector<8x18xf32> to vector<8x18xbf16>
    %c0_31 = arith.constant 0 : index
    %c90 = arith.constant 90 : index
    %69 = vector.load %arg12[%c0_31, %c90] : memref<8x326xbf16, #tpu.memory_space<vmem>>, vector<8x18xbf16>
    tpu.vector_store %arg12[%c0_31, %c90], %68 {strides = array<i32>} : memref<8x326xbf16, #tpu.memory_space<vmem>>, vector<8x18xbf16>,
    %70 = vector.extract_strided_slice %14 {offsets = [0, 2, 0], sizes = [8, 1, 18], strides = [1, 1, 1]} : vector<8x8x18xf32> to vector<8x1x18xf32>
    %71 = vector.shape_cast %70 : vector<8x1x18xf32> to vector<8x18xf32>
    %cst_32 = arith.constant 0.666666686 : f32
    %72 = vector.broadcast %cst_32 : f32 to vector<8x18xf32>
    %73 = arith.mulf %72, %71 : vector<8x18xf32>
    %74 = vector.extract_strided_slice %14 {offsets = [0, 3, 0], sizes = [8, 1, 18], strides = [1, 1, 1]} : vector<8x8x18xf32> to vector<8x1x18xf32>
    %75 = vector.shape_cast %74 : vector<8x1x18xf32> to vector<8x18xf32>
    %cst_33 = arith.constant 0.333333343 : f32
    %76 = vector.broadcast %cst_33 : f32 to vector<8x18xf32>
    %77 = arith.mulf %76, %75 : vector<8x18xf32>
    %78 = arith.addf %73, %77 : vector<8x18xf32>
    %79 = arith.truncf %78 : vector<8x18xf32> to vector<8x18xbf16>
    %c0_34 = arith.constant 0 : index
    %c108 = arith.constant 108 : index
    %80 = vector.load %arg12[%c0_34, %c108] : memref<8x326xbf16, #tpu.memory_space<vmem>>, vector<8x18xbf16>
    tpu.vector_store %arg12[%c0_34, %c108], %79 {strides = array<i32>} : memref<8x326xbf16, #tpu.memory_space<vmem>>, vector<8x18xbf16>,
    %81 = vector.extract_strided_slice %14 {offsets = [0, 2, 0], sizes = [8, 1, 18], strides = [1, 1, 1]} : vector<8x8x18xf32> to vector<8x1x18xf32>
    %82 = vector.shape_cast %81 : vector<8x1x18xf32> to vector<8x18xf32>
    %cst_35 = arith.constant 2.000000e-01 : f32
    %83 = vector.broadcast %cst_35 : f32 to vector<8x18xf32>
    %84 = arith.mulf %83, %82 : vector<8x18xf32>
    %85 = vector.extract_strided_slice %14 {offsets = [0, 3, 0], sizes = [8, 1, 18], strides = [1, 1, 1]} : vector<8x8x18xf32> to vector<8x1x18xf32>
    %86 = vector.shape_cast %85 : vector<8x1x18xf32> to vector<8x18xf32>
    %cst_36 = arith.constant 8.000000e-01 : f32
    %87 = vector.broadcast %cst_36 : f32 to vector<8x18xf32>
    %88 = arith.mulf %87, %86 : vector<8x18xf32>
    %89 = arith.addf %84, %88 : vector<8x18xf32>
    %90 = arith.truncf %89 : vector<8x18xf32> to vector<8x18xbf16>
    %c0_37 = arith.constant 0 : index
    %c126 = arith.constant 126 : index
    %91 = vector.load %arg12[%c0_37, %c126] : memref<8x326xbf16, #tpu.memory_space<vmem>>, vector<8x18xbf16>
    tpu.vector_store %arg12[%c0_37, %c126], %90 {strides = array<i32>} : memref<8x326xbf16, #tpu.memory_space<vmem>>, vector<8x18xbf16>,
    %92 = vector.extract_strided_slice %14 {offsets = [0, 3, 0], sizes = [8, 1, 18], strides = [1, 1, 1]} : vector<8x8x18xf32> to vector<8x1x18xf32>
    %93 = vector.shape_cast %92 : vector<8x1x18xf32> to vector<8x18xf32>
    %cst_38 = arith.constant 0.733333349 : f32
    %94 = vector.broadcast %cst_38 : f32 to vector<8x18xf32>
    %95 = arith.mulf %94, %93 : vector<8x18xf32>
    %96 = vector.extract_strided_slice %14 {offsets = [0, 4, 0], sizes = [8, 1, 18], strides = [1, 1, 1]} : vector<8x8x18xf32> to vector<8x1x18xf32>
    %97 = vector.shape_cast %96 : vector<8x1x18xf32> to vector<8x18xf32>
    %cst_39 = arith.constant 0.266666681 : f32
    %98 = vector.broadcast %cst_39 : f32 to vector<8x18xf32>
    %99 = arith.mulf %98, %97 : vector<8x18xf32>
    %100 = arith.addf %95, %99 : vector<8x18xf32>
    %101 = arith.truncf %100 : vector<8x18xf32> to vector<8x18xbf16>
    %c0_40 = arith.constant 0 : index
    %c144 = arith.constant 144 : index
    %102 = vector.load %arg12[%c0_40, %c144] : memref<8x326xbf16, #tpu.memory_space<vmem>>, vector<8x18xbf16>
    tpu.vector_store %arg12[%c0_40, %c144], %101 {strides = array<i32>} : memref<8x326xbf16, #tpu.memory_space<vmem>>, vector<8x18xbf16>,
    %103 = vector.extract_strided_slice %14 {offsets = [0, 3, 0], sizes = [8, 1, 18], strides = [1, 1, 1]} : vector<8x8x18xf32> to vector<8x1x18xf32>
    %104 = vector.shape_cast %103 : vector<8x1x18xf32> to vector<8x18xf32>
    %cst_41 = arith.constant 0.266666681 : f32
    %105 = vector.broadcast %cst_41 : f32 to vector<8x18xf32>
    %106 = arith.mulf %105, %104 : vector<8x18xf32>
    %107 = vector.extract_strided_slice %14 {offsets = [0, 4, 0], sizes = [8, 1, 18], strides = [1, 1, 1]} : vector<8x8x18xf32> to vector<8x1x18xf32>
    %108 = vector.shape_cast %107 : vector<8x1x18xf32> to vector<8x18xf32>
    %cst_42 = arith.constant 0.733333349 : f32
    %109 = vector.broadcast %cst_42 : f32 to vector<8x18xf32>
    %110 = arith.mulf %109, %108 : vector<8x18xf32>
    %111 = arith.addf %106, %110 : vector<8x18xf32>
    %112 = arith.truncf %111 : vector<8x18xf32> to vector<8x18xbf16>
    %c0_43 = arith.constant 0 : index
    %c162 = arith.constant 162 : index
    %113 = vector.load %arg12[%c0_43, %c162] : memref<8x326xbf16, #tpu.memory_space<vmem>>, vector<8x18xbf16>
    tpu.vector_store %arg12[%c0_43, %c162], %112 {strides = array<i32>} : memref<8x326xbf16, #tpu.memory_space<vmem>>, vector<8x18xbf16>,
    %114 = vector.extract_strided_slice %14 {offsets = [0, 4, 0], sizes = [8, 1, 18], strides = [1, 1, 1]} : vector<8x8x18xf32> to vector<8x1x18xf32>
    %115 = vector.shape_cast %114 : vector<8x1x18xf32> to vector<8x18xf32>
    %cst_44 = arith.constant 8.000000e-01 : f32
    %116 = vector.broadcast %cst_44 : f32 to vector<8x18xf32>
    %117 = arith.mulf %116, %115 : vector<8x18xf32>
    %118 = vector.extract_strided_slice %14 {offsets = [0, 5, 0], sizes = [8, 1, 18], strides = [1, 1, 1]} : vector<8x8x18xf32> to vector<8x1x18xf32>
    %119 = vector.shape_cast %118 : vector<8x1x18xf32> to vector<8x18xf32>
    %cst_45 = arith.constant 2.000000e-01 : f32
    %120 = vector.broadcast %cst_45 : f32 to vector<8x18xf32>
    %121 = arith.mulf %120, %119 : vector<8x18xf32>
    %122 = arith.addf %117, %121 : vector<8x18xf32>
    %123 = arith.truncf %122 : vector<8x18xf32> to vector<8x18xbf16>
    %c0_46 = arith.constant 0 : index
    %c180 = arith.constant 180 : index
    %124 = vector.load %arg12[%c0_46, %c180] : memref<8x326xbf16, #tpu.memory_space<vmem>>, vector<8x18xbf16>
    tpu.vector_store %arg12[%c0_46, %c180], %123 {strides = array<i32>} : memref<8x326xbf16, #tpu.memory_space<vmem>>, vector<8x18xbf16>,
    %125 = vector.extract_strided_slice %14 {offsets = [0, 4, 0], sizes = [8, 1, 18], strides = [1, 1, 1]} : vector<8x8x18xf32> to vector<8x1x18xf32>
    %126 = vector.shape_cast %125 : vector<8x1x18xf32> to vector<8x18xf32>
    %cst_47 = arith.constant 0.333333343 : f32
    %127 = vector.broadcast %cst_47 : f32 to vector<8x18xf32>
    %128 = arith.mulf %127, %126 : vector<8x18xf32>
    %129 = vector.extract_strided_slice %14 {offsets = [0, 5, 0], sizes = [8, 1, 18], strides = [1, 1, 1]} : vector<8x8x18xf32> to vector<8x1x18xf32>
    %130 = vector.shape_cast %129 : vector<8x1x18xf32> to vector<8x18xf32>
    %cst_48 = arith.constant 0.666666686 : f32
    %131 = vector.broadcast %cst_48 : f32 to vector<8x18xf32>
    %132 = arith.mulf %131, %130 : vector<8x18xf32>
    %133 = arith.addf %128, %132 : vector<8x18xf32>
    %134 = arith.truncf %133 : vector<8x18xf32> to vector<8x18xbf16>
    %c0_49 = arith.constant 0 : index
    %c198 = arith.constant 198 : index
    %135 = vector.load %arg12[%c0_49, %c198] : memref<8x326xbf16, #tpu.memory_space<vmem>>, vector<8x18xbf16>
    tpu.vector_store %arg12[%c0_49, %c198], %134 {strides = array<i32>} : memref<8x326xbf16, #tpu.memory_space<vmem>>, vector<8x18xbf16>,
    %136 = vector.extract_strided_slice %14 {offsets = [0, 5, 0], sizes = [8, 1, 18], strides = [1, 1, 1]} : vector<8x8x18xf32> to vector<8x1x18xf32>
    %137 = vector.shape_cast %136 : vector<8x1x18xf32> to vector<8x18xf32>
    %cst_50 = arith.constant 0.866666674 : f32
    %138 = vector.broadcast %cst_50 : f32 to vector<8x18xf32>
    %139 = arith.mulf %138, %137 : vector<8x18xf32>
    %140 = vector.extract_strided_slice %14 {offsets = [0, 6, 0], sizes = [8, 1, 18], strides = [1, 1, 1]} : vector<8x8x18xf32> to vector<8x1x18xf32>
    %141 = vector.shape_cast %140 : vector<8x1x18xf32> to vector<8x18xf32>
    %cst_51 = arith.constant 0.13333334 : f32
    %142 = vector.broadcast %cst_51 : f32 to vector<8x18xf32>
    %143 = arith.mulf %142, %141 : vector<8x18xf32>
    %144 = arith.addf %139, %143 : vector<8x18xf32>
    %145 = arith.truncf %144 : vector<8x18xf32> to vector<8x18xbf16>
    %c0_52 = arith.constant 0 : index
    %c216 = arith.constant 216 : index
    %146 = vector.load %arg12[%c0_52, %c216] : memref<8x326xbf16, #tpu.memory_space<vmem>>, vector<8x18xbf16>
    tpu.vector_store %arg12[%c0_52, %c216], %145 {strides = array<i32>} : memref<8x326xbf16, #tpu.memory_space<vmem>>, vector<8x18xbf16>,
    %147 = vector.extract_strided_slice %14 {offsets = [0, 5, 0], sizes = [8, 1, 18], strides = [1, 1, 1]} : vector<8x8x18xf32> to vector<8x1x18xf32>
    %148 = vector.shape_cast %147 : vector<8x1x18xf32> to vector<8x18xf32>
    %cst_53 = arith.constant 4.000000e-01 : f32
    %149 = vector.broadcast %cst_53 : f32 to vector<8x18xf32>
    %150 = arith.mulf %149, %148 : vector<8x18xf32>
    %151 = vector.extract_strided_slice %14 {offsets = [0, 6, 0], sizes = [8, 1, 18], strides = [1, 1, 1]} : vector<8x8x18xf32> to vector<8x1x18xf32>
    %152 = vector.shape_cast %151 : vector<8x1x18xf32> to vector<8x18xf32>
    %cst_54 = arith.constant 6.000000e-01 : f32
    %153 = vector.broadcast %cst_54 : f32 to vector<8x18xf32>
    %154 = arith.mulf %153, %152 : vector<8x18xf32>
    %155 = arith.addf %150, %154 : vector<8x18xf32>
    %156 = arith.truncf %155 : vector<8x18xf32> to vector<8x18xbf16>
    %c0_55 = arith.constant 0 : index
    %c234 = arith.constant 234 : index
    %157 = vector.load %arg12[%c0_55, %c234] : memref<8x326xbf16, #tpu.memory_space<vmem>>, vector<8x18xbf16>
    tpu.vector_store %arg12[%c0_55, %c234], %156 {strides = array<i32>} : memref<8x326xbf16, #tpu.memory_space<vmem>>, vector<8x18xbf16>,
    %158 = vector.extract_strided_slice %14 {offsets = [0, 6, 0], sizes = [8, 1, 18], strides = [1, 1, 1]} : vector<8x8x18xf32> to vector<8x1x18xf32>
    %159 = vector.shape_cast %158 : vector<8x1x18xf32> to vector<8x18xf32>
    %cst_56 = arith.constant 0.933333337 : f32
    %160 = vector.broadcast %cst_56 : f32 to vector<8x18xf32>
    %161 = arith.mulf %160, %159 : vector<8x18xf32>
    %162 = vector.extract_strided_slice %14 {offsets = [0, 7, 0], sizes = [8, 1, 18], strides = [1, 1, 1]} : vector<8x8x18xf32> to vector<8x1x18xf32>
    %163 = vector.shape_cast %162 : vector<8x1x18xf32> to vector<8x18xf32>
    %cst_57 = arith.constant 0.0666666701 : f32
    %164 = vector.broadcast %cst_57 : f32 to vector<8x18xf32>
    %165 = arith.mulf %164, %163 : vector<8x18xf32>
    %166 = arith.addf %161, %165 : vector<8x18xf32>
    %167 = arith.truncf %166 : vector<8x18xf32> to vector<8x18xbf16>
    %c0_58 = arith.constant 0 : index
    %c252 = arith.constant 252 : index
    %168 = vector.load %arg12[%c0_58, %c252] : memref<8x326xbf16, #tpu.memory_space<vmem>>, vector<8x18xbf16>
    tpu.vector_store %arg12[%c0_58, %c252], %167 {strides = array<i32>} : memref<8x326xbf16, #tpu.memory_space<vmem>>, vector<8x18xbf16>,
    %169 = vector.extract_strided_slice %14 {offsets = [0, 6, 0], sizes = [8, 1, 18], strides = [1, 1, 1]} : vector<8x8x18xf32> to vector<8x1x18xf32>
    %170 = vector.shape_cast %169 : vector<8x1x18xf32> to vector<8x18xf32>
    %cst_59 = arith.constant 0.466666669 : f32
    %171 = vector.broadcast %cst_59 : f32 to vector<8x18xf32>
    %172 = arith.mulf %171, %170 : vector<8x18xf32>
    %173 = vector.extract_strided_slice %14 {offsets = [0, 7, 0], sizes = [8, 1, 18], strides = [1, 1, 1]} : vector<8x8x18xf32> to vector<8x1x18xf32>
    %174 = vector.shape_cast %173 : vector<8x1x18xf32> to vector<8x18xf32>
    %cst_60 = arith.constant 0.533333361 : f32
    %175 = vector.broadcast %cst_60 : f32 to vector<8x18xf32>
    %176 = arith.mulf %175, %174 : vector<8x18xf32>
    %177 = arith.addf %172, %176 : vector<8x18xf32>
    %178 = arith.truncf %177 : vector<8x18xf32> to vector<8x18xbf16>
    %c0_61 = arith.constant 0 : index
    %c270 = arith.constant 270 : index
    %179 = vector.load %arg12[%c0_61, %c270] : memref<8x326xbf16, #tpu.memory_space<vmem>>, vector<8x18xbf16>
    tpu.vector_store %arg12[%c0_61, %c270], %178 {strides = array<i32>} : memref<8x326xbf16, #tpu.memory_space<vmem>>, vector<8x18xbf16>,
    %180 = vector.extract_strided_slice %14 {offsets = [0, 7, 0], sizes = [8, 1, 18], strides = [1, 1, 1]} : vector<8x8x18xf32> to vector<8x1x18xf32>
    %181 = vector.shape_cast %180 : vector<8x1x18xf32> to vector<8x18xf32>
    %cst_62 = arith.constant 1.000000e+00 : f32
    %182 = vector.broadcast %cst_62 : f32 to vector<8x18xf32>
    %183 = arith.mulf %182, %181 : vector<8x18xf32>
    %184 = vector.extract_strided_slice %14 {offsets = [0, 7, 0], sizes = [8, 1, 18], strides = [1, 1, 1]} : vector<8x8x18xf32> to vector<8x1x18xf32>
    %185 = vector.shape_cast %184 : vector<8x1x18xf32> to vector<8x18xf32>
    %cst_63 = arith.constant 0.000000e+00 : f32
    %186 = vector.broadcast %cst_63 : f32 to vector<8x18xf32>
    %187 = arith.mulf %186, %185 : vector<8x18xf32>
    %188 = arith.addf %183, %187 : vector<8x18xf32>
    %189 = arith.truncf %188 : vector<8x18xf32> to vector<8x18xbf16>
    %c0_64 = arith.constant 0 : index
    %c288 = arith.constant 288 : index
    %190 = vector.load %arg12[%c0_64, %c288] : memref<8x326xbf16, #tpu.memory_space<vmem>>, vector<8x18xbf16>
    tpu.vector_store %arg12[%c0_64, %c288], %189 {strides = array<i32>} : memref<8x326xbf16, #tpu.memory_space<vmem>>, vector<8x18xbf16>,
    %c0_65 = arith.constant 0 : index
    %c0_66 = arith.constant 0 : index
    %c0_67 = arith.constant 0 : index
    %c0_68 = arith.constant 0 : index
    %191 = vector.load %arg2[%c0_65, %c0_66, %c0_67, %c0_68] : memref<1x4x16x16xf32, #tpu.memory_space<vmem>>, vector<1x4x16x16xf32>
    %192 = vector.shape_cast %191 : vector<1x4x16x16xf32> to vector<4x16x16xf32>
    %193 = vector.extract_strided_slice %192 {offsets = [0, 0, 0], sizes = [4, 1, 16], strides = [1, 1, 1]} : vector<4x16x16xf32> to vector<4x1x16xf32>
    %194 = vector.shape_cast %193 : vector<4x1x16xf32> to vector<4x16xf32>
    %195 = arith.truncf %194 : vector<4x16xf32> to vector<4x16xbf16>
    %c0_69 = arith.constant 0 : index
    %c19 = arith.constant 19 : index
    %196 = vector.load %arg13[%c0_69, %c19] : memref<8x326xbf16, #tpu.memory_space<vmem>>, vector<4x16xbf16>
    tpu.vector_store %arg13[%c0_69, %c19], %195 {strides = array<i32>} : memref<8x326xbf16, #tpu.memory_space<vmem>>, vector<4x16xbf16>,
    %197 = vector.extract_strided_slice %192 {offsets = [0, 1, 0], sizes = [4, 1, 16], strides = [1, 1, 1]} : vector<4x16x16xf32> to vector<4x1x16xf32>
    %198 = vector.shape_cast %197 : vector<4x1x16xf32> to vector<4x16xf32>
    %199 = arith.truncf %198 : vector<4x16xf32> to vector<4x16xbf16>
    %c0_70 = arith.constant 0 : index
    %c37 = arith.constant 37 : index
    %200 = vector.load %arg13[%c0_70, %c37] : memref<8x326xbf16, #tpu.memory_space<vmem>>, vector<4x16xbf16>
    tpu.vector_store %arg13[%c0_70, %c37], %199 {strides = array<i32>} : memref<8x326xbf16, #tpu.memory_space<vmem>>, vector<4x16xbf16>,
    %201 = vector.extract_strided_slice %192 {offsets = [0, 2, 0], sizes = [4, 1, 16], strides = [1, 1, 1]} : vector<4x16x16xf32> to vector<4x1x16xf32>
    %202 = vector.shape_cast %201 : vector<4x1x16xf32> to vector<4x16xf32>
    %203 = arith.truncf %202 : vector<4x16xf32> to vector<4x16xbf16>
    %c0_71 = arith.constant 0 : index
    %c55 = arith.constant 55 : index
    %204 = vector.load %arg13[%c0_71, %c55] : memref<8x326xbf16, #tpu.memory_space<vmem>>, vector<4x16xbf16>
    tpu.vector_store %arg13[%c0_71, %c55], %203 {strides = array<i32>} : memref<8x326xbf16, #tpu.memory_space<vmem>>, vector<4x16xbf16>,
    %205 = vector.extract_strided_slice %192 {offsets = [0, 3, 0], sizes = [4, 1, 16], strides = [1, 1, 1]} : vector<4x16x16xf32> to vector<4x1x16xf32>
    %206 = vector.shape_cast %205 : vector<4x1x16xf32> to vector<4x16xf32>
    %207 = arith.truncf %206 : vector<4x16xf32> to vector<4x16xbf16>
    %c0_72 = arith.constant 0 : index
    %c73 = arith.constant 73 : index
    %208 = vector.load %arg13[%c0_72, %c73] : memref<8x326xbf16, #tpu.memory_space<vmem>>, vector<4x16xbf16>
    tpu.vector_store %arg13[%c0_72, %c73], %207 {strides = array<i32>} : memref<8x326xbf16, #tpu.memory_space<vmem>>, vector<4x16xbf16>,
    %209 = vector.extract_strided_slice %192 {offsets = [0, 4, 0], sizes = [4, 1, 16], strides = [1, 1, 1]} : vector<4x16x16xf32> to vector<4x1x16xf32>
    %210 = vector.shape_cast %209 : vector<4x1x16xf32> to vector<4x16xf32>
    %211 = arith.truncf %210 : vector<4x16xf32> to vector<4x16xbf16>
    %c0_73 = arith.constant 0 : index
    %c91 = arith.constant 91 : index
    %212 = vector.load %arg13[%c0_73, %c91] : memref<8x326xbf16, #tpu.memory_space<vmem>>, vector<4x16xbf16>
    tpu.vector_store %arg13[%c0_73, %c91], %211 {strides = array<i32>} : memref<8x326xbf16, #tpu.memory_space<vmem>>, vector<4x16xbf16>,
    %213 = vector.extract_strided_slice %192 {offsets = [0, 5, 0], sizes = [4, 1, 16], strides = [1, 1, 1]} : vector<4x16x16xf32> to vector<4x1x16xf32>
    %214 = vector.shape_cast %213 : vector<4x1x16xf32> to vector<4x16xf32>
    %215 = arith.truncf %214 : vector<4x16xf32> to vector<4x16xbf16>
    %c0_74 = arith.constant 0 : index
    %c109 = arith.constant 109 : index
    %216 = vector.load %arg13[%c0_74, %c109] : memref<8x326xbf16, #tpu.memory_space<vmem>>, vector<4x16xbf16>
    tpu.vector_store %arg13[%c0_74, %c109], %215 {strides = array<i32>} : memref<8x326xbf16, #tpu.memory_space<vmem>>, vector<4x16xbf16>,
    %217 = vector.extract_strided_slice %192 {offsets = [0, 6, 0], sizes = [4, 1, 16], strides = [1, 1, 1]} : vector<4x16x16xf32> to vector<4x1x16xf32>
    %218 = vector.shape_cast %217 : vector<4x1x16xf32> to vector<4x16xf32>
    %219 = arith.truncf %218 : vector<4x16xf32> to vector<4x16xbf16>
    %c0_75 = arith.constant 0 : index
    %c127 = arith.constant 127 : index
    %220 = vector.load %arg13[%c0_75, %c127] : memref<8x326xbf16, #tpu.memory_space<vmem>>, vector<4x16xbf16>
    tpu.vector_store %arg13[%c0_75, %c127], %219 {strides = array<i32>} : memref<8x326xbf16, #tpu.memory_space<vmem>>, vector<4x16xbf16>,
    %221 = vector.extract_strided_slice %192 {offsets = [0, 7, 0], sizes = [4, 1, 16], strides = [1, 1, 1]} : vector<4x16x16xf32> to vector<4x1x16xf32>
    %222 = vector.shape_cast %221 : vector<4x1x16xf32> to vector<4x16xf32>
    %223 = arith.truncf %222 : vector<4x16xf32> to vector<4x16xbf16>
    %c0_76 = arith.constant 0 : index
    %c145 = arith.constant 145 : index
    %224 = vector.load %arg13[%c0_76, %c145] : memref<8x326xbf16, #tpu.memory_space<vmem>>, vector<4x16xbf16>
    tpu.vector_store %arg13[%c0_76, %c145], %223 {strides = array<i32>} : memref<8x326xbf16, #tpu.memory_space<vmem>>, vector<4x16xbf16>,
    %225 = vector.extract_strided_slice %192 {offsets = [0, 8, 0], sizes = [4, 1, 16], strides = [1, 1, 1]} : vector<4x16x16xf32> to vector<4x1x16xf32>
    %226 = vector.shape_cast %225 : vector<4x1x16xf32> to vector<4x16xf32>
    %227 = arith.truncf %226 : vector<4x16xf32> to vector<4x16xbf16>
    %c0_77 = arith.constant 0 : index
    %c163 = arith.constant 163 : index
    %228 = vector.load %arg13[%c0_77, %c163] : memref<8x326xbf16, #tpu.memory_space<vmem>>, vector<4x16xbf16>
    tpu.vector_store %arg13[%c0_77, %c163], %227 {strides = array<i32>} : memref<8x326xbf16, #tpu.memory_space<vmem>>, vector<4x16xbf16>,
    %229 = vector.extract_strided_slice %192 {offsets = [0, 9, 0], sizes = [4, 1, 16], strides = [1, 1, 1]} : vector<4x16x16xf32> to vector<4x1x16xf32>
    %230 = vector.shape_cast %229 : vector<4x1x16xf32> to vector<4x16xf32>
    %231 = arith.truncf %230 : vector<4x16xf32> to vector<4x16xbf16>
    %c0_78 = arith.constant 0 : index
    %c181 = arith.constant 181 : index
    %232 = vector.load %arg13[%c0_78, %c181] : memref<8x326xbf16, #tpu.memory_space<vmem>>, vector<4x16xbf16>
    tpu.vector_store %arg13[%c0_78, %c181], %231 {strides = array<i32>} : memref<8x326xbf16, #tpu.memory_space<vmem>>, vector<4x16xbf16>,
    %233 = vector.extract_strided_slice %192 {offsets = [0, 10, 0], sizes = [4, 1, 16], strides = [1, 1, 1]} : vector<4x16x16xf32> to vector<4x1x16xf32>
    %234 = vector.shape_cast %233 : vector<4x1x16xf32> to vector<4x16xf32>
    %235 = arith.truncf %234 : vector<4x16xf32> to vector<4x16xbf16>
    %c0_79 = arith.constant 0 : index
    %c199 = arith.constant 199 : index
    %236 = vector.load %arg13[%c0_79, %c199] : memref<8x326xbf16, #tpu.memory_space<vmem>>, vector<4x16xbf16>
    tpu.vector_store %arg13[%c0_79, %c199], %235 {strides = array<i32>} : memref<8x326xbf16, #tpu.memory_space<vmem>>, vector<4x16xbf16>,
    %237 = vector.extract_strided_slice %192 {offsets = [0, 11, 0], sizes = [4, 1, 16], strides = [1, 1, 1]} : vector<4x16x16xf32> to vector<4x1x16xf32>
    %238 = vector.shape_cast %237 : vector<4x1x16xf32> to vector<4x16xf32>
    %239 = arith.truncf %238 : vector<4x16xf32> to vector<4x16xbf16>
    %c0_80 = arith.constant 0 : index
    %c217 = arith.constant 217 : index
    %240 = vector.load %arg13[%c0_80, %c217] : memref<8x326xbf16, #tpu.memory_space<vmem>>, vector<4x16xbf16>
    tpu.vector_store %arg13[%c0_80, %c217], %239 {strides = array<i32>} : memref<8x326xbf16, #tpu.memory_space<vmem>>, vector<4x16xbf16>,
    %241 = vector.extract_strided_slice %192 {offsets = [0, 12, 0], sizes = [4, 1, 16], strides = [1, 1, 1]} : vector<4x16x16xf32> to vector<4x1x16xf32>
    %242 = vector.shape_cast %241 : vector<4x1x16xf32> to vector<4x16xf32>
    %243 = arith.truncf %242 : vector<4x16xf32> to vector<4x16xbf16>
    %c0_81 = arith.constant 0 : index
    %c235 = arith.constant 235 : index
    %244 = vector.load %arg13[%c0_81, %c235] : memref<8x326xbf16, #tpu.memory_space<vmem>>, vector<4x16xbf16>
    tpu.vector_store %arg13[%c0_81, %c235], %243 {strides = array<i32>} : memref<8x326xbf16, #tpu.memory_space<vmem>>, vector<4x16xbf16>,
    %245 = vector.extract_strided_slice %192 {offsets = [0, 13, 0], sizes = [4, 1, 16], strides = [1, 1, 1]} : vector<4x16x16xf32> to vector<4x1x16xf32>
    %246 = vector.shape_cast %245 : vector<4x1x16xf32> to vector<4x16xf32>
    %247 = arith.truncf %246 : vector<4x16xf32> to vector<4x16xbf16>
    %c0_82 = arith.constant 0 : index
    %c253 = arith.constant 253 : index
    %248 = vector.load %arg13[%c0_82, %c253] : memref<8x326xbf16, #tpu.memory_space<vmem>>, vector<4x16xbf16>
    tpu.vector_store %arg13[%c0_82, %c253], %247 {strides = array<i32>} : memref<8x326xbf16, #tpu.memory_space<vmem>>, vector<4x16xbf16>,
    %249 = vector.extract_strided_slice %192 {offsets = [0, 14, 0], sizes = [4, 1, 16], strides = [1, 1, 1]} : vector<4x16x16xf32> to vector<4x1x16xf32>
    %250 = vector.shape_cast %249 : vector<4x1x16xf32> to vector<4x16xf32>
    %251 = arith.truncf %250 : vector<4x16xf32> to vector<4x16xbf16>
    %c0_83 = arith.constant 0 : index
    %c271 = arith.constant 271 : index
    %252 = vector.load %arg13[%c0_83, %c271] : memref<8x326xbf16, #tpu.memory_space<vmem>>, vector<4x16xbf16>
    tpu.vector_store %arg13[%c0_83, %c271], %251 {strides = array<i32>} : memref<8x326xbf16, #tpu.memory_space<vmem>>, vector<4x16xbf16>,
    %253 = vector.extract_strided_slice %192 {offsets = [0, 15, 0], sizes = [4, 1, 16], strides = [1, 1, 1]} : vector<4x16x16xf32> to vector<4x1x16xf32>
    %254 = vector.shape_cast %253 : vector<4x1x16xf32> to vector<4x16xf32>
    %255 = arith.truncf %254 : vector<4x16xf32> to vector<4x16xbf16>
    %c0_84 = arith.constant 0 : index
    %c289 = arith.constant 289 : index
    %256 = vector.load %arg13[%c0_84, %c289] : memref<8x326xbf16, #tpu.memory_space<vmem>>, vector<4x16xbf16>
    tpu.vector_store %arg13[%c0_84, %c289], %255 {strides = array<i32>} : memref<8x326xbf16, #tpu.memory_space<vmem>>, vector<4x16xbf16>,
    %c0_85 = arith.constant 0 : index
    %c0_86 = arith.constant 0 : index
    %257 = vector.load %arg5[%c0_85, %c0_86] : memref<4x72xbf16, #tpu.memory_space<vmem>>, vector<4x72xbf16>
    %c0_87 = arith.constant 0 : index
    %c0_88 = arith.constant 0 : index
    %258 = vector.load %arg12[%c0_87, %c0_88] : memref<8x326xbf16, #tpu.memory_space<vmem>>, vector<8x288xbf16>
    %c0_89 = arith.constant 0 : index
    %c1 = arith.constant 1 : index
    %259 = vector.load %arg12[%c0_89, %c1] : memref<8x326xbf16, #tpu.memory_space<vmem>>, vector<8x288xbf16>
    %c0_90 = arith.constant 0 : index
    %c2 = arith.constant 2 : index
    %260 = vector.load %arg12[%c0_90, %c2] : memref<8x326xbf16, #tpu.memory_space<vmem>>, vector<8x288xbf16>
    %c0_91 = arith.constant 0 : index
    %c18_92 = arith.constant 18 : index
    %261 = vector.load %arg12[%c0_91, %c18_92] : memref<8x326xbf16, #tpu.memory_space<vmem>>, vector<8x288xbf16>
    %c0_93 = arith.constant 0 : index
    %c19_94 = arith.constant 19 : index
    %262 = vector.load %arg12[%c0_93, %c19_94] : memref<8x326xbf16, #tpu.memory_space<vmem>>, vector<8x288xbf16>
    %c0_95 = arith.constant 0 : index
    %c20 = arith.constant 20 : index
    %263 = vector.load %arg12[%c0_95, %c20] : memref<8x326xbf16, #tpu.memory_space<vmem>>, vector<8x288xbf16>
    %c0_96 = arith.constant 0 : index
    %c36_97 = arith.constant 36 : index
    %264 = vector.load %arg12[%c0_96, %c36_97] : memref<8x326xbf16, #tpu.memory_space<vmem>>, vector<8x288xbf16>
    %c0_98 = arith.constant 0 : index
    %c37_99 = arith.constant 37 : index
    %265 = vector.load %arg12[%c0_98, %c37_99] : memref<8x326xbf16, #tpu.memory_space<vmem>>, vector<8x288xbf16>
    %c0_100 = arith.constant 0 : index
    %c38 = arith.constant 38 : index
    %266 = vector.load %arg12[%c0_100, %c38] : memref<8x326xbf16, #tpu.memory_space<vmem>>, vector<8x288xbf16>
    %267 = tpu.concatenate %258, %259, %260, %261, %262, %263, %264, %265, %266 in 0 : vector<8x288xbf16>, vector<8x288xbf16>, vector<8x288xbf16>, vector<8x288xbf16>, vector<8x288xbf16>, vector<8x288xbf16>, vector<8x288xbf16>, vector<8x288xbf16>, vector<8x288xbf16> -> vector<72x288xbf16>
    %cst_101 = arith.constant dense<0.000000e+00> : vector<4x288xf32>
    %268 = tpu.matmul %257, %267, %cst_101 {dimension_numbers = #tpu.dot_dimension_numbers<[1], [0], [0], [1], [0, 0, 1, 1], [], []>} : vector<4x72xbf16>, vector<72x288xbf16>, vector<4x288xf32> -> vector<4x288xf32>
    %c0_102 = arith.constant 0 : index
    %c0_103 = arith.constant 0 : index
    %269 = vector.load %arg6[%c0_102, %c0_103] : memref<4x1xf32, #tpu.memory_space<vmem>>, vector<4x1xf32>
    %270 = vector.broadcast %269 : vector<4x1xf32> to vector<4x288xf32>
    %271 = arith.addf %268, %270 : vector<4x288xf32>
    %cst_104 = arith.constant 0.000000e+00 : f32
    %272 = vector.shape_cast %2 : vector<1x288xi1> to vector<1x288xi1>
    %273 = vector.broadcast %272 : vector<1x288xi1> to vector<4x288xi1>
    %274 = vector.broadcast %cst_104 : f32 to vector<4x288xf32>
    %275 = arith.select %273, %271, %274 : vector<4x288xi1>, vector<4x288xf32>
    %276 = arith.truncf %275 : vector<4x288xf32> to vector<4x288xbf16>
    %c4 = arith.constant 4 : index
    %c19_105 = arith.constant 19 : index
    %277 = vector.load %arg13[%c4, %c19_105] : memref<8x326xbf16, #tpu.memory_space<vmem>>, vector<4x288xbf16>
    tpu.vector_store %arg13[%c4, %c19_105], %276 {strides = array<i32>} : memref<8x326xbf16, #tpu.memory_space<vmem>>, vector<4x288xbf16>,
    %c0_106 = arith.constant 0 : index
    %c0_107 = arith.constant 0 : index
    %278 = vector.load %arg7[%c0_106, %c0_107] : memref<4x72xbf16, #tpu.memory_space<vmem>>, vector<4x72xbf16>
    %c0_108 = arith.constant 0 : index
    %c0_109 = arith.constant 0 : index
    %279 = vector.load %arg13[%c0_108, %c0_109] : memref<8x326xbf16, #tpu.memory_space<vmem>>, vector<8x288xbf16>
    %c0_110 = arith.constant 0 : index
    %c1_111 = arith.constant 1 : index
    %280 = vector.load %arg13[%c0_110, %c1_111] : memref<8x326xbf16, #tpu.memory_space<vmem>>, vector<8x288xbf16>
    %c0_112 = arith.constant 0 : index
    %c2_113 = arith.constant 2 : index
    %281 = vector.load %arg13[%c0_112, %c2_113] : memref<8x326xbf16, #tpu.memory_space<vmem>>, vector<8x288xbf16>
    %c0_114 = arith.constant 0 : index
    %c18_115 = arith.constant 18 : index
    %282 = vector.load %arg13[%c0_114, %c18_115] : memref<8x326xbf16, #tpu.memory_space<vmem>>, vector<8x288xbf16>
    %c0_116 = arith.constant 0 : index
    %c19_117 = arith.constant 19 : index
    %283 = vector.load %arg13[%c0_116, %c19_117] : memref<8x326xbf16, #tpu.memory_space<vmem>>, vector<8x288xbf16>
    %c0_118 = arith.constant 0 : index
    %c20_119 = arith.constant 20 : index
    %284 = vector.load %arg13[%c0_118, %c20_119] : memref<8x326xbf16, #tpu.memory_space<vmem>>, vector<8x288xbf16>
    %c0_120 = arith.constant 0 : index
    %c36_121 = arith.constant 36 : index
    %285 = vector.load %arg13[%c0_120, %c36_121] : memref<8x326xbf16, #tpu.memory_space<vmem>>, vector<8x288xbf16>
    %c0_122 = arith.constant 0 : index
    %c37_123 = arith.constant 37 : index
    %286 = vector.load %arg13[%c0_122, %c37_123] : memref<8x326xbf16, #tpu.memory_space<vmem>>, vector<8x288xbf16>
    %c0_124 = arith.constant 0 : index
    %c38_125 = arith.constant 38 : index
    %287 = vector.load %arg13[%c0_124, %c38_125] : memref<8x326xbf16, #tpu.memory_space<vmem>>, vector<8x288xbf16>
    %288 = tpu.concatenate %279, %280, %281, %282, %283, %284, %285, %286, %287 in 0 : vector<8x288xbf16>, vector<8x288xbf16>, vector<8x288xbf16>, vector<8x288xbf16>, vector<8x288xbf16>, vector<8x288xbf16>, vector<8x288xbf16>, vector<8x288xbf16>, vector<8x288xbf16> -> vector<72x288xbf16>
    %cst_126 = arith.constant dense<0.000000e+00> : vector<4x288xf32>
    %289 = tpu.matmul %278, %288, %cst_126 {dimension_numbers = #tpu.dot_dimension_numbers<[1], [0], [0], [1], [0, 0, 1, 1], [], []>} : vector<4x72xbf16>, vector<72x288xbf16>, vector<4x288xf32> -> vector<4x288xf32>
    %c0_127 = arith.constant 0 : index
    %c0_128 = arith.constant 0 : index
    %290 = vector.load %arg8[%c0_127, %c0_128] : memref<4x1xf32, #tpu.memory_space<vmem>>, vector<4x1xf32>
    %291 = vector.broadcast %290 : vector<4x1xf32> to vector<4x288xf32>
    %292 = arith.addf %289, %291 : vector<4x288xf32>
    %cst_129 = arith.constant 0.000000e+00 : f32
    %293 = vector.broadcast %cst_129 : f32 to vector<4x288xf32>
    %294 = arith.maximumf %292, %293 : vector<4x288xf32>
    %cst_130 = arith.constant 0.000000e+00 : f32
    %295 = vector.shape_cast %2 : vector<1x288xi1> to vector<1x288xi1>
    %296 = vector.broadcast %295 : vector<1x288xi1> to vector<4x288xi1>
    %297 = vector.broadcast %cst_130 : f32 to vector<4x288xf32>
    %298 = arith.select %296, %294, %297 : vector<4x288xi1>, vector<4x288xf32>
    %299 = arith.truncf %298 : vector<4x288xf32> to vector<4x288xbf16>
    %c0_131 = arith.constant 0 : index
    %c19_132 = arith.constant 19 : index
    %300 = vector.load %arg14[%c0_131, %c19_132] : memref<4x326xbf16, #tpu.memory_space<vmem>>, vector<4x288xbf16>
    tpu.vector_store %arg14[%c0_131, %c19_132], %299 {strides = array<i32>} : memref<4x326xbf16, #tpu.memory_space<vmem>>, vector<4x288xbf16>,
    %c0_133 = arith.constant 0 : index
    %c0_134 = arith.constant 0 : index
    %301 = vector.load %arg9[%c0_133, %c0_134] : memref<4x36xbf16, #tpu.memory_space<vmem>>, vector<4x36xbf16>
    %c0_135 = arith.constant 0 : index
    %c0_136 = arith.constant 0 : index
    %302 = vector.load %arg14[%c0_135, %c0_136] : memref<4x326xbf16, #tpu.memory_space<vmem>>, vector<4x288xbf16>
    %c0_137 = arith.constant 0 : index
    %c1_138 = arith.constant 1 : index
    %303 = vector.load %arg14[%c0_137, %c1_138] : memref<4x326xbf16, #tpu.memory_space<vmem>>, vector<4x288xbf16>
    %c0_139 = arith.constant 0 : index
    %c2_140 = arith.constant 2 : index
    %304 = vector.load %arg14[%c0_139, %c2_140] : memref<4x326xbf16, #tpu.memory_space<vmem>>, vector<4x288xbf16>
    %c0_141 = arith.constant 0 : index
    %c18_142 = arith.constant 18 : index
    %305 = vector.load %arg14[%c0_141, %c18_142] : memref<4x326xbf16, #tpu.memory_space<vmem>>, vector<4x288xbf16>
    %c0_143 = arith.constant 0 : index
    %c19_144 = arith.constant 19 : index
    %306 = vector.load %arg14[%c0_143, %c19_144] : memref<4x326xbf16, #tpu.memory_space<vmem>>, vector<4x288xbf16>
    %c0_145 = arith.constant 0 : index
    %c20_146 = arith.constant 20 : index
    %307 = vector.load %arg14[%c0_145, %c20_146] : memref<4x326xbf16, #tpu.memory_space<vmem>>, vector<4x288xbf16>
    %c0_147 = arith.constant 0 : index
    %c36_148 = arith.constant 36 : index
    %308 = vector.load %arg14[%c0_147, %c36_148] : memref<4x326xbf16, #tpu.memory_space<vmem>>, vector<4x288xbf16>
    %c0_149 = arith.constant 0 : index
    %c37_150 = arith.constant 37 : index
    %309 = vector.load %arg14[%c0_149, %c37_150] : memref<4x326xbf16, #tpu.memory_space<vmem>>, vector<4x288xbf16>
    %c0_151 = arith.constant 0 : index
    %c38_152 = arith.constant 38 : index
    %310 = vector.load %arg14[%c0_151, %c38_152] : memref<4x326xbf16, #tpu.memory_space<vmem>>, vector<4x288xbf16>
    %311 = tpu.concatenate %302, %303, %304, %305, %306, %307, %308, %309, %310 in 0 : vector<4x288xbf16>, vector<4x288xbf16>, vector<4x288xbf16>, vector<4x288xbf16>, vector<4x288xbf16>, vector<4x288xbf16>, vector<4x288xbf16>, vector<4x288xbf16>, vector<4x288xbf16> -> vector<36x288xbf16>
    %cst_153 = arith.constant dense<0.000000e+00> : vector<4x288xf32>
    %312 = tpu.matmul %301, %311, %cst_153 {dimension_numbers = #tpu.dot_dimension_numbers<[1], [0], [0], [1], [0, 0, 1, 1], [], []>} : vector<4x36xbf16>, vector<36x288xbf16>, vector<4x288xf32> -> vector<4x288xf32>
    %c0_154 = arith.constant 0 : index
    %c0_155 = arith.constant 0 : index
    %313 = vector.load %arg10[%c0_154, %c0_155] : memref<4x1xf32, #tpu.memory_space<vmem>>, vector<4x1xf32>
    %314 = vector.broadcast %313 : vector<4x1xf32> to vector<4x288xf32>
    %315 = arith.addf %312, %314 : vector<4x288xf32>
    %cst_156 = arith.constant 0.000000e+00 : f32
    %316 = vector.broadcast %cst_156 : f32 to vector<4x288xf32>
    %317 = arith.maximumf %315, %316 : vector<4x288xf32>
    %cst_157 = arith.constant 0.000000e+00 : f32
    %318 = vector.shape_cast %2 : vector<1x288xi1> to vector<1x288xi1>
    %319 = vector.broadcast %318 : vector<1x288xi1> to vector<4x288xi1>
    %320 = vector.broadcast %cst_157 : f32 to vector<4x288xf32>
    %321 = arith.select %319, %317, %320 : vector<4x288xi1>, vector<4x288xf32>
    %c0_158 = arith.constant 0 : index
    %c0_159 = arith.constant 0 : index
    %c0_160 = arith.constant 0 : index
    %322 = vector.load %arg11[%c0_158, %c0_159, %c0_160] : memref<1x4x288xf32, #tpu.memory_space<vmem>>, vector<1x4x288xf32>
    %323 = vector.shape_cast %322 : vector<1x4x288xf32> to vector<4x288xf32>
    %324 = vector.shape_cast %321 : vector<4x288xf32> to vector<1x4x288xf32>
    tpu.vector_store %arg11[%c0_158, %c0_159, %c0_160], %324 {strides = array<i32>} : memref<1x4x288xf32, #tpu.memory_space<vmem>>, vector<1x4x288xf32>,
    return
  }
  func.func @transform_0(%arg0: i32) -> (i32, i32, i32, i32) {
    %c0_i32 = arith.constant 0 : i32
    %c0_i32_0 = arith.constant 0 : i32
    %c0_i32_1 = arith.constant 0 : i32
    %c0_i32_2 = arith.constant 0 : i32
    return %arg0, %c0_i32, %c0_i32_0, %c0_i32_1 : i32, i32, i32, i32
  }
  func.func @transform_1(%arg0: i32) -> (i32, i32, i32, i32) {
    %c0_i32 = arith.constant 0 : i32
    %c0_i32_0 = arith.constant 0 : i32
    %c0_i32_1 = arith.constant 0 : i32
    %c0_i32_2 = arith.constant 0 : i32
    return %arg0, %c0_i32, %c0_i32_0, %c0_i32_1 : i32, i32, i32, i32
  }
  func.func @transform_2(%arg0: i32) -> (i32, i32) {
    %c0_i32 = arith.constant 0 : i32
    %c0_i32_0 = arith.constant 0 : i32
    %c0_i32_1 = arith.constant 0 : i32
    return %c0_i32, %c0_i32_0 : i32, i32
  }
  func.func @transform_3(%arg0: i32) -> (i32, i32) {
    %c0_i32 = arith.constant 0 : i32
    %c0_i32_0 = arith.constant 0 : i32
    %c0_i32_1 = arith.constant 0 : i32
    return %c0_i32, %c0_i32_0 : i32, i32
  }
  func.func @transform_4(%arg0: i32) -> (i32, i32) {
    %c0_i32 = arith.constant 0 : i32
    %c0_i32_0 = arith.constant 0 : i32
    %c0_i32_1 = arith.constant 0 : i32
    return %c0_i32, %c0_i32_0 : i32, i32
  }
  func.func @transform_5(%arg0: i32) -> (i32, i32) {
    %c0_i32 = arith.constant 0 : i32
    %c0_i32_0 = arith.constant 0 : i32
    %c0_i32_1 = arith.constant 0 : i32
    return %c0_i32, %c0_i32_0 : i32, i32
  }
  func.func @transform_6(%arg0: i32) -> (i32, i32) {
    %c0_i32 = arith.constant 0 : i32
    %c0_i32_0 = arith.constant 0 : i32
    %c0_i32_1 = arith.constant 0 : i32
    return %c0_i32, %c0_i32_0 : i32, i32
  }
  func.func @transform_7(%arg0: i32) -> (i32, i32) {
    %c0_i32 = arith.constant 0 : i32
    %c0_i32_0 = arith.constant 0 : i32
    %c0_i32_1 = arith.constant 0 : i32
    return %c0_i32, %c0_i32_0 : i32, i32
  }
  func.func @transform_8(%arg0: i32) -> (i32, i32) {
    %c0_i32 = arith.constant 0 : i32
    %c0_i32_0 = arith.constant 0 : i32
    %c0_i32_1 = arith.constant 0 : i32
    return %c0_i32, %c0_i32_0 : i32, i32
  }
  func.func @transform_9(%arg0: i32) -> (i32, i32) {
    %c0_i32 = arith.constant 0 : i32
    %c0_i32_0 = arith.constant 0 : i32
    %c0_i32_1 = arith.constant 0 : i32
    return %c0_i32, %c0_i32_0 : i32, i32
  }
  func.func @transform_10(%arg0: i32) -> (i32, i32, i32) {
    %c0_i32 = arith.constant 0 : i32
    %c0_i32_0 = arith.constant 0 : i32
    %c0_i32_1 = arith.constant 0 : i32
    return %arg0, %c0_i32, %c0_i32_0 : i32, i32, i32
  }
}

</mosaic_0001>

<bundles_post_ra>
// kernel: tpu_custom_call.1
= control target key start
LH: loop header
LB: loop body
LE: loop exit
PB: predicated region body
PF: predicated region fallthrough
CT: control target
= control target key end

     0   :  { %s5552_s0 = inlined_call_operand.hbm [shape: f32[2,8,8,8], index: 0, kind: input, shape index: {}]   ;;  %s5553_s1 = inlined_call_operand.hbm [shape: f32[2,4,16,16], index: 1, kind: input, shape index: {}]   ;;  %s5554_s2 = inlined_call_operand.vmem [shape: f32[8,18], index: 2, kind: input, shape index: {}]   ;;  %s5555_s3 = inlined_call_operand.vmem [shape: f32[1,288], index: 3, kind: input, shape index: {}]   ;;  %s5556_s4 = inlined_call_operand.vmem [shape: bf16[4,72], index: 4, kind: input, shape index: {}]   ;;  %s5557_s5 = inlined_call_operand.vmem [shape: f32[4,1], index: 5, kind: input, shape index: {}]   ;;  %s5558_s6 = inlined_call_operand.vmem [shape: bf16[4,72], index: 6, kind: input, shape index: {}]   ;;  %s5559_s7 = inlined_call_operand.vmem [shape: f32[4,1], index: 7, kind: input, shape index: {}]   ;;  %s5560_s8 = inlined_call_operand.vmem [shape: bf16[4,36], index: 8, kind: input, shape index: {}]   ;;  %s5561_s9 = inlined_call_operand.vmem [shape: f32[4,1], index: 9, kind: input, shape index: {}]   ;;  %s5562_s10 = inlined_call_operand.hbm [shape: f32[2,4,288], index: 10, kind: output, shape index: {}]  }
   0x1   :  { %5655 = sst [smem:[#allocation94_spill]] %s5552_s0 }
   0x2   :  { %15 = vsyncpa [#allocation6], 0 }
   0x3   :  { %17 = vsyncpa [#allocation6 + $0x1], 0 }
   0x4   :  { %18 = vsyncpa [#allocation9], 0 }
   0x5   :  { %20 = vsyncpa [#allocation9 + $0x1], 0 }
   0x6   :  { %21 = vsyncpa [#allocation7], 0 }
   0x7   :  { %23 = vsyncpa [#allocation7 + $0x1], 0  ;;  %s4033_s13 = smov 0   ;;  %s4035_s14 = smov 0  }
   0x8   :  { %s4037_s15 = smov 0   ;;  %s4039_s16 = smov 0  }
   0x9 LB: > { %5656 = sst [smem:[#allocation14_spill]] %s3929_s15  ;;  %s4054_s17 = sadd.s32 4294967295, %s3933_s16   ;;  %s3933_s16 = sphi %s4039_s16, %s5857_s16   ;;  %s3929_s15 = sphi %s4037_s15, %s5859_s15   ;;  %s3925_s14 = sphi %s4035_s14, %s5861_s14   ;;  %s3921_s13 = sphi %s4033_s13, %s5860_s13  }
   0xa   : > { %s3317_s18 = sadd.s32 4294967294, %s3933_s16   ;;  %s4058_s19 = sadd.s32 1, %s3933_s16  }
   0xb   : > { %5657 = sst [smem:[#allocation15_spill]] %s4058_s19  ;;  %s36_s20 = sadd.s32 1, %s3929_s15 }
   0xc   : > { %s33_s21 = ssub.s32 %s3933_s16, %s4058_s19  ;;  %p43_p0 = scmp.ne.s32.totalorder %s3929_s15, %s3925_s14 }
   0xd   : > { %p34_p1 = scmp.eq.s32.totalorder %s33_s21, 0  ;;  %p44_p2 = scmp.eq.s32.totalorder %s3933_s16, 0 }
   0xe   : > { %p49_p3 = scmp.ne.s32.totalorder %s3925_s14, %s3921_s13  ;;  %p50_p4 = scmp.eq.s32.totalorder %s4054_s17, 0 }
   0xf   : > { %s4070_s22 = scalar_select %p34_p1, %s3929_s15, %s36_s20  }
  0x10   : > { %p4072_p5 = por %p44_p2, %p43_p0  ;;  %p4076_p6 = por %p50_p4, %p49_p3 }
  0x11   : > { %5658 = sst [smem:[#allocation16_spill]] %s4070_s22  ;;  %p267_p7 = scmp.eq.s32.totalorder %s4054_s17, 1 }
  0x12   : > { %s5660_s24 = scalar_select %p4076_p6, 1, 0 }
  0x13   : > { %p273_p8 = scmp.eq.s32.totalorder %s3317_s18, 1  ;;  %p3730_p10 = scmp.lt.s32.totalorder %s3933_s16, 2 }
  0x14   : > { %p4083_p11 = por %p267_p7, %p43_p0  ;;  %s4092_s27 = sand.u32 1, %s3929_s15  }
  0x15   : > { %p4087_p12 = por %p273_p8, %p49_p3  ;;  %s5565_s28 = sshll.u32 %s3933_s16, 10 }
  0x16   : > { %s5661_s25 = scalar_select %p4083_p11, 1, 0 }
  0x17   : > { %s5662_s26 = scalar_select %p4087_p12, 1, 0 }
  0x18   : > { %s5564_s29 = sshll.u32 %s4092_s27, 6  ;;  %s5664_s0 = sld [smem:[#allocation94_spill]] }
  0x19   : > { %5663 = sst [smem:[#allocation17_spill]] %s5662_s26  ;;  %s321_s18 = scalar_lea.vmem [#allocation5], %s5564_s29 }
  0x1a   : > { %s328_s20 = sshll.u32 %s321_s18, 4  ;;  %p4107_p13 = pnand %p3730_p10, %p4072_p5  ;;  %s4111_s20 = int_to_ptr.vmem [resolvable:$true] %s328_s20 }
  0x1c   : > { %p3811_p1 = pneg %p4107_p13 }
  0x1e   : > { %s4101_s12 = scalar_lea.hbm %s5664_s0, %s5565_s28  ;;  %s3814_s23 = scalar_lea.hbm %s5664_s0, 2048 }
  0x1f   : > { %s3809_s15 = scalar_lea.hbm %s4101_s12, 1024  ;;  %p3815_p4 = scmp.lt.s32.totalorder %s4101_s12, %s5664_s0 }
  0x20   : > { %p3810_p0 = scmp.ne.s32.totalorder %s4101_s12, %s3809_s15  ;;  %p3816_p5 = scmp.lt.s32.totalorder %s3814_s23, %s3809_s15 }
  0x22   : > { %p3812_p2 = pnand %p3811_p1, %p3810_p0  ;;  %p3817_p7 = por %p3816_p5, %p3815_p4 }
  0x24   : > { %p3813_p3 = pneg %p3812_p2 }
  0x26   : > { %p3818_p8 = pnand %p3817_p7, %p3813_p3 }
  0x28   : > { %3821 = shalt.err (!%p3818_p8)
}
  0x29   : > { %s3822_s28 = scalar_lea.vmem %s4111_s20, 1024  ;;  %s3935_s30 = smov [#allocation5]  }
  0x2a   : > { %p3823_p10 = scmp.ne.s32.totalorder %s4111_s20, %s3822_s28  ;;  %s3827_s11 = sshll.u32 %s3935_s30, 4  ;;  %s3828_s11 = int_to_ptr.vmem [resolvable:$false] %s3827_s11 }
  0x2b   : > { %s3829_s22 = scalar_lea.vmem %s3828_s11, 2048  ;;  %p3830_p9 = scmp.lt.s32.totalorder %s4111_s20, %s3828_s11 }
  0x2c   : > { %p3825_p0 = pnand %p3823_p10, %p3811_p1  ;;  %p3831_p12 = scmp.lt.s32.totalorder %s3829_s22, %s3822_s28 }
  0x2e   : > { %p3826_p2 = pneg %p3825_p0  ;;  %p3832_p11 = por %p3831_p12, %p3830_p9 }
  0x30   : > { %p3833_p4 = pnand %p3832_p11, %p3826_p2 }
  0x32   : > { %3836 = shalt.err (!%p3833_p4)
}
  0x33   : > { %s5570_s15 = smov 128   ;;  %s3937_s29 = smov 8  }
  0x34   : > { %s5666_s22 = scalar_lea.sflag [#allocation6], %s4092_s27  ;;  %p3326_p9 = scmp.ge.s32.totalorder %s3933_s16, 1 }
  0x35   : > { %3722 = dma.hbm_to_vmem [thread:$0]  (!%p4107_p13), %s4101_s12, 1024, %s4111_s20, %s5666_s22, %s5570_s15, %s5570_s15, %s3937_s29  }
  0x36   : > { %p357_p11 = scmp.lt.s32.totalorder %s3933_s16, 3  ;;  %s5668_s23 = sshll.u32 %s3933_s16, 10 }
  0x37   : > { %s4154_s11 = scalar_lea.hbm %s5553_s1, %s5668_s23  ;;  %s5669_s0 = sshll.u32 %s4092_s27, 6 }
  0x38   : > { %p4145_p12 = pnand %p3326_p9, %p357_p11  ;;  %s342_s19 = scalar_lea.vmem [#allocation8], %s5669_s0 }
  0x39   : > { %s349_s26 = sshll.u32 %s342_s19, 4  ;;  %s339_s12 = scalar_lea.sflag [#allocation9], %s4092_s27  ;;  %s4158_s26 = int_to_ptr.vmem [resolvable:$true] %s349_s26 }
  0x3a   : > { %s3837_s20 = scalar_lea.hbm %s4154_s11, 1024  ;;  %s3842_s23 = scalar_lea.hbm %s5553_s1, 2048 }
  0x3b   : > { %p3838_p3 = scmp.ne.s32.totalorder %s4154_s11, %s3837_s20  ;;  %p3843_p8 = scmp.lt.s32.totalorder %s4154_s11, %s5553_s1 }
  0x3c   : > { %p3844_p10 = scmp.lt.s32.totalorder %s3842_s23, %s3837_s20 }
  0x3d   : > { %p3840_p5 = pnand %p3838_p3, %p3811_p1 }
  0x3e   : > { %p3845_p0 = por %p3844_p10, %p3843_p8 }
  0x3f   : > { %p3841_p7 = pneg %p3840_p5 }
  0x41   : > { %p3846_p2 = pnand %p3845_p0, %p3841_p7 }
  0x43   : > { %3849 = shalt.err (!%p3846_p2)
}
  0x44   : > { %s3850_s0 = scalar_lea.vmem %s4158_s26, 1024  ;;  %s3938_s19 = smov [#allocation8]  }
  0x45   : > { %p3851_p4 = scmp.ne.s32.totalorder %s4158_s26, %s3850_s0  ;;  %s3855_s27 = sshll.u32 %s3938_s19, 4  ;;  %s3856_s27 = int_to_ptr.vmem [resolvable:$false] %s3855_s27 }
  0x46   : > { %s3857_s15 = scalar_lea.vmem %s3856_s27, 2048  ;;  %p3858_p3 = scmp.lt.s32.totalorder %s4158_s26, %s3856_s27 }
  0x47   : > { %p3853_p9 = pnand %p3851_p4, %p3811_p1  ;;  %p3859_p5 = scmp.lt.s32.totalorder %s3857_s15, %s3850_s0 }
  0x49   : > { %p3854_p11 = pneg %p3853_p9  ;;  %p3860_p6 = por %p3859_p5, %p3858_p3 }
  0x4b   : > { %p3861_p8 = pnand %p3860_p6, %p3854_p11 }
  0x4d   : > { %3864 = shalt.err (!%p3861_p8)
}
  0x4e   : > { %s5670_s20 = smov 128   ;;  %361 = sbr.rel (%p4145_p12) target bundleno = 1995 (0x7cb), region = 60 }
  0x4f   : > { %3725 = dma.hbm_to_vmem [thread:$0]  (!%p4107_p13), %s4154_s11, 1024, %s4158_s26, %s339_s12, %s5670_s20, %s5670_s20, %s3937_s29  }
  0x53   : > { %s4189_s22 = sand.u32 1, %s3925_s14   ;;  %p5671_p6 = scmp.ne.s32.totalorder %s5660_s24, 0 }
  0x54   : > { %s3327_s23 = sshll.u32 %s4189_s22, 6  ;;  %s364_s18 = scalar_lea.sflag [#allocation6], %s4189_s22 }
  0x55   : > { %s367_s30 = scalar_lea.vmem [#allocation5], %s3327_s23 }
  0x56   : > { %3908 = dma.done.wait (%p5671_p6), %s364_s18, 1024  }
  0x57   : > { %3910 = vsyncadd (%p5671_p6), %s364_s18, 4294966272  ;;  %s373_s26 = scalar_lea.sflag [#allocation9], %s4189_s22  ;;  %s4198_s21 = scalar_lea.vmem [#allocation8], %s3327_s23 }
  0x58   : > { %3912 = dma.done.wait (%p5671_p6), %s373_s26, 1024  }
  0x59   : > { %3914 = vsyncadd (%p5671_p6), %s373_s26, 4294966272  ;;  %vm441_vm0 = vcmask 64512   ;;  %v440_v0 = vld [vmem:[%s5554_s2] sm:$0xff]  ;;  %v434_v3 = vld [vmem:[%s367_s30 + $0x10] sm:$0xff]  ;;  %vm652_vm1 = vcmask 1041409   ;;  %vm655_vm2 = vcmask 1042434  }
  0x5a   : > { %v432_v1 = vld [vmem:[%s367_s30] sm:$0xff]  ;;  %v433_v2 = vld [vmem:[%s367_s30 + $0x8] sm:$0xff]  ;;  %3659 = vmatprep.subr.mxu0 %v440_v0  ;;  %v435_v4 = vld [vmem:[%s367_s30 + $0x18] sm:$0xff]  ;;  %vm658_vm3 = vcmask 1043459   ;;  %vm661_vm4 = vcmask 1044484   ;;  %vm667_vm5 = vcmask 1046534  }
  0x5b   : > { %3661 = vmatprep.mubr.msk.f32.mxu0 %vm441_vm0, %v432_v1  ;;  %3660 = vmatpush3.msra.mxu0 %v440_v0  ;;  %v436_v5 = vld [vmem:[%s367_s30 + $0x20] sm:$0xff]  ;;  %v437_v6 = vld [vmem:[%s367_s30 + $0x28] sm:$0xff]  ;;  %v438_v7 = vld [vmem:[%s367_s30 + $0x30] sm:$0xff]  ;;  %vm664_vm6 = vcmask 1045509   ;;  %vm670_vm7 = vcmask 1047559   ;;  %s3939_s24 = smov 124  }
  0x5c   : > { %3662 = vmatmul.mubr.msk.f32.vlgmr.msra.gmra.mxu0 %vm441_vm0, %v433_v2  ;;  %v439_v8 = vld [vmem:[%s367_s30 + $0x38] sm:$0xff]  ;;  %s3940_s11 = smov 18   ;;  %s3941_s12 = smov 54   ;;  %vm676_vm8 = vcmask 289936   ;;  %vm784_vm9 = vcmask 437536   ;;  %vm892_vm10 = vcmask 585136  }
  0x5d   : > { %3664 = vmatprep.mubr.msk.f32.mxu0 %vm441_vm0, %v434_v3  ;;  %s3942_s0 = smov 36   ;;  %s3943_s19 = smov 72   ;;  %vm1000_vm11 = vcmask 732736   ;;  %vm422_vm12 = vcmask 568320   ;;  %vm1108_vm13 = vcmask 880336   ;;  %vm1327_vm14 = vcmask 1044464  }
  0x5e   : > { %s3944_s27 = smov 126   ;;  %s3945_s15 = smov 90   ;;  %vm1328_vm15 = vcmask 130052  }
  0x5f   : > { %s3946_s20 = smov 108   ;;  %s3947_s23 = smov 16  }
  0x60   : > { %3665 = vmatmul.mubr.msk.f32.gmra.mxu0 %vm441_vm0, %v435_v4  ;;  %s3948_s18 = smov 34   ;;  %s3949_s30 = smov 52  }
  0x61   : > { %3667 = vmatprep.mubr.msk.f32.mxu0 %vm441_vm0, %v436_v5  ;;  %s3950_s26 = smov 70   ;;  %s3951_s29 = smov 106  }
  0x62   : > { %s3952_s28 = smov 88   ;;  %p5853_p1 = scmp.ne.s32.totalorder %s5661_s25, 0 }
  0x64   : > { %3668 = vmatmul.mubr.msk.f32.gmra.mxu0 %vm441_vm0, %v437_v6 }
  0x65   : > { %3670 = vmatprep.mubr.msk.f32.mxu0 %vm441_vm0, %v438_v7 }
  0x68   : > { %3671 = vmatmul.mubr.msk.f32.gmra.mxu0 %vm441_vm0, %v439_v8  ;;  %vm5651_vm0 = vcmask 1031168  }
 0x11c   : > { %v4215_v9 = vpop.f32.mrf.mxu0 }
 0x11d   : > { %5672 = vst [vmem:[#allocation18_spill] sm:$0xff] %v4215_v9  ;;  %v4218_v10 = vmul.f32 0.06666667, %v4215_v9  ;;  %v4221_v11 = vmul.f32 0.93333334, %v4215_v9  ;;  %v4224_v12 = vmul.f32 0.0, %v4215_v9 }
 0x11e   : > { %v4226_v13 = vpop.f32.mrf.mxu0  ;;  %v4229_v14 = vmul.f32 0.53333336, %v4215_v9  ;;  %v4232_v15 = vmul.f32 0.46666667, %v4215_v9  ;;  %v4235_v16 = vmul.f32 0.6, %v4215_v9 }
 0x11f   : > { %5673 = vst [vmem:[#allocation19_spill] sm:$0xff] %v4224_v12  ;;  %5674 = vst [vmem:[#allocation20_spill] sm:$0xff] %v4226_v13  ;;  %v4238_v17 = vmul.f32 0.06666667, %v4226_v13  ;;  %v4241_v18 = vmul.f32 0.93333334, %v4226_v13 }
 0x120   : > { %5675 = vst [vmem:[#allocation21_spill] sm:$0xff] %v4229_v14  ;;  %5676 = vst [vmem:[#allocation22_spill] sm:$0xff] %v4232_v15  ;;  %v1908_v20 = vrot.slane %v4218_v10, 1  ;;  %v4245_v21 = vpop.f32.mrf.mxu0  ;;  %v4248_v22 = vmul.f32 0.0, %v4226_v13  ;;  %v588_v23 = vrot.slane %v4224_v12, 1 }
 0x121   : > { %5677 = vst [vmem:[#allocation23_spill] sm:$0xff] %v4235_v16  ;;  %5678 = vst [vmem:[#allocation24_spill] sm:$0xff] %v4245_v21  ;;  %v4252_v24 = vmul.f32 0.53333336, %v4226_v13  ;;  %v4255_v25 = vmul.f32 0.46666667, %v4226_v13 }
 0x122   : > { %5679 = vst [vmem:[#allocation25_spill] sm:$0xff] %v4248_v22  ;;  %v4258_v26 = vmul.f32 0.06666667, %v4245_v21  ;;  %v4261_v27 = vmul.f32 0.93333334, %v4245_v21  ;;  %v1907_v28 = vrot.slane %v4238_v17, 1  ;;  %v1924_v29 = vadd.f32 %v1908_v20, %v4221_v11  ;;  %v4265_v30 = vpop.f32.mrf.mxu0 }
 0x123   : > { %5680 = vst [vmem:[#allocation26_spill] sm:$0xff] %v4252_v24  ;;  %5681 = vst [vmem:[#allocation27_spill] sm:$0xff] %v4255_v25  ;;  %v4268_v31 = vmul.f32 0.0, %v4245_v21  ;;  %v587_v32 = vrot.slane %v4248_v22, 1  ;;  %v4272_v33 = vadd.f32 %v4215_v9, %v588_v23  ;;  %v4276_v35 = vmul.f32 0.06666667, %v4265_v30 }
 0x124   : > { %5682 = vst [vmem:[#allocation28_spill] sm:$0xff] %v4265_v30  ;;  %v4279_v36 = vmul.f32 0.93333334, %v4265_v30  ;;  %v1910_v38 = vrot.slane %v4258_v26, 1  ;;  %v4283_v39 = vpop.f32.mrf.mxu0  ;;  %v1923_v40 = vadd.f32 %v1907_v28, %v4241_v18  ;;  %v3601_v41 = vpack.c.bf16 %v1924_v29, %v1924_v29 }
 0x125   : > { %5683 = vst [vmem:[#allocation29_spill] sm:$0xff] %v4268_v31  ;;  %5684 = vst [vmem:[#allocation30_spill] sm:$0xff] %v4283_v39  ;;  %v4287_v42 = vmul.f32 0.0, %v4265_v30  ;;  %v590_v43 = vrot.slane %v4268_v31, 1  ;;  %v4291_v44 = vmul.f32 0.06666667, %v4283_v39 }
 0x126   : > { %v4294_v45 = vmul.f32 0.93333334, %v4283_v39  ;;  %v1909_v47 = vrot.slane %v4276_v35, 1  ;;  %v4298_v48 = vpop.f32.mrf.mxu0  ;;  %v1926_v49 = vadd.f32 %v1910_v38, %v4261_v27  ;;  %v3600_v50 = vpack.c.bf16 %v1923_v40, %v1923_v40 }
 0x127   : > { %5685 = vst [vmem:[#allocation31_spill] sm:$0xff] %v4287_v42  ;;  %5686 = vst [vmem:[#allocation32_spill] sm:$0xff] %v4298_v48  ;;  %v1964_v51 = vunpack.c.l.b16 %v3601_v41  ;;  %v4302_v52 = vmul.f32 0.0, %v4283_v39  ;;  %v4305_v53 = vmul.f32 0.06666667, %v4298_v48  ;;  %v1912_v56 = vrot.slane %v4291_v44, 1 }
 0x128   : > { %v4308_v54 = vmul.f32 0.93333334, %v4298_v48  ;;  %v4312_v57 = vpop.f32.mrf.mxu0  ;;  %v1925_v58 = vadd.f32 %v1909_v47, %v4279_v36  ;;  %v3603_v59 = vpack.c.bf16 %v1926_v49, %v1926_v49  ;;  %v1963_v60 = vunpack.c.l.b16 %v3600_v50 }
 0x129   : > { %5687 = vst [vmem:[#allocation33_spill] sm:$0xff] %v4302_v52  ;;  %5688 = vst [vmem:[#allocation34_spill] sm:$0xff] %v4312_v57  ;;  %v1972_v61 = vrot.slane %v1964_v51, 5  ;;  %v4316_v62 = vmul.f32 0.06666667, %v4312_v57  ;;  %v1911_v1 = vrot.slane %v4305_v53, 1  ;;  %v1928_v3 = vadd.f32 %v1912_v56, %v4294_v45 }
 0x12a   : > { %v4319_v63 = vmul.f32 0.93333334, %v4312_v57  ;;  %v4323_v2 = vpop.f32.mrf.mxu0  ;;  %v3602_v4 = vpack.c.bf16 %v1925_v58, %v1925_v58  ;;  %v1966_v5 = vunpack.c.l.b16 %v3603_v59  ;;  %v1971_v6 = vrot.slane %v1963_v60, 6 }
 0x12b   : > { %5689 = vst [vmem:[#allocation35_spill] sm:$0xff] %v4323_v2  ;;  %v4327_v7 = vmul.f32 0.06666667, %v4323_v2  ;;  %v4330_v8 = vmul.f32 0.93333334, %v4323_v2  ;;  %v1914_v23 = vrot.slane %v4316_v62, 1  ;;  %v1927_v28 = vadd.f32 %v1911_v1, %v4308_v54 }
 0x12c   : > { %v3605_v29 = vpack.c.bf16 %v1928_v3, %v1928_v3  ;;  %v1965_v38 = vunpack.c.l.b16 %v3602_v4  ;;  %v1973_v40 = vsel %vm652_vm1, %v1972_v61, %v1971_v6  ;;  %v1976_v50 = vrot.slane %v1966_v5, 3 }
 0x12d   : > { %v1913_v47 = vrot.slane %v4327_v7, 1  ;;  %v1930_v49 = vadd.f32 %v1914_v23, %v4319_v63  ;;  %v3604_v51 = vpack.c.bf16 %v1927_v28, %v1927_v28  ;;  %v4340_v59 = vmul.f32 0.0, %v4298_v48 }
 0x12e   : > { %v1968_v56 = vunpack.c.l.b16 %v3605_v29  ;;  %v1974_v58 = vrot.slane %v1965_v38, 4  ;;  %v4344_v3 = vmul.f32 0.0, %v4323_v2  ;;  %v4347_v61 = vmul.f32 0.0, %v4312_v57 }
 0x12f   : > { %5690 = vst [vmem:[#allocation36_spill] sm:$0xff] %v4340_v59  ;;  %v1929_v60 = vadd.f32 %v1913_v47, %v4330_v8  ;;  %v3607_v1 = vpack.c.bf16 %v1930_v49, %v1930_v49  ;;  %v1967_v4 = vunpack.c.l.b16 %v3604_v51  ;;  %v589_v5 = vrot.slane %v4287_v42, 1 }
 0x130   : > { %5691 = vst [vmem:[#allocation37_spill] sm:$0xff] %v4344_v3  ;;  %5692 = vst [vmem:[#allocation38_spill] sm:$0xff] %v4347_v61  ;;  %v1975_v6 = vsel %vm655_vm2, %v1974_v58, %v1973_v40  ;;  %v1980_v23 = vrot.slane %v1968_v56, 1  ;;  %v591_v20 = vrot.slane %v4340_v59, 1  ;;  %v592_v49 = vrot.slane %v4302_v52, 1 }
 0x131   : > { %v3606_v28 = vpack.c.bf16 %v1929_v60, %v1929_v60  ;;  %v1970_v29 = vunpack.c.l.b16 %v3607_v1  ;;  %v1977_v38 = vsel %vm658_vm3, %v1976_v50, %v1975_v6  ;;  %v1978_v47 = vrot.slane %v1967_v4, 2 }
 0x132   : > { %v593_v41 = vrot.slane %v4344_v3, 1  ;;  %v594_v55 = vrot.slane %v4347_v61, 1  ;;  %v603_v40 = vadd.f32 %v587_v32, %v4226_v13  ;;  %v605_v56 = vadd.f32 %v589_v5, %v4265_v30 }
 0x133   : > { %v1969_v0 = vunpack.c.l.b16 %v3606_v28  ;;  %v1983_v51 = vrot.slane %v1970_v29, 7  ;;  %v1979_v58 = vsel %vm661_vm4, %v1978_v47, %v1977_v38  ;;  %v606_v50 = vadd.f32 %v4245_v21, %v590_v43 }
 0x134   : > { %v607_v60 = vadd.f32 %v591_v20, %v4298_v48  ;;  %v608_v1 = vadd.f32 %v4283_v39, %v592_v49  ;;  %v1981_v4 = vsel %vm664_vm6, %v1980_v23, %v1979_v58  ;;  %v609_v6 = vadd.f32 %v593_v41, %v4323_v2 }
 0x135   : > { %v610_v28 = vadd.f32 %v4312_v57, %v594_v55  ;;  %v3496_v29 = vpack.c.bf16 %v603_v40, %v603_v40  ;;  %v1982_v32 = vsel %vm667_vm5, %v1969_v0, %v1981_v4  ;;  %v3497_v5 = vpack.c.bf16 %v4272_v33, %v4272_v33 }
 0x136   : > { %v3498_v38 = vpack.c.bf16 %v605_v56, %v605_v56  ;;  %v3499_v47 = vpack.c.bf16 %v606_v50, %v606_v50  ;;  %v1984_v43 = vsel %vm670_vm7, %v1983_v51, %v1982_v32  ;;  %v3500_v37 = vpack.c.bf16 %v607_v60, %v607_v60 }
 0x137   : > { %v3501_v20 = vpack.c.bf16 %v608_v1, %v608_v1  ;;  %v3502_v46 = vpack.c.bf16 %v609_v6, %v609_v6  ;;  %v1985_v49 = vpack.c.b16 %v1984_v43, %v1984_v43  ;;  %v3503_v19 = vpack.c.bf16 %v610_v28, %v610_v28 }
 0x138   : > { %v643_v23 = vunpack.c.l.b16 %v3496_v29  ;;  %v644_v58 = vunpack.c.l.b16 %v3497_v5  ;;  %v645_v41 = vunpack.c.l.b16 %v3498_v38  ;;  %v646_v34 = vunpack.c.l.b16 %v3499_v47 }
 0x139   : > { %v647_v55 = vunpack.c.l.b16 %v3500_v37  ;;  %v648_v40 = vunpack.c.l.b16 %v3501_v20  ;;  %1986 = vrot.lane.b32.xlu1 %v1985_v49, %s3939_s24  ;;  %v649_v0 = vunpack.c.l.b16 %v3502_v46  ;;  %v650_v4 = vunpack.c.l.b16 %v3503_v19  ;;  %s3953_s24 = smov 32  }
 0x13a   : > { %v651_v33 = vrot.slane %v644_v58, 7  ;;  %v5693_v56 = vrot.slane %v4241_v18, 1  ;;  %v654_v50 = vrot.slane %v645_v41, 6  ;;  %v657_v60 = vrot.slane %v646_v34, 5 }
 0x13b   : > { %v660_v1 = vrot.slane %v647_v55, 4  ;;  %v663_v6 = vrot.slane %v648_v40, 3  ;;  %v666_v29 = vrot.slane %v649_v0, 2  ;;  %v669_v32 = vrot.slane %v650_v4, 1 }
 0x13c   : > { %v826_v51 = vadd.f32 %v5693_v56, %v4238_v17  ;;  %v653_v28 = vsel %vm652_vm1, %v651_v33, %v643_v23  ;;  %v5694_v37 = vrot.slane %v4221_v11, 1  ;;  %v5695_v19 = vrot.slane %v4279_v36, 1 }
 0x13d   : > { %v656_v46 = vsel %vm655_vm2, %v654_v50, %v653_v28  ;;  %v5696_v17 = vrot.slane %v4261_v27, 1  ;;  %v5697_v34 = vrot.slane %v4308_v54, 1  ;;  %v5698_v11 = vrot.slane %v4294_v45, 1 }
 0x13e   : > { %v827_v5 = vadd.f32 %v5694_v37, %v4218_v10  ;;  %v828_v38 = vadd.f32 %v5695_v19, %v4276_v35  ;;  %v659_v43 = vsel %vm658_vm3, %v657_v60, %v656_v46  ;;  %v5699_v20 = vrot.slane %v4330_v8, 1 }
 0x13f   : > { %v829_v18 = vadd.f32 %v5696_v17, %v4258_v26  ;;  %v830_v47 = vadd.f32 %v5697_v34, %v4305_v53  ;;  %v831_v10 = vadd.f32 %v5698_v11, %v4291_v44  ;;  %v5700_v35 = vrot.slane %v4319_v63, 1 }
 0x140   : > { %v832_v49 = vadd.f32 %v5699_v20, %v4327_v7  ;;  %v662_v26 = vsel %vm661_vm4, %v660_v1, %v659_v43  ;;  %v3512_v27 = vpack.c.bf16 %v826_v51, %v826_v51  ;;  %v3513_v23 = vpack.c.bf16 %v827_v5, %v827_v5 }
 0x141   : > { %v833_v36 = vadd.f32 %v5700_v35, %v4316_v62  ;;  %v3514_v54 = vpack.c.bf16 %v828_v38, %v828_v38  ;;  %v665_v53 = vsel %vm664_vm6, %v663_v6, %v662_v26  ;;  %v3515_v58 = vpack.c.bf16 %v829_v18, %v829_v18 }
 0x142   : > { %v3516_v41 = vpack.c.bf16 %v830_v47, %v830_v47  ;;  %v3517_v55 = vpack.c.bf16 %v831_v10, %v831_v10  ;;  %v668_v44 = vsel %vm667_vm5, %v666_v29, %v665_v53  ;;  %v3518_v45 = vpack.c.bf16 %v832_v49, %v832_v49 }
 0x143   : > { %v3519_v40 = vpack.c.bf16 %v833_v36, %v833_v36  ;;  %v866_v8 = vunpack.c.l.b16 %v3512_v27  ;;  %v671_v7 = vsel %vm670_vm7, %v669_v32, %v668_v44  ;;  %v867_v0 = vunpack.c.l.b16 %v3513_v23 }
 0x144   : > { %v868_v63 = vunpack.c.l.b16 %v3514_v54  ;;  %v869_v62 = vunpack.c.l.b16 %v3515_v58  ;;  %v672_v4 = vpack.c.b16 %v671_v7, %v671_v7  ;;  %v870_v33 = vunpack.c.l.b16 %v3516_v41 }
 0x145   : > { %v871_v56 = vunpack.c.l.b16 %v3517_v55  ;;  %v872_v51 = vunpack.c.l.b16 %v3518_v45  ;;  %v873_v50 = vunpack.c.l.b16 %v3519_v40  ;;  %v874_v60 = vrot.slane %v867_v0, 7 }
 0x146   : > { %v876_v1 = vrot.slane %v868_v63, 6  ;;  %v878_v6 = vrot.slane %v869_v62, 5  ;;  %673 = vrot.lane.b32.xlu0 %v672_v4, %s3940_s11  ;;  %v880_v28 = vrot.slane %v870_v33, 4  ;;  %v4405_v5 = vmul.f32 0.53333336, %v4265_v30  ;;  %s3955_s11 = smov 14  }
 0x147   : > { %v882_v29 = vrot.slane %v871_v56, 3  ;;  %v884_v37 = vrot.slane %v872_v51, 2  ;;  %v875_v32 = vsel %vm652_vm1, %v874_v60, %v866_v8  ;;  %v886_v46 = vrot.slane %v873_v50, 1 }
 0x148   : > { %5701 = vst [vmem:[#allocation39_spill] sm:$0xff] %v4405_v5  ;;  %v4409_v19 = vmul.f32 0.53333336, %v4245_v21  ;;  %v4412_v38 = vmul.f32 0.53333336, %v4298_v48  ;;  %v877_v17 = vsel %vm655_vm2, %v876_v1, %v875_v32  ;;  %v702_v23 = vrot.slane %v4255_v25, 1 }
 0x149   : > { %v4416_v18 = vmul.f32 0.53333336, %v4283_v39  ;;  %v4419_v34 = vmul.f32 0.53333336, %v4323_v2  ;;  %v4422_v47 = vmul.f32 0.53333336, %v4312_v57  ;;  %v879_v43 = vsel %vm658_vm3, %v878_v6, %v877_v17 }
 0x14a   : > { %5702 = vst [vmem:[#allocation40_spill] sm:$0xff] %v4409_v19  ;;  %5703 = vst [vmem:[#allocation41_spill] sm:$0xff] %v4412_v38  ;;  %v4426_v11 = vmul.f32 0.46666667, %v4265_v30  ;;  %v4429_v10 = vmul.f32 0.46666667, %v4245_v21  ;;  %v881_v49 = vsel %vm661_vm4, %v880_v28, %v879_v43  ;;  %v718_v7 = vadd.f32 %v702_v23, %v4252_v24 }
 0x14b   : > { %5704 = vst [vmem:[#allocation42_spill] sm:$0xff] %v4416_v18  ;;  %5705 = vst [vmem:[#allocation43_spill] sm:$0xff] %v4419_v34  ;;  %v4432_v20 = vmul.f32 0.46666667, %v4298_v48  ;;  %v4436_v35 = vmul.f32 0.46666667, %v4283_v39  ;;  %v883_v27 = vsel %vm664_vm6, %v882_v29, %v881_v49 }
 0x14c   : > { %5706 = vst [vmem:[#allocation44_spill] sm:$0xff] %v4422_v47  ;;  %5707 = vst [vmem:[#allocation45_spill] sm:$0xff] %v4426_v11  ;;  %v4439_v36 = vmul.f32 0.46666667, %v4323_v2  ;;  %v4442_v26 = vmul.f32 0.46666667, %v4312_v57  ;;  %v885_v58 = vsel %vm667_vm5, %v884_v37, %v883_v27  ;;  %v3504_v60 = vpack.c.bf16 %v718_v7, %v718_v7 }
 0x14d   : > { %5708 = vst [vmem:[#allocation46_spill] sm:$0xff] %v4429_v10  ;;  %5709 = vst [vmem:[#allocation47_spill] sm:$0xff] %v4432_v20  ;;  %v703_v54 = vrot.slane %v4232_v15, 1  ;;  %v704_v53 = vrot.slane %v4426_v11, 1  ;;  %v705_v41 = vrot.slane %v4429_v10, 1  ;;  %v706_v55 = vrot.slane %v4432_v20, 1 }
 0x14e   : > { %5710 = vst [vmem:[#allocation48_spill] sm:$0xff] %v4436_v35  ;;  %5711 = vst [vmem:[#allocation49_spill] sm:$0xff] %v4439_v36  ;;  %v707_v44 = vrot.slane %v4436_v35, 1  ;;  %v887_v45 = vsel %vm670_vm7, %v886_v46, %v885_v58  ;;  %v708_v40 = vrot.slane %v4439_v36, 1  ;;  %v709_v8 = vrot.slane %v4442_v26, 1 }
 0x14f   : > { %5712 = vst [vmem:[#allocation50_spill] sm:$0xff] %v4442_v26  ;;  %v888_v0 = vpack.c.b16 %v887_v45, %v887_v45  ;;  %v719_v63 = vadd.f32 %v703_v54, %v4229_v14  ;;  %v720_v62 = vadd.f32 %v704_v53, %v4405_v5  ;;  %v721_v4 = vadd.f32 %v705_v41, %v4409_v19 }
 0x150   : > { %v722_v33 = vadd.f32 %v706_v55, %v4412_v38  ;;  %v723_v56 = vadd.f32 %v707_v44, %v4416_v18  ;;  %v724_v51 = vadd.f32 %v708_v40, %v4419_v34  ;;  %v725_v50 = vadd.f32 %v709_v8, %v4422_v47 }
 0x151   : > { %889 = vrot.lane.b32.xlu1 %v888_v0, %s3941_s12  ;;  %v3505_v1 = vpack.c.bf16 %v719_v63, %v719_v63  ;;  %v3506_v6 = vpack.c.bf16 %v720_v62, %v720_v62  ;;  %v3507_v28 = vpack.c.bf16 %v721_v4, %v721_v4  ;;  %v758_v17 = vunpack.c.l.b16 %v3504_v60  ;;  %s3956_s12 = smov 92  }
 0x152   : > { %v3508_v29 = vpack.c.bf16 %v722_v33, %v722_v33  ;;  %v3509_v37 = vpack.c.bf16 %v723_v56, %v723_v56  ;;  %v3510_v32 = vpack.c.bf16 %v724_v51, %v724_v51  ;;  %v3511_v46 = vpack.c.bf16 %v725_v50, %v725_v50 }
 0x153   : > { %v759_v43 = vunpack.c.l.b16 %v3505_v1  ;;  %v760_v49 = vunpack.c.l.b16 %v3506_v6  ;;  %v761_v27 = vunpack.c.l.b16 %v3507_v28  ;;  %v4464_v45 = vmul.f32 0.6, %v4226_v13 }
 0x154   : > { %v762_v23 = vunpack.c.l.b16 %v3508_v29  ;;  %v763_v54 = vunpack.c.l.b16 %v3509_v37  ;;  %v764_v53 = vunpack.c.l.b16 %v3510_v32  ;;  %v765_v58 = vunpack.c.l.b16 %v3511_v46 }
 0x155   : > { %v766_v41 = vrot.slane %v759_v43, 7  ;;  %v768_v55 = vrot.slane %v760_v49, 6  ;;  %v770_v44 = vrot.slane %v761_v27, 5  ;;  %5713 = vst [vmem:[#allocation51_spill] sm:$0xff] %v4464_v45  ;;  %v4468_v62 = vmul.f32 0.6, %v4265_v30 }
 0x156   : > { %v772_v40 = vrot.slane %v762_v23, 4  ;;  %v774_v8 = vrot.slane %v763_v54, 3  ;;  %v776_v7 = vrot.slane %v764_v53, 2  ;;  %v778_v0 = vrot.slane %v765_v58, 1 }
 0x157   : > { %v767_v63 = vsel %vm652_vm1, %v766_v41, %v758_v17  ;;  %5714 = vst [vmem:[#allocation52_spill] sm:$0xff] %v4468_v62  ;;  %v4471_v4 = vmul.f32 0.6, %v4245_v21  ;;  %v4474_v33 = vmul.f32 0.6, %v4298_v48 }
 0x158   : > { %v769_v56 = vsel %vm655_vm2, %v768_v55, %v767_v63  ;;  %v4478_v51 = vmul.f32 0.6, %v4283_v39  ;;  %v4481_v50 = vmul.f32 0.6, %v4323_v2  ;;  %v4484_v60 = vmul.f32 0.6, %v4312_v57 }
 0x159   : > { %5715 = vst [vmem:[#allocation53_spill] sm:$0xff] %v4471_v4  ;;  %5716 = vst [vmem:[#allocation54_spill] sm:$0xff] %v4474_v33  ;;  %v771_v1 = vsel %vm658_vm3, %v770_v44, %v769_v56  ;;  %v4488_v6 = vmul.f32 0.4, %v4226_v13  ;;  %v4491_v28 = vmul.f32 0.4, %v4215_v9 }
 0x15a   : > { %5717 = vst [vmem:[#allocation55_spill] sm:$0xff] %v4478_v51  ;;  %5718 = vst [vmem:[#allocation56_spill] sm:$0xff] %v4481_v50  ;;  %v4494_v29 = vmul.f32 0.4, %v4265_v30  ;;  %v773_v37 = vsel %vm661_vm4, %v772_v40, %v771_v1  ;;  %v4498_v32 = vmul.f32 0.4, %v4245_v21 }
 0x15b   : > { %5719 = vst [vmem:[#allocation57_spill] sm:$0xff] %v4484_v60  ;;  %5720 = vst [vmem:[#allocation58_spill] sm:$0xff] %v4488_v6  ;;  %v4501_v46 = vmul.f32 0.4, %v4298_v48  ;;  %v4504_v17 = vmul.f32 0.4, %v4283_v39  ;;  %v775_v43 = vsel %vm664_vm6, %v774_v8, %v773_v37 }
 0x15c   : > { %5721 = vst [vmem:[#allocation59_spill] sm:$0xff] %v4491_v28  ;;  %5722 = vst [vmem:[#allocation60_spill] sm:$0xff] %v4494_v29  ;;  %v4508_v49 = vmul.f32 0.4, %v4323_v2  ;;  %v4511_v27 = vmul.f32 0.4, %v4312_v57  ;;  %v777_v54 = vsel %vm667_vm5, %v776_v7, %v775_v43 }
 0x15d   : > { %5723 = vst [vmem:[#allocation61_spill] sm:$0xff] %v4498_v32  ;;  %5724 = vst [vmem:[#allocation62_spill] sm:$0xff] %v4501_v46  ;;  %v918_v23 = vrot.slane %v4488_v6, 1  ;;  %v919_v53 = vrot.slane %v4491_v28, 1  ;;  %v920_v58 = vrot.slane %v4494_v29, 1  ;;  %v921_v41 = vrot.slane %v4498_v32, 1 }
 0x15e   : > { %5725 = vst [vmem:[#allocation63_spill] sm:$0xff] %v4504_v17  ;;  %5726 = vst [vmem:[#allocation64_spill] sm:$0xff] %v4508_v49  ;;  %v779_v55 = vsel %vm670_vm7, %v778_v0, %v777_v54  ;;  %v922_v44 = vrot.slane %v4501_v46, 1  ;;  %v923_v40 = vrot.slane %v4504_v17, 1  ;;  %v924_v8 = vrot.slane %v4508_v49, 1 }
 0x15f   : > { %5727 = vst [vmem:[#allocation65_spill] sm:$0xff] %v4511_v27  ;;  %v780_v63 = vpack.c.b16 %v779_v55, %v779_v55  ;;  %v925_v56 = vrot.slane %v4511_v27, 1  ;;  %v934_v1 = vadd.f32 %v918_v23, %v4464_v45  ;;  %v935_v7 = vadd.f32 %v919_v53, %v4235_v16 }
 0x160   : > { %v936_v37 = vadd.f32 %v920_v58, %v4468_v62  ;;  %v937_v43 = vadd.f32 %v921_v41, %v4471_v4  ;;  %v938_v26 = vadd.f32 %v922_v44, %v4474_v33  ;;  %v939_v0 = vadd.f32 %v923_v40, %v4478_v51 }
 0x161   : > { %781 = vrot.lane.b32.xlu0 %v780_v63, %s3942_s0  ;;  %v940_v54 = vadd.f32 %v924_v8, %v4481_v50  ;;  %v941_v55 = vadd.f32 %v925_v56, %v4484_v60  ;;  %v3520_v36 = vpack.c.bf16 %v934_v1, %v934_v1  ;;  %v3521_v35 = vpack.c.bf16 %v935_v7, %v935_v7  ;;  %s3957_s0 = smov 91  }
 0x162   : > { %v3522_v20 = vpack.c.bf16 %v936_v37, %v936_v37  ;;  %v3523_v23 = vpack.c.bf16 %v937_v43, %v937_v43  ;;  %v3524_v10 = vpack.c.bf16 %v938_v26, %v938_v26  ;;  %v3525_v53 = vpack.c.bf16 %v939_v0, %v939_v0 }
 0x163   : > { %v3526_v11 = vpack.c.bf16 %v940_v54, %v940_v54  ;;  %v3527_v58 = vpack.c.bf16 %v941_v55, %v941_v55  ;;  %v974_v15 = vunpack.c.l.b16 %v3520_v36  ;;  %v975_v41 = vunpack.c.l.b16 %v3521_v35 }
 0x164   : > { %v976_v25 = vunpack.c.l.b16 %v3522_v20  ;;  %v977_v44 = vunpack.c.l.b16 %v3523_v23  ;;  %v978_v47 = vunpack.c.l.b16 %v3524_v10  ;;  %v979_v40 = vunpack.c.l.b16 %v3525_v53 }
 0x165   : > { %v980_v34 = vunpack.c.l.b16 %v3526_v11  ;;  %v981_v63 = vunpack.c.l.b16 %v3527_v58  ;;  %v982_v18 = vrot.slane %v974_v15, 1  ;;  %v4532_v8 = vmul.f32 0.2, %v4226_v13 }
 0x166   : > { %v984_v56 = vrot.slane %v976_v25, 7  ;;  %v986_v1 = vrot.slane %v977_v44, 6  ;;  %v988_v7 = vrot.slane %v978_v47, 5  ;;  %v990_v37 = vrot.slane %v979_v40, 4 }
 0x167   : > { %v983_v26 = vsel %vm652_vm1, %v975_v41, %v982_v18  ;;  %v992_v43 = vrot.slane %v980_v34, 3  ;;  %v994_v0 = vrot.slane %v981_v63, 2  ;;  %v4536_v35 = vmul.f32 0.2, %v4215_v9 }
 0x168   : > { %v985_v10 = vsel %vm655_vm2, %v984_v56, %v983_v26  ;;  %v4540_v11 = vmul.f32 0.2, %v4265_v30  ;;  %v4543_v15 = vmul.f32 0.2, %v4245_v21  ;;  %v4546_v25 = vmul.f32 0.2, %v4298_v48 }
 0x169   : > { %v987_v47 = vsel %vm658_vm3, %v986_v1, %v985_v10  ;;  %v4550_v18 = vmul.f32 0.2, %v4283_v39  ;;  %v4553_v34 = vmul.f32 0.2, %v4323_v2  ;;  %v4556_v20 = vmul.f32 0.2, %v4312_v57 }
 0x16a   : > { %v989_v36 = vsel %vm661_vm4, %v988_v7, %v987_v47  ;;  %v4560_v54 = vmul.f32 0.8, %v4226_v13  ;;  %v4563_v55 = vmul.f32 0.8, %v4215_v9  ;;  %v4566_v23 = vmul.f32 0.8, %v4265_v30 }
 0x16b   : > { %v991_v53 = vsel %vm664_vm6, %v990_v37, %v989_v36  ;;  %v4570_v58 = vmul.f32 0.8, %v4245_v21  ;;  %v4573_v41 = vmul.f32 0.8, %v4298_v48  ;;  %v4576_v44 = vmul.f32 0.8, %v4283_v39 }
 0x16c   : > { %v993_v40 = vsel %vm667_vm5, %v992_v43, %v991_v53  ;;  %v4580_v63 = vmul.f32 0.8, %v4323_v2  ;;  %v4583_v56 = vmul.f32 0.8, %v4312_v57  ;;  %v1242_v1 = vrot.slane %v4560_v54, 1 }
 0x16d   : > { %v995_v7 = vsel %vm670_vm7, %v994_v0, %v993_v40  ;;  %v1243_v37 = vrot.slane %v4563_v55, 1  ;;  %v1244_v26 = vrot.slane %v4566_v23, 1  ;;  %v1245_v10 = vrot.slane %v4570_v58, 1 }
 0x16e   : > { %v996_v47 = vpack.c.b16 %v995_v7, %v995_v7  ;;  %v1246_v36 = vrot.slane %v4573_v41, 1  ;;  %v1247_v43 = vrot.slane %v4576_v44, 1  ;;  %v1248_v53 = vrot.slane %v4580_v63, 1 }
 0x16f   : > { %v1249_v38 = vrot.slane %v4583_v56, 1  ;;  %v1258_v19 = vadd.f32 %v1242_v1, %v4532_v8  ;;  %v1259_v5 = vadd.f32 %v1243_v37, %v4536_v35  ;;  %v1260_v0 = vadd.f32 %v1244_v26, %v4540_v11 }
 0x170   : > { %997 = vrot.lane.b32.xlu1 %v996_v47, %s3943_s19  ;;  %v1261_v40 = vadd.f32 %v1245_v10, %v4543_v15  ;;  %v1262_v7 = vadd.f32 %v1246_v36, %v4546_v25  ;;  %v1263_v14 = vadd.f32 %v1247_v43, %v4550_v18  ;;  %v1264_v24 = vadd.f32 %v1248_v53, %v4553_v34  ;;  %s3959_s19 = smov 110  }
 0x171   : > { %v1265_v61 = vadd.f32 %v1249_v38, %v4556_v20  ;;  %v3544_v3 = vpack.c.bf16 %v1258_v19, %v1258_v19  ;;  %v3545_v52 = vpack.c.bf16 %v1259_v5, %v1259_v5  ;;  %v3546_v59 = vpack.c.bf16 %v1260_v0, %v1260_v0 }
 0x172   : > { %v3547_v1 = vpack.c.bf16 %v1261_v40, %v1261_v40  ;;  %v3548_v31 = vpack.c.bf16 %v1262_v7, %v1262_v7  ;;  %v3549_v37 = vpack.c.bf16 %v1263_v14, %v1263_v14  ;;  %v3550_v42 = vpack.c.bf16 %v1264_v24, %v1264_v24 }
 0x173   : > { %v3551_v26 = vpack.c.bf16 %v1265_v61, %v1265_v61  ;;  %v1298_v12 = vunpack.c.l.b16 %v3544_v3  ;;  %v1299_v47 = vunpack.c.l.b16 %v3545_v52  ;;  %v1300_v22 = vunpack.c.l.b16 %v3546_v59 }
 0x174   : > { %v1301_v10 = vunpack.c.l.b16 %v3547_v1  ;;  %v1302_v27 = vunpack.c.l.b16 %v3548_v31  ;;  %v1303_v36 = vunpack.c.l.b16 %v3549_v37  ;;  %v1304_v49 = vunpack.c.l.b16 %v3550_v42 }
 0x175   : > { %v1305_v43 = vunpack.c.l.b16 %v3551_v26  ;;  %v1306_v17 = vrot.slane %v1298_v12, 2  ;;  %v1307_v53 = vrot.slane %v1299_v47, 1  ;;  %v4603_v38 = vmul.f32 0.13333334, %v4226_v13 }
 0x176   : > { %v1310_v5 = vrot.slane %v1301_v10, 7  ;;  %v1312_v19 = vrot.slane %v1302_v27, 6  ;;  %v1314_v0 = vrot.slane %v1303_v36, 5  ;;  %v1316_v40 = vrot.slane %v1304_v49, 4 }
 0x177   : > { %5728 = vst [vmem:[#allocation66_spill] sm:$0xff] %v4603_v38  ;;  %v1308_v14 = vsel %vm652_vm1, %v1307_v53, %v1306_v17  ;;  %v1318_v24 = vrot.slane %v1305_v43, 3  ;;  %v4607_v52 = vmul.f32 0.13333334, %v4215_v9  ;;  %v4610_v31 = vmul.f32 0.13333334, %v4265_v30 }
 0x178   : > { %v1309_v42 = vsel %vm655_vm2, %v1300_v22, %v1308_v14  ;;  %v4614_v12 = vmul.f32 0.13333334, %v4245_v21  ;;  %v4617_v59 = vmul.f32 0.13333334, %v4298_v48  ;;  %v4620_v3 = vmul.f32 0.13333334, %v4283_v39 }
 0x179   : > { %5729 = vst [vmem:[#allocation67_spill] sm:$0xff] %v4607_v52  ;;  %5730 = vst [vmem:[#allocation68_spill] sm:$0xff] %v4610_v31  ;;  %v1311_v61 = vsel %vm658_vm3, %v1310_v5, %v1309_v42  ;;  %v4624_v17 = vmul.f32 0.13333334, %v4323_v2  ;;  %v4627_v49 = vmul.f32 0.13333334, %v4312_v57 }
 0x17a   : > { %5731 = vst [vmem:[#allocation69_spill] sm:$0xff] %v4614_v12  ;;  %5732 = vst [vmem:[#allocation70_spill] sm:$0xff] %v4617_v59  ;;  %v4630_v27 = vmul.f32 0.8666667, %v4226_v13  ;;  %v1313_v22 = vsel %vm661_vm4, %v1312_v19, %v1311_v61  ;;  %v4634_v7 = vmul.f32 0.8666667, %v4215_v9 }
 0x17b   : > { %5733 = vst [vmem:[#allocation71_spill] sm:$0xff] %v4620_v3  ;;  %5734 = vst [vmem:[#allocation72_spill] sm:$0xff] %v4624_v17  ;;  %v4637_v1 = vmul.f32 0.8666667, %v4265_v30  ;;  %v4640_v37 = vmul.f32 0.8666667, %v4245_v21  ;;  %v1315_v26 = vsel %vm664_vm6, %v1314_v0, %v1313_v22 }
 0x17c   : > { %5735 = vst [vmem:[#allocation73_spill] sm:$0xff] %v4627_v49  ;;  %5736 = vst [vmem:[#allocation74_spill] sm:$0xff] %v4630_v27  ;;  %v4644_v47 = vmul.f32 0.8666667, %v4298_v48  ;;  %v4647_v10 = vmul.f32 0.8666667, %v4283_v39  ;;  %v1317_v43 = vsel %vm667_vm5, %v1316_v40, %v1315_v26 }
 0x17d   : > { %5737 = vst [vmem:[#allocation75_spill] sm:$0xff] %v4634_v7  ;;  %5738 = vst [vmem:[#allocation76_spill] sm:$0xff] %v4637_v1  ;;  %v4650_v36 = vmul.f32 0.8666667, %v4323_v2  ;;  %v4654_v53 = vmul.f32 0.8666667, %v4312_v57  ;;  %v1319_v0 = vsel %vm670_vm7, %v1318_v24, %v1317_v43 }
 0x17e   : > { %5739 = vst [vmem:[#allocation77_spill] sm:$0xff] %v4640_v37  ;;  %5740 = vst [vmem:[#allocation78_spill] sm:$0xff] %v4644_v47  ;;  %v1026_v5 = vrot.slane %v4630_v27, 1  ;;  %v1027_v19 = vrot.slane %v4634_v7, 1  ;;  %v1028_v14 = vrot.slane %v4637_v1, 1  ;;  %v1029_v42 = vrot.slane %v4640_v37, 1 }
 0x17f   : > { %5741 = vst [vmem:[#allocation79_spill] sm:$0xff] %v4647_v10  ;;  %5742 = vst [vmem:[#allocation80_spill] sm:$0xff] %v4650_v36  ;;  %v1030_v61 = vrot.slane %v4644_v47, 1  ;;  %v1320_v22 = vpack.c.b16 %v1319_v0, %v1319_v0  ;;  %v1031_v46 = vrot.slane %v4647_v10, 1  ;;  %v1032_v40 = vrot.slane %v4650_v36, 1 }
 0x180   : > { %5743 = vst [vmem:[#allocation81_spill] sm:$0xff] %v4654_v53  ;;  %v1033_v26 = vrot.slane %v4654_v53, 1  ;;  %v1042_v32 = vadd.f32 %v1026_v5, %v4603_v38  ;;  %v1043_v27 = vadd.f32 %v1027_v19, %v4607_v52  ;;  %v1044_v7 = vadd.f32 %v1028_v14, %v4610_v31 }
 0x181   : > { %v1045_v24 = vadd.f32 %v1029_v42, %v4614_v12  ;;  %1321 = vrot.lane.b32.xlu0 %v1320_v22, %s3944_s27  ;;  %v1046_v43 = vadd.f32 %v1030_v61, %v4617_v59  ;;  %v1047_v0 = vadd.f32 %v1031_v46, %v4620_v3  ;;  %v1048_v10 = vadd.f32 %v1032_v40, %v4624_v17 }
 0x182   : > { %v1049_v36 = vadd.f32 %v1033_v26, %v4627_v49  ;;  %v3528_v53 = vpack.c.bf16 %v1042_v32, %v1042_v32  ;;  %v3529_v47 = vpack.c.bf16 %v1043_v27, %v1043_v27  ;;  %v3530_v5 = vpack.c.bf16 %v1044_v7, %v1044_v7 }
 0x183   : > { %v3531_v37 = vpack.c.bf16 %v1045_v24, %v1045_v24  ;;  %v3532_v19 = vpack.c.bf16 %v1046_v43, %v1046_v43  ;;  %v3533_v1 = vpack.c.bf16 %v1047_v0, %v1047_v0  ;;  %v3534_v14 = vpack.c.bf16 %v1048_v10, %v1048_v10 }
 0x184   : > { %v3535_v31 = vpack.c.bf16 %v1049_v36, %v1049_v36  ;;  %v1082_v42 = vunpack.c.l.b16 %v3528_v53  ;;  %v1083_v12 = vunpack.c.l.b16 %v3529_v47  ;;  %v1084_v52 = vunpack.c.l.b16 %v3530_v5 }
 0x185   : > { %v1085_v22 = vunpack.c.l.b16 %v3531_v37  ;;  %v1086_v38 = vunpack.c.l.b16 %v3532_v19  ;;  %v1087_v61 = vunpack.c.l.b16 %v3533_v1  ;;  %v1088_v59 = vunpack.c.l.b16 %v3534_v14 }
 0x186   : > { %v1089_v46 = vunpack.c.l.b16 %v3535_v31  ;;  %v1090_v3 = vrot.slane %v1082_v42, 1  ;;  %v1092_v40 = vrot.slane %v1084_v52, 7  ;;  %v4675_v32 = vmul.f32 0.6666667, %v4226_v13 }
 0x187   : > { %v1094_v17 = vrot.slane %v1085_v22, 6  ;;  %v1096_v27 = vrot.slane %v1086_v38, 5  ;;  %v1098_v7 = vrot.slane %v1087_v61, 4  ;;  %v1100_v26 = vrot.slane %v1088_v59, 3 }
 0x188   : > { %v1102_v24 = vrot.slane %v1089_v46, 2  ;;  %v1091_v10 = vsel %vm652_vm1, %v1083_v12, %v1090_v3  ;;  %v4679_v47 = vmul.f32 0.6666667, %v4215_v9  ;;  %v4682_v37 = vmul.f32 0.6666667, %v4265_v30 }
 0x189   : > { %v4685_v31 = vmul.f32 0.6666667, %v4245_v21  ;;  %v1093_v52 = vsel %vm655_vm2, %v1092_v40, %v1091_v10  ;;  %v4689_v1 = vmul.f32 0.6666667, %v4298_v48  ;;  %v4692_v38 = vmul.f32 0.6666667, %v4283_v39 }
 0x18a   : > { %v4695_v59 = vmul.f32 0.6666667, %v4323_v2  ;;  %v1095_v12 = vsel %vm658_vm3, %v1094_v17, %v1093_v52  ;;  %v4699_v3 = vmul.f32 0.6666667, %v4312_v57  ;;  %v4702_v36 = vmul.f32 0.33333334, %v4226_v13 }
 0x18b   : > { %5744 = vst [vmem:[#allocation82_spill] sm:$0xff] %v4689_v1  ;;  %5745 = vst [vmem:[#allocation83_spill] sm:$0xff] %v4692_v38  ;;  %v4705_v53 = vmul.f32 0.33333334, %v4215_v9  ;;  %v1097_v43 = vsel %vm661_vm4, %v1096_v27, %v1095_v12  ;;  %v4709_v0 = vmul.f32 0.33333334, %v4265_v30 }
 0x18c   : > { %5746 = vst [vmem:[#allocation84_spill] sm:$0xff] %v4695_v59  ;;  %5747 = vst [vmem:[#allocation85_spill] sm:$0xff] %v4699_v3  ;;  %v4712_v5 = vmul.f32 0.33333334, %v4245_v21  ;;  %v4715_v19 = vmul.f32 0.33333334, %v4298_v48  ;;  %v1099_v17 = vsel %vm664_vm6, %v1098_v7, %v1097_v43 }
 0x18d   : > { %5748 = vst [vmem:[#allocation86_spill] sm:$0xff] %v4702_v36  ;;  %5749 = vst [vmem:[#allocation87_spill] sm:$0xff] %v4705_v53  ;;  %v4719_v14 = vmul.f32 0.33333334, %v4283_v39  ;;  %v4722_v42 = vmul.f32 0.33333334, %v4323_v2  ;;  %v1101_v61 = vsel %vm667_vm5, %v1100_v26, %v1099_v17 }
 0x18e   : > { %5750 = vst [vmem:[#allocation88_spill] sm:$0xff] %v4709_v0  ;;  %5751 = vst [vmem:[#allocation89_spill] sm:$0xff] %v4712_v5  ;;  %v4725_v22 = vmul.f32 0.33333334, %v4312_v57  ;;  %v1134_v46 = vrot.slane %v4702_v36, 1  ;;  %v1135_v40 = vrot.slane %v4705_v53, 1  ;;  %v1103_v10 = vsel %vm670_vm7, %v1102_v24, %v1101_v61 }
 0x18f   : > { %5752 = vst [vmem:[#allocation90_spill] sm:$0xff] %v4715_v19  ;;  %5753 = vst [vmem:[#allocation91_spill] sm:$0xff] %v4719_v14  ;;  %v1136_v27 = vrot.slane %v4709_v0, 1  ;;  %v1137_v7 = vrot.slane %v4712_v5, 1  ;;  %v1138_v52 = vrot.slane %v4715_v19, 1  ;;  %v1139_v12 = vrot.slane %v4719_v14, 1 }
 0x190   : > { %5754 = vst [vmem:[#allocation92_spill] sm:$0xff] %v4722_v42  ;;  %5755 = vst [vmem:[#allocation93_spill] sm:$0xff] %v4725_v22  ;;  %v1104_v43 = vpack.c.b16 %v1103_v10, %v1103_v10  ;;  %v1140_v49 = vrot.slane %v4722_v42, 1  ;;  %v1141_v29 = vrot.slane %v4725_v22, 1  ;;  %v1150_v26 = vadd.f32 %v1134_v46, %v4675_v32 }
 0x191   : > { %v1151_v17 = vadd.f32 %v1135_v40, %v4679_v47  ;;  %v1152_v28 = vadd.f32 %v1136_v27, %v4682_v37  ;;  %v1153_v6 = vadd.f32 %v1137_v7, %v4685_v31  ;;  %v1154_v24 = vadd.f32 %v1138_v52, %v4689_v1 }
 0x192   : > { %1105 = vrot.lane.b32.xlu1 %v1104_v43, %s3945_s15  ;;  %v1155_v61 = vadd.f32 %v1139_v12, %v4692_v38  ;;  %v1156_v10 = vadd.f32 %v1140_v49, %v4695_v59  ;;  %v1157_v60 = vadd.f32 %v1141_v29, %v4699_v3  ;;  %v3536_v50 = vpack.c.bf16 %v1150_v26, %v1150_v26 }
 0x193   : > { %v3537_v51 = vpack.c.bf16 %v1151_v17, %v1151_v17  ;;  %v3538_v46 = vpack.c.bf16 %v1152_v28, %v1152_v28  ;;  %v3539_v33 = vpack.c.bf16 %v1153_v6, %v1153_v6  ;;  %v3540_v40 = vpack.c.bf16 %v1154_v24, %v1154_v24 }
 0x194   : > { %v3541_v4 = vpack.c.bf16 %v1155_v61, %v1155_v61  ;;  %v3542_v27 = vpack.c.bf16 %v1156_v10, %v1156_v10  ;;  %v3543_v62 = vpack.c.bf16 %v1157_v60, %v1157_v60  ;;  %v1190_v7 = vunpack.c.l.b16 %v3536_v50 }
 0x195   : > { %v1191_v16 = vunpack.c.l.b16 %v3537_v51  ;;  %v1192_v52 = vunpack.c.l.b16 %v3538_v46  ;;  %v1193_v45 = vunpack.c.l.b16 %v3539_v33  ;;  %v1194_v22 = vunpack.c.l.b16 %v3540_v40 }
 0x196   : > { %v1195_v43 = vunpack.c.l.b16 %v3541_v4  ;;  %v1196_v42 = vunpack.c.l.b16 %v3542_v27  ;;  %v1197_v12 = vunpack.c.l.b16 %v3543_v62  ;;  %v1198_v14 = vrot.slane %v1190_v7, 2 }
 0x197   : > { %v1199_v49 = vrot.slane %v1191_v16, 1  ;;  %v1202_v19 = vrot.slane %v1193_v45, 7  ;;  %v1204_v29 = vrot.slane %v1194_v22, 6  ;;  %v4747_v26 = vmul.f32 0.73333335, %v4226_v13 }
 0x198   : > { %v1206_v6 = vrot.slane %v1195_v43, 5  ;;  %v1208_v28 = vrot.slane %v1196_v42, 4  ;;  %v1210_v17 = vrot.slane %v1197_v12, 3  ;;  %v4750_v60 = vmul.f32 0.73333335, %v4215_v9 }
 0x199   : > { %v1200_v51 = vsel %vm652_vm1, %v1199_v49, %v1198_v14  ;;  %v4754_v33 = vmul.f32 0.73333335, %v4265_v30  ;;  %v4757_v62 = vmul.f32 0.73333335, %v4245_v21  ;;  %v4760_v16 = vmul.f32 0.73333335, %v4298_v48 }
 0x19a   : > { %v1201_v45 = vsel %vm655_vm2, %v1192_v52, %v1200_v51  ;;  %v4764_v4 = vmul.f32 0.73333335, %v4283_v39  ;;  %v4767_v50 = vmul.f32 0.73333335, %v4323_v2  ;;  %v4770_v42 = vmul.f32 0.73333335, %v4312_v57 }
 0x19b   : > { %v1203_v14 = vsel %vm658_vm3, %v1202_v19, %v1201_v45  ;;  %v4774_v22 = vmul.f32 0.26666668, %v4226_v13  ;;  %v4777_v24 = vmul.f32 0.26666668, %v4215_v9  ;;  %v4780_v61 = vmul.f32 0.26666668, %v4265_v30 }
 0x19c   : > { %v1205_v10 = vsel %vm661_vm4, %v1204_v29, %v1203_v14  ;;  %v4784_v46 = vmul.f32 0.26666668, %v4245_v21  ;;  %v4787_v40 = vmul.f32 0.26666668, %v4298_v48  ;;  %v4790_v27 = vmul.f32 0.26666668, %v4283_v39 }
 0x19d   : > { %v1207_v19 = vsel %vm664_vm6, %v1206_v6, %v1205_v10  ;;  %v4794_v7 = vmul.f32 0.26666668, %v4323_v2  ;;  %v4797_v52 = vmul.f32 0.26666668, %v4312_v57  ;;  %v1355_v43 = vrot.slane %v4774_v22, 1 }
 0x19e   : > { %v1209_v12 = vsel %vm667_vm5, %v1208_v28, %v1207_v19  ;;  %v1356_v49 = vrot.slane %v4777_v24, 1  ;;  %v1357_v29 = vrot.slane %v4780_v61, 1  ;;  %v1358_v51 = vrot.slane %v4784_v46, 1 }
 0x19f   : > { %v1211_v45 = vsel %vm670_vm7, %v1210_v17, %v1209_v12  ;;  %v1359_v6 = vrot.slane %v4787_v40, 1  ;;  %v1360_v14 = vrot.slane %v4790_v27, 1  ;;  %v1361_v10 = vrot.slane %v4794_v7, 1 }
 0x1a0   : > { %v1212_v57 = vpack.c.b16 %v1211_v45, %v1211_v45  ;;  %v1362_v2 = vrot.slane %v4797_v52, 1  ;;  %v1371_v39 = vadd.f32 %v1355_v43, %v4747_v26  ;;  %v1372_v28 = vadd.f32 %v1356_v49, %v4750_v60 }
 0x1a1   : > { %v1373_v19 = vadd.f32 %v1357_v29, %v4754_v33  ;;  %v1374_v48 = vadd.f32 %v1358_v51, %v4757_v62  ;;  %v1375_v21 = vadd.f32 %v1359_v6, %v4760_v16  ;;  %v1376_v17 = vadd.f32 %v1360_v14, %v4764_v4 }
 0x1a2   : > { %1213 = vrot.lane.b32.xlu0 %v1212_v57, %s3946_s20  ;;  %v1377_v12 = vadd.f32 %v1361_v10, %v4767_v50  ;;  %v1378_v45 = vadd.f32 %v1362_v2, %v4770_v42  ;;  %v3552_v30 = vpack.c.bf16 %v1371_v39, %v1371_v39  ;;  %v3553_v9 = vpack.c.bf16 %v1372_v28, %v1372_v28 }
 0x1a3   : > { %v3554_v43 = vpack.c.bf16 %v1373_v19, %v1373_v19  ;;  %v3555_v13 = vpack.c.bf16 %v1374_v48, %v1374_v48  ;;  %v3556_v49 = vpack.c.bf16 %v1375_v21, %v1375_v21  ;;  %v3557_v5 = vpack.c.bf16 %v1376_v17, %v1376_v17 }
 0x1a4   : > { %v3558_v29 = vpack.c.bf16 %v1377_v12, %v1377_v12  ;;  %v3559_v0 = vpack.c.bf16 %v1378_v45, %v1378_v45  ;;  %v1411_v51 = vunpack.c.l.b16 %v3552_v30  ;;  %v1412_v53 = vunpack.c.l.b16 %v3553_v9 }
 0x1a5   : > { %v1413_v6 = vunpack.c.l.b16 %v3554_v43  ;;  %v1414_v36 = vunpack.c.l.b16 %v3555_v13  ;;  %v1415_v14 = vunpack.c.l.b16 %v3556_v49  ;;  %v1416_v3 = vunpack.c.l.b16 %v3557_v5 }
 0x1a6   : > { %v1417_v59 = vunpack.c.l.b16 %v3558_v29  ;;  %v1418_v57 = vunpack.c.l.b16 %v3559_v0  ;;  %v1419_v38 = vrot.slane %v1411_v51, 3  ;;  %v1420_v10 = vrot.slane %v1412_v53, 2 }
 0x1a7   : > { %v1422_v1 = vrot.slane %v1413_v6, 1  ;;  %v1425_v2 = vrot.slane %v1415_v14, 7  ;;  %v1427_v39 = vrot.slane %v1416_v3, 6  ;;  %v1447_v28 = vrot.slane %v4747_v26, 1 }
 0x1a8   : > { %v1421_v21 = vsel %vm652_vm1, %v1420_v10, %v1419_v38  ;;  %v1429_v48 = vrot.slane %v1417_v59, 5  ;;  %v1431_v19 = vrot.slane %v1418_v57, 4  ;;  %v1448_v30 = vrot.slane %v4750_v60, 1 }
 0x1a9   : > { %v1423_v9 = vsel %vm655_vm2, %v1422_v1, %v1421_v21  ;;  %v1449_v13 = vrot.slane %v4754_v33, 1  ;;  %v1450_v5 = vrot.slane %v4757_v62, 1  ;;  %v1451_v0 = vrot.slane %v4760_v16, 1 }
 0x1aa   : > { %v1424_v53 = vsel %vm658_vm3, %v1414_v36, %v1423_v9  ;;  %v1452_v3 = vrot.slane %v4764_v4, 1  ;;  %v1453_v26 = vrot.slane %v4767_v50, 1  ;;  %v1454_v38 = vrot.slane %v4770_v42, 1 }
 0x1ab   : > { %v1426_v59 = vsel %vm661_vm4, %v1425_v2, %v1424_v53  ;;  %v1463_v60 = vadd.f32 %v1447_v28, %v4774_v22  ;;  %v1464_v1 = vadd.f32 %v1448_v30, %v4777_v24  ;;  %v1465_v33 = vadd.f32 %v1449_v13, %v4780_v61 }
 0x1ac   : > { %v1428_v62 = vsel %vm664_vm6, %v1427_v39, %v1426_v59  ;;  %v1466_v16 = vadd.f32 %v1450_v5, %v4784_v46  ;;  %v1467_v36 = vadd.f32 %v1451_v0, %v4787_v40  ;;  %v1468_v4 = vadd.f32 %v1452_v3, %v4790_v27 }
 0x1ad   : > { %v1430_v50 = vsel %vm667_vm5, %v1429_v48, %v1428_v62  ;;  %v1469_v42 = vadd.f32 %v1453_v26, %v4794_v7  ;;  %v1470_v17 = vadd.f32 %v1454_v38, %v4797_v52  ;;  %v3560_v12 = vpack.c.bf16 %v1463_v60, %v1463_v60 }
 0x1ae   : > { %v1432_v22 = vsel %vm670_vm7, %v1431_v19, %v1430_v50  ;;  %v3561_v24 = vpack.c.bf16 %v1464_v1, %v1464_v1  ;;  %v3562_v45 = vpack.c.bf16 %v1465_v33, %v1465_v33  ;;  %v3563_v61 = vpack.c.bf16 %v1466_v16, %v1466_v16 }
 0x1af   : > { %v1433_v43 = vpack.c.b16 %v1432_v22, %v1432_v22  ;;  %v3564_v49 = vpack.c.bf16 %v1467_v36, %v1467_v36  ;;  %v3565_v29 = vpack.c.bf16 %v1468_v4, %v1468_v4  ;;  %v3566_v46 = vpack.c.bf16 %v1469_v42, %v1469_v42 }
 0x1b0   : > { %v3567_v51 = vpack.c.bf16 %v1470_v17, %v1470_v17  ;;  %v1503_v40 = vunpack.c.l.b16 %v3560_v12  ;;  %v1504_v6 = vunpack.c.l.b16 %v3561_v24  ;;  %v1505_v27 = vunpack.c.l.b16 %v3562_v45 }
 0x1b1   : > { %1434 = vrot.lane.b32.xlu1 %v1433_v43, %s3947_s23  ;;  %v1506_v14 = vunpack.c.l.b16 %v3563_v61  ;;  %v1507_v7 = vunpack.c.l.b16 %v3564_v49  ;;  %v1508_v57 = vunpack.c.l.b16 %v3565_v29  ;;  %v1509_v52 = vunpack.c.l.b16 %v3566_v46  ;;  %s3960_s23 = smov 109  }
 0x1b2   : > { %v1510_v10 = vunpack.c.l.b16 %v3567_v51  ;;  %v1511_v2 = vrot.slane %v1503_v40, 3  ;;  %v1512_v39 = vrot.slane %v1504_v6, 2  ;;  %v1514_v28 = vrot.slane %v1505_v27, 1 }
 0x1b3   : > { %v1517_v21 = vrot.slane %v1507_v7, 7  ;;  %v1519_v48 = vrot.slane %v1508_v57, 6  ;;  %v1521_v19 = vrot.slane %v1509_v52, 5  ;;  %v1539_v30 = vrot.slane %v4532_v8, 1 }
 0x1b4   : > { %v1513_v9 = vsel %vm652_vm1, %v1512_v39, %v1511_v2  ;;  %v1523_v13 = vrot.slane %v1510_v10, 4  ;;  %v1540_v5 = vrot.slane %v4536_v35, 1  ;;  %v1541_v0 = vrot.slane %v4540_v11, 1  ;;  %v5756_v2 = vld [vmem:[#allocation82_spill] sm:$0xff] }
 0x1b5   : > { %v1515_v53 = vsel %vm655_vm2, %v1514_v28, %v1513_v9  ;;  %v1542_v3 = vrot.slane %v4543_v15, 1  ;;  %v1543_v26 = vrot.slane %v4546_v25, 1  ;;  %v1544_v38 = vrot.slane %v4550_v18, 1  ;;  %v5757_v28 = vld [vmem:[#allocation83_spill] sm:$0xff]  ;;  %v5759_v9 = vld [vmem:[#allocation85_spill] sm:$0xff] }
 0x1b6   : > { %v1516_v59 = vsel %vm658_vm3, %v1506_v14, %v1515_v53  ;;  %v1545_v60 = vrot.slane %v4553_v34, 1  ;;  %v1546_v8 = vrot.slane %v4556_v20, 1  ;;  %v1555_v1 = vadd.f32 %v1539_v30, %v4560_v54  ;;  %v5762_v53 = vld [vmem:[#allocation88_spill] sm:$0xff] }
 0x1b7   : > { %v1518_v35 = vsel %vm661_vm4, %v1517_v21, %v1516_v59  ;;  %v1556_v11 = vadd.f32 %v1540_v5, %v4563_v55  ;;  %v1557_v33 = vadd.f32 %v1541_v0, %v4566_v23  ;;  %v1558_v15 = vadd.f32 %v1542_v3, %v4570_v58  ;;  %v5761_v0 = vld [vmem:[#allocation87_spill] sm:$0xff]  ;;  %v5763_v3 = vld [vmem:[#allocation89_spill] sm:$0xff] }
 0x1b8   : > { %v1520_v25 = vsel %vm664_vm6, %v1519_v48, %v1518_v35  ;;  %v1559_v18 = vadd.f32 %v1543_v26, %v4573_v41  ;;  %v1560_v62 = vadd.f32 %v1544_v38, %v4576_v44  ;;  %v1561_v34 = vadd.f32 %v1545_v60, %v4580_v63  ;;  %v5758_v48 = vld [vmem:[#allocation84_spill] sm:$0xff]  ;;  %v5764_v38 = vld [vmem:[#allocation90_spill] sm:$0xff] }
 0x1b9   : > { %v1522_v20 = vsel %vm667_vm5, %v1521_v19, %v1520_v25  ;;  %v1562_v54 = vadd.f32 %v1546_v8, %v4583_v56  ;;  %v3568_v16 = vpack.c.bf16 %v1555_v1, %v1555_v1  ;;  %v3569_v36 = vpack.c.bf16 %v1556_v11, %v1556_v11  ;;  %v5765_v8 = vld [vmem:[#allocation91_spill] sm:$0xff]  ;;  %v5766_v35 = vld [vmem:[#allocation92_spill] sm:$0xff] }
 0x1ba   : > { %v1524_v55 = vsel %vm670_vm7, %v1523_v13, %v1522_v20  ;;  %v3570_v4 = vpack.c.bf16 %v1557_v33, %v1557_v33  ;;  %v3571_v23 = vpack.c.bf16 %v1558_v15, %v1558_v15  ;;  %v3572_v50 = vpack.c.bf16 %v1559_v18, %v1559_v18  ;;  %v5760_v13 = vld [vmem:[#allocation86_spill] sm:$0xff]  ;;  %v5767_v33 = vld [vmem:[#allocation93_spill] sm:$0xff] }
 0x1bb   : > { %v1525_v58 = vpack.c.b16 %v1524_v55, %v1524_v55  ;;  %v3573_v42 = vpack.c.bf16 %v1560_v62, %v1560_v62  ;;  %v3574_v17 = vpack.c.bf16 %v1561_v34, %v1561_v34  ;;  %v3575_v12 = vpack.c.bf16 %v1562_v54, %v1562_v54 }
 0x1bc   : > { %v1595_v41 = vunpack.c.l.b16 %v3568_v16  ;;  %v1596_v22 = vunpack.c.l.b16 %v3569_v36  ;;  %v1597_v44 = vunpack.c.l.b16 %v3570_v4  ;;  %v1598_v24 = vunpack.c.l.b16 %v3571_v23 }
 0x1bd   : > { %1526 = vrot.lane.b32.xlu0 %v1525_v58, %s3948_s18  ;;  %v1599_v63 = vunpack.c.l.b16 %v3572_v50  ;;  %v1600_v45 = vunpack.c.l.b16 %v3573_v42  ;;  %v1601_v56 = vunpack.c.l.b16 %v3574_v17  ;;  %v1602_v61 = vunpack.c.l.b16 %v3575_v12  ;;  %s3961_s18 = smov 127  }
 0x1be   : > { %v1603_v43 = vrot.slane %v1595_v41, 4  ;;  %v1604_v49 = vrot.slane %v1596_v22, 3  ;;  %v1606_v29 = vrot.slane %v1597_v44, 2  ;;  %v1608_v46 = vrot.slane %v1598_v24, 1 }
 0x1bf   : > { %v1611_v51 = vrot.slane %v1600_v45, 7  ;;  %v1613_v40 = vrot.slane %v1601_v56, 6  ;;  %v1615_v6 = vrot.slane %v1602_v61, 5  ;;  %v1631_v27 = vrot.slane %v4675_v32, 1  ;;  %v5768_v61 = vld [vmem:[#allocation51_spill] sm:$0xff] }
 0x1c0   : > { %v1605_v14 = vsel %vm652_vm1, %v1604_v49, %v1603_v43  ;;  %v1632_v7 = vrot.slane %v4679_v47, 1  ;;  %v1633_v57 = vrot.slane %v4682_v37, 1  ;;  %v1634_v52 = vrot.slane %v4685_v31, 1 }
 0x1c1   : > { %v1607_v10 = vsel %vm655_vm2, %v1606_v29, %v1605_v14  ;;  %v1635_v39 = vrot.slane %v5756_v2, 1  ;;  %v1636_v21 = vrot.slane %v5757_v28, 1  ;;  %v1637_v19 = vrot.slane %v5758_v48, 1 }
 0x1c2   : > { %v1609_v30 = vsel %vm658_vm3, %v1608_v46, %v1607_v10  ;;  %v1638_v32 = vrot.slane %v5759_v9, 1  ;;  %v1647_v5 = vadd.f32 %v1631_v27, %v5760_v13  ;;  %v1648_v47 = vadd.f32 %v1632_v7, %v5761_v0  ;;  %v5770_v27 = vld [vmem:[#allocation52_spill] sm:$0xff]  ;;  %v5771_v7 = vld [vmem:[#allocation53_spill] sm:$0xff] }
 0x1c3   : > { %v1610_v37 = vsel %vm661_vm4, %v1599_v63, %v1609_v30  ;;  %v1649_v31 = vadd.f32 %v1633_v57, %v5762_v53  ;;  %v1650_v26 = vadd.f32 %v1634_v52, %v5763_v3  ;;  %v1651_v59 = vadd.f32 %v1635_v39, %v5764_v38  ;;  %v5772_v52 = vld [vmem:[#allocation54_spill] sm:$0xff]  ;;  %v5773_v39 = vld [vmem:[#allocation55_spill] sm:$0xff] }
 0x1c4   : > { %v1612_v60 = vsel %vm664_vm6, %v1611_v51, %v1610_v37  ;;  %v1652_v1 = vadd.f32 %v1636_v21, %v5765_v8  ;;  %v1653_v11 = vadd.f32 %v1637_v19, %v5766_v35  ;;  %v1654_v15 = vadd.f32 %v1638_v32, %v5767_v33  ;;  %v5769_v51 = vld [vmem:[#allocation23_spill] sm:$0xff]  ;;  %v5774_v21 = vld [vmem:[#allocation56_spill] sm:$0xff]  ;;  %v5775_v19 = vld [vmem:[#allocation57_spill] sm:$0xff] }
 0x1c5   : > { %v1614_v25 = vsel %vm667_vm5, %v1613_v40, %v1612_v60  ;;  %v3576_v18 = vpack.c.bf16 %v1647_v5, %v1647_v5  ;;  %v3577_v62 = vpack.c.bf16 %v1648_v47, %v1648_v47  ;;  %v3578_v34 = vpack.c.bf16 %v1649_v31, %v1649_v31  ;;  %v5776_v32 = vld [vmem:[#allocation58_spill] sm:$0xff]  ;;  %v5777_v5 = vld [vmem:[#allocation59_spill] sm:$0xff]  ;;  %v5778_v47 = vld [vmem:[#allocation60_spill] sm:$0xff] }
 0x1c6   : > { %v1616_v20 = vsel %vm670_vm7, %v1615_v6, %v1614_v25  ;;  %v3579_v54 = vpack.c.bf16 %v1650_v26, %v1650_v26  ;;  %v3580_v16 = vpack.c.bf16 %v1651_v59, %v1651_v59  ;;  %v3581_v36 = vpack.c.bf16 %v1652_v1, %v1652_v1  ;;  %v5779_v31 = vld [vmem:[#allocation61_spill] sm:$0xff]  ;;  %v5780_v26 = vld [vmem:[#allocation62_spill] sm:$0xff]  ;;  %v5781_v59 = vld [vmem:[#allocation63_spill] sm:$0xff] }
 0x1c7   : > { %v1617_v55 = vpack.c.b16 %v1616_v20, %v1616_v20  ;;  %v3582_v4 = vpack.c.bf16 %v1653_v11, %v1653_v11  ;;  %v3583_v23 = vpack.c.bf16 %v1654_v15, %v1654_v15  ;;  %v1687_v50 = vunpack.c.l.b16 %v3576_v18  ;;  %v5782_v1 = vld [vmem:[#allocation64_spill] sm:$0xff]  ;;  %v5783_v11 = vld [vmem:[#allocation65_spill] sm:$0xff] }
 0x1c8   : > { %v1688_v58 = vunpack.c.l.b16 %v3577_v62  ;;  %v1689_v42 = vunpack.c.l.b16 %v3578_v34  ;;  %v1690_v17 = vunpack.c.l.b16 %v3579_v54  ;;  %v1691_v12 = vunpack.c.l.b16 %v3580_v16 }
 0x1c9   : > { %1618 = vrot.lane.b32.xlu1 %v1617_v55, %s3949_s30  ;;  %v1692_v41 = vunpack.c.l.b16 %v3581_v36  ;;  %v1693_v22 = vunpack.c.l.b16 %v3582_v4  ;;  %v1694_v44 = vunpack.c.l.b16 %v3583_v23  ;;  %v1695_v24 = vrot.slane %v1687_v50, 4  ;;  %s3969_s30 = smov 71  }
 0x1ca   : > { %v1696_v63 = vrot.slane %v1688_v58, 3  ;;  %v1698_v45 = vrot.slane %v1689_v42, 2  ;;  %v1700_v56 = vrot.slane %v1690_v17, 1  ;;  %v1815_v43 = vrot.slane %v5768_v61, 1  ;;  %v5784_v61 = vld [vmem:[#allocation66_spill] sm:$0xff] }
 0x1cb   : > { %v1703_v49 = vrot.slane %v1692_v41, 7  ;;  %v1705_v29 = vrot.slane %v1693_v22, 6  ;;  %v1707_v46 = vrot.slane %v1694_v44, 5  ;;  %v1816_v40 = vrot.slane %v5769_v51, 1  ;;  %v5785_v51 = vld [vmem:[#allocation67_spill] sm:$0xff] }
 0x1cc   : > { %v1697_v6 = vsel %vm652_vm1, %v1696_v63, %v1695_v24  ;;  %v1817_v14 = vrot.slane %v5770_v27, 1  ;;  %v1818_v57 = vrot.slane %v5771_v7, 1  ;;  %v1819_v10 = vrot.slane %v5772_v52, 1  ;;  %v5786_v27 = vld [vmem:[#allocation68_spill] sm:$0xff]  ;;  %v5787_v7 = vld [vmem:[#allocation69_spill] sm:$0xff]  ;;  %v5788_v52 = vld [vmem:[#allocation70_spill] sm:$0xff] }
 0x1cd   : > { %v1699_v2 = vsel %vm655_vm2, %v1698_v45, %v1697_v6  ;;  %v1820_v28 = vrot.slane %v5773_v39, 1  ;;  %v1821_v48 = vrot.slane %v5774_v21, 1  ;;  %v1822_v30 = vrot.slane %v5775_v19, 1  ;;  %v5789_v39 = vld [vmem:[#allocation71_spill] sm:$0xff]  ;;  %v5790_v21 = vld [vmem:[#allocation72_spill] sm:$0xff]  ;;  %v5791_v19 = vld [vmem:[#allocation73_spill] sm:$0xff] }
 0x1ce   : > { %v1701_v9 = vsel %vm658_vm3, %v1700_v56, %v1699_v2  ;;  %v1831_v13 = vadd.f32 %v1815_v43, %v5776_v32  ;;  %v1832_v0 = vadd.f32 %v1816_v40, %v5777_v5  ;;  %v1833_v37 = vadd.f32 %v1817_v14, %v5778_v47  ;;  %v5792_v32 = vld [vmem:[#allocation74_spill] sm:$0xff]  ;;  %v5793_v5 = vld [vmem:[#allocation75_spill] sm:$0xff]  ;;  %v5794_v47 = vld [vmem:[#allocation76_spill] sm:$0xff] }
 0x1cf   : > { %v1702_v53 = vsel %vm661_vm4, %v1691_v12, %v1701_v9  ;;  %v1834_v3 = vadd.f32 %v1818_v57, %v5779_v31  ;;  %v1835_v38 = vadd.f32 %v1819_v10, %v5780_v26  ;;  %v1836_v60 = vadd.f32 %v1820_v28, %v5781_v59  ;;  %v5795_v31 = vld [vmem:[#allocation77_spill] sm:$0xff]  ;;  %v5796_v26 = vld [vmem:[#allocation78_spill] sm:$0xff]  ;;  %v5797_v59 = vld [vmem:[#allocation79_spill] sm:$0xff] }
 0x1d0   : > { %v1704_v8 = vsel %vm664_vm6, %v1703_v49, %v1702_v53  ;;  %v1837_v35 = vadd.f32 %v1821_v48, %v5782_v1  ;;  %v1838_v33 = vadd.f32 %v1822_v30, %v5783_v11  ;;  %v3592_v15 = vpack.c.bf16 %v1831_v13, %v1831_v13  ;;  %v5798_v1 = vld [vmem:[#allocation80_spill] sm:$0xff]  ;;  %v5799_v11 = vld [vmem:[#allocation81_spill] sm:$0xff] }
 0x1d1   : > { %v1706_v25 = vsel %vm667_vm5, %v1705_v29, %v1704_v8  ;;  %v3593_v18 = vpack.c.bf16 %v1832_v0, %v1832_v0  ;;  %v3594_v62 = vpack.c.bf16 %v1833_v37, %v1833_v37  ;;  %v3595_v34 = vpack.c.bf16 %v1834_v3, %v1834_v3 }
 0x1d2   : > { %v1708_v20 = vsel %vm670_vm7, %v1707_v46, %v1706_v25  ;;  %v3596_v54 = vpack.c.bf16 %v1835_v38, %v1835_v38  ;;  %v3597_v16 = vpack.c.bf16 %v1836_v60, %v1836_v60  ;;  %v3598_v36 = vpack.c.bf16 %v1837_v35, %v1837_v35 }
 0x1d3   : > { %v1709_v55 = vpack.c.b16 %v1708_v20, %v1708_v20  ;;  %v3599_v4 = vpack.c.bf16 %v1838_v33, %v1838_v33  ;;  %v1871_v23 = vunpack.c.l.b16 %v3592_v15  ;;  %v1872_v50 = vunpack.c.l.b16 %v3593_v18 }
 0x1d4   : > { %v1873_v58 = vunpack.c.l.b16 %v3594_v62  ;;  %v1874_v42 = vunpack.c.l.b16 %v3595_v34  ;;  %v1875_v17 = vunpack.c.l.b16 %v3596_v54  ;;  %v1876_v12 = vunpack.c.l.b16 %v3597_v16 }
 0x1d5   : > { %1710 = vrot.lane.b32.xlu0 %v1709_v55, %s3950_s26  ;;  %v1877_v41 = vunpack.c.l.b16 %v3598_v36  ;;  %v1878_v22 = vunpack.c.l.b16 %v3599_v4  ;;  %v1879_v44 = vrot.slane %v1871_v23, 5  ;;  %v1880_v24 = vrot.slane %v1872_v50, 4  ;;  %s3963_s26 = smov 19  }
 0x1d6   : > { %v1882_v63 = vrot.slane %v1873_v58, 3  ;;  %v1884_v45 = vrot.slane %v1874_v42, 2  ;;  %v1886_v56 = vrot.slane %v1875_v17, 1  ;;  %v1723_v43 = vrot.slane %v5784_v61, 1  ;;  %v5800_v61 = vld [vmem:[#allocation20_spill] sm:$0xff] }
 0x1d7   : > { %v1881_v49 = vsel %vm652_vm1, %v1880_v24, %v1879_v44  ;;  %v1889_v29 = vrot.slane %v1877_v41, 7  ;;  %v1891_v46 = vrot.slane %v1878_v22, 6  ;;  %v1724_v40 = vrot.slane %v5785_v51, 1  ;;  %v5802_v51 = vld [vmem:[#allocation19_spill] sm:$0xff] }
 0x1d8   : > { %v1883_v6 = vsel %vm655_vm2, %v1882_v63, %v1881_v49  ;;  %v1725_v14 = vrot.slane %v5786_v27, 1  ;;  %v1726_v57 = vrot.slane %v5787_v7, 1  ;;  %v1727_v10 = vrot.slane %v5788_v52, 1  ;;  %v5804_v27 = vld [vmem:[#allocation28_spill] sm:$0xff]  ;;  %v5806_v52 = vld [vmem:[#allocation29_spill] sm:$0xff] }
 0x1d9   : > { %v1885_v2 = vsel %vm658_vm3, %v1884_v45, %v1883_v6  ;;  %v1728_v28 = vrot.slane %v5789_v39, 1  ;;  %v1729_v48 = vrot.slane %v5790_v21, 1  ;;  %v1730_v30 = vrot.slane %v5791_v19, 1  ;;  %v5808_v39 = vld [vmem:[#allocation32_spill] sm:$0xff]  ;;  %v5811_v19 = vld [vmem:[#allocation30_spill] sm:$0xff] }
 0x1da   : > { %v1887_v9 = vsel %vm661_vm4, %v1886_v56, %v1885_v2  ;;  %v1739_v13 = vadd.f32 %v1723_v43, %v5792_v32  ;;  %v1740_v0 = vadd.f32 %v1724_v40, %v5793_v5  ;;  %v1741_v37 = vadd.f32 %v1725_v14, %v5794_v47  ;;  %v5801_v43 = vld [vmem:[#allocation25_spill] sm:$0xff]  ;;  %v5803_v40 = vld [vmem:[#allocation18_spill] sm:$0xff]  ;;  %v5805_v14 = vld [vmem:[#allocation31_spill] sm:$0xff] }
 0x1db   : > { %v1888_v53 = vsel %vm664_vm6, %v1876_v12, %v1887_v9  ;;  %v1742_v3 = vadd.f32 %v1726_v57, %v5795_v31  ;;  %v1743_v38 = vadd.f32 %v1727_v10, %v5796_v26  ;;  %v1744_v60 = vadd.f32 %v1728_v28, %v5797_v59  ;;  %v5807_v10 = vld [vmem:[#allocation24_spill] sm:$0xff]  ;;  %v5812_v32 = vld [vmem:[#allocation35_spill] sm:$0xff]  ;;  %v5815_v47 = vld [vmem:[#allocation34_spill] sm:$0xff] }
 0x1dc   : > { %v1890_v8 = vsel %vm667_vm5, %v1889_v29, %v1888_v53  ;;  %v1745_v35 = vadd.f32 %v1729_v48, %v5798_v1  ;;  %v1746_v33 = vadd.f32 %v1730_v30, %v5799_v11  ;;  %v3584_v15 = vpack.c.bf16 %v1739_v13, %v1739_v13  ;;  %v5809_v28 = vld [vmem:[#allocation36_spill] sm:$0xff]  ;;  %v5810_v48 = vld [vmem:[#allocation33_spill] sm:$0xff] }
 0x1dd   : > { %v1892_v25 = vsel %vm670_vm7, %v1891_v46, %v1890_v8  ;;  %v3585_v18 = vpack.c.bf16 %v1740_v0, %v1740_v0  ;;  %v3586_v62 = vpack.c.bf16 %v1741_v37, %v1741_v37  ;;  %v3587_v34 = vpack.c.bf16 %v1742_v3, %v1742_v3  ;;  %v5813_v13 = vld [vmem:[#allocation37_spill] sm:$0xff]  ;;  %v5814_v0 = vld [vmem:[#allocation38_spill] sm:$0xff] }
 0x1de   : > { %v1893_v20 = vpack.c.b16 %v1892_v25, %v1892_v25  ;;  %v3588_v54 = vpack.c.bf16 %v1743_v38, %v1743_v38  ;;  %v3589_v16 = vpack.c.bf16 %v1744_v60, %v1744_v60  ;;  %v3590_v36 = vpack.c.bf16 %v1745_v35, %v1745_v35 }
 0x1df   : > { %v3591_v55 = vpack.c.bf16 %v1746_v33, %v1746_v33  ;;  %v1779_v4 = vunpack.c.l.b16 %v3584_v15  ;;  %v1780_v23 = vunpack.c.l.b16 %v3585_v18  ;;  %v1781_v50 = vunpack.c.l.b16 %v3586_v62 }
 0x1e0   : > { %1894 = vrot.lane.b32.xlu1 %v1893_v20, %s3951_s29  ;;  %v1782_v58 = vunpack.c.l.b16 %v3587_v34  ;;  %v1783_v42 = vunpack.c.l.b16 %v3588_v54  ;;  %v1784_v17 = vunpack.c.l.b16 %v3589_v16  ;;  %v1785_v12 = vunpack.c.l.b16 %v3590_v36  ;;  %s3964_s29 = smov 55  }
 0x1e1   : > { %v1786_v41 = vunpack.c.l.b16 %v3591_v55  ;;  %v1787_v22 = vrot.slane %v1779_v4, 5  ;;  %v1788_v44 = vrot.slane %v1780_v23, 4  ;;  %v1790_v24 = vrot.slane %v1781_v50, 3 }
 0x1e2   : > { %v1792_v63 = vrot.slane %v1782_v58, 2  ;;  %v1794_v45 = vrot.slane %v1783_v42, 1  ;;  %v1797_v56 = vrot.slane %v1785_v12, 7  ;;  %v2088_v49 = vadd.f32 %v5801_v43, %v5800_v61  ;;  %v5816_v12 = vld [vmem:[#allocation26_spill] sm:$0xff] }
 0x1e3   : > { %v1789_v29 = vsel %vm652_vm1, %v1788_v44, %v1787_v22  ;;  %v1799_v46 = vrot.slane %v1786_v41, 6  ;;  %v2089_v6 = vadd.f32 %v5803_v40, %v5802_v51  ;;  %v2090_v7 = vadd.f32 %v5805_v14, %v5804_v27  ;;  %v5817_v44 = vld [vmem:[#allocation21_spill] sm:$0xff]  ;;  %v5822_v40 = vld [vmem:[#allocation43_spill] sm:$0xff]  ;;  %v5823_v14 = vld [vmem:[#allocation44_spill] sm:$0xff] }
 0x1e4   : > { %v1791_v57 = vsel %vm655_vm2, %v1790_v24, %v1789_v29  ;;  %v2091_v2 = vadd.f32 %v5807_v10, %v5806_v52  ;;  %v2092_v21 = vadd.f32 %v5809_v28, %v5808_v39  ;;  %v2093_v30 = vadd.f32 %v5811_v19, %v5810_v48  ;;  %v5825_v10 = vld [vmem:[#allocation22_spill] sm:$0xff]  ;;  %v4969_v39 = vpop.permute.xlu1 %1986 }
 0x1e5   : > { %v1793_v9 = vsel %vm658_vm3, %v1792_v63, %v1791_v57  ;;  %v2094_v5 = vadd.f32 %v5813_v13, %v5812_v32  ;;  %v2095_v37 = vadd.f32 %v5815_v47, %v5814_v0  ;;  %v3616_v53 = vpack.c.bf16 %v2088_v49, %v2088_v49  ;;  %v5818_v63 = vld [vmem:[#allocation39_spill] sm:$0xff]  ;;  %v5820_v49 = vld [vmem:[#allocation41_spill] sm:$0xff]  ;;  %v5827_v19 = vld [vmem:[#allocation46_spill] sm:$0xff] }
 0x1e6   : > { %v1795_v31 = vsel %vm661_vm4, %v1794_v45, %v1793_v9  ;;  %v3617_v3 = vpack.c.bf16 %v2089_v6, %v2089_v6  ;;  %v3618_v26 = vpack.c.bf16 %v2090_v7, %v2090_v7  ;;  %v3619_v38 = vpack.c.bf16 %v2091_v2, %v2091_v2  ;;  %v5824_v57 = vld [vmem:[#allocation27_spill] sm:$0xff]  ;;  %v5830_v47 = vld [vmem:[#allocation49_spill] sm:$0xff] }
 0x1e7   : > { %v1796_v59 = vsel %vm664_vm6, %v1784_v17, %v1795_v31  ;;  %v3620_v60 = vpack.c.bf16 %v2092_v21, %v2092_v21  ;;  %v3621_v8 = vpack.c.bf16 %v2093_v30, %v2093_v30  ;;  %v3622_v1 = vpack.c.bf16 %v2094_v5, %v2094_v5  ;;  %v5826_v21 = vld [vmem:[#allocation45_spill] sm:$0xff]  ;;  %v5828_v9 = vld [vmem:[#allocation47_spill] sm:$0xff]  ;;  %v5829_v5 = vld [vmem:[#allocation48_spill] sm:$0xff] }
 0x1e8   : > { %v1798_v35 = vsel %vm667_vm5, %v1797_v56, %v1796_v59  ;;  %v3623_v11 = vpack.c.bf16 %v2095_v37, %v2095_v37  ;;  %v2128_v33 = vunpack.c.l.b16 %v3616_v53  ;;  %v2129_v15 = vunpack.c.l.b16 %v3617_v3  ;;  %v5819_v56 = vld [vmem:[#allocation40_spill] sm:$0xff]  ;;  %v5831_v53 = vld [vmem:[#allocation50_spill] sm:$0xff] }
 0x1e9   : > { %v1800_v25 = vsel %vm670_vm7, %v1799_v46, %v1798_v35  ;;  %v2130_v18 = vunpack.c.l.b16 %v3618_v26  ;;  %v2131_v62 = vunpack.c.l.b16 %v3619_v38  ;;  %v2132_v34 = vunpack.c.l.b16 %v3620_v60  ;;  %v5821_v46 = vld [vmem:[#allocation42_spill] sm:$0xff] }
 0x1ea   : > { %v1801_v20 = vpack.c.b16 %v1800_v25, %v1800_v25  ;;  %v2133_v54 = vunpack.c.l.b16 %v3621_v8  ;;  %v2134_v16 = vunpack.c.l.b16 %v3622_v1  ;;  %v2135_v36 = vunpack.c.l.b16 %v3623_v11  ;;  %v674_v11 = vpop.permute.xlu0 %673 }
 0x1eb   : > { %v2136_v55 = vrot.slane %v2128_v33, 7  ;;  %v2137_v4 = vrot.slane %v2129_v15, 6  ;;  %v2139_v23 = vrot.slane %v2130_v18, 5  ;;  %v2141_v50 = vrot.slane %v2131_v62, 4 }
 0x1ec   : > { %1802 = vrot.lane.b32.xlu0 %v1801_v20, %s3952_s28  ;;  %v2143_v58 = vrot.slane %v2132_v34, 3  ;;  %v2145_v42 = vrot.slane %v2133_v54, 2  ;;  %v2147_v17 = vrot.slane %v2134_v16, 1  ;;  %v2004_v41 = vrot.slane %v5816_v12, 1  ;;  %v890_v54 = vpop.permute.xlu1 %889  ;;  %s3965_s28 = smov 37  }
 0x1ed   : > { %v2138_v22 = vsel %vm652_vm1, %v2137_v4, %v2136_v55  ;;  %v2005_v24 = vrot.slane %v5817_v44, 1  ;;  %v2006_v45 = vrot.slane %v5818_v63, 1  ;;  %v2007_v61 = vrot.slane %v5819_v56, 1 }
 0x1ee   : > { %v2140_v43 = vsel %vm655_vm2, %v2139_v23, %v2138_v22  ;;  %v2008_v29 = vrot.slane %v5820_v49, 1  ;;  %v2009_v51 = vrot.slane %v5821_v46, 1  ;;  %v2010_v6 = vrot.slane %v5822_v40, 1  ;;  %v782_v12 = vpop.permute.xlu0 %781 }
 0x1ef   : > { %v2142_v27 = vsel %vm658_vm3, %v2141_v50, %v2140_v43  ;;  %v2011_v7 = vrot.slane %v5823_v14, 1  ;;  %v2020_v52 = vadd.f32 %v2004_v41, %v5824_v57  ;;  %v2021_v2 = vadd.f32 %v2005_v24, %v5825_v10 }
 0x1f0   : > { %v2144_v28 = vsel %vm661_vm4, %v2143_v58, %v2142_v27  ;;  %v2022_v48 = vadd.f32 %v2006_v45, %v5826_v21  ;;  %v2023_v30 = vadd.f32 %v2007_v61, %v5827_v19  ;;  %v2024_v32 = vadd.f32 %v2008_v29, %v5828_v9  ;;  %v998_v56 = vpop.permute.xlu1 %997 }
 0x1f1   : > { %v2146_v13 = vsel %vm664_vm6, %v2145_v42, %v2144_v28  ;;  %v2025_v0 = vadd.f32 %v2009_v51, %v5829_v5  ;;  %v2026_v37 = vadd.f32 %v2010_v6, %v5830_v47  ;;  %v2027_v31 = vadd.f32 %v2011_v7, %v5831_v53  ;;  %v2158_v47 = vld [vmem:[%s4198_s21 + $0x10] sm:$0xff] }
 0x1f2   : > { %v2148_v3 = vsel %vm667_vm5, %v2147_v17, %v2146_v13  ;;  %v3608_v26 = vpack.c.bf16 %v2020_v52, %v2020_v52  ;;  %v3609_v38 = vpack.c.bf16 %v2021_v2, %v2021_v2  ;;  %v3610_v59 = vpack.c.bf16 %v2022_v48, %v2022_v48  ;;  %v2162_v53 = vld [vmem:[%s4198_s21 + $0x30] sm:$0xff] }
 0x1f3   : > { %v2149_v60 = vsel %vm670_vm7, %v2135_v36, %v2148_v3  ;;  %v3611_v8 = vpack.c.bf16 %v2023_v30, %v2023_v30  ;;  %v3612_v1 = vpack.c.bf16 %v2024_v32, %v2024_v32  ;;  %v3613_v35 = vpack.c.bf16 %v2025_v0, %v2025_v0  ;;  %v1322_v40 = vpop.permute.xlu0 %1321  ;;  %v2156_v0 = vld [vmem:[%s4198_s21] sm:$0xff] }
 0x1f4   : > { %v2150_v33 = vpack.c.b16 %v2149_v60, %v2149_v60  ;;  %v3615_v15 = vpack.c.bf16 %v2027_v31, %v2027_v31  ;;  %v2060_v25 = vunpack.c.l.b16 %v3608_v26  ;;  %v2061_v18 = vunpack.c.l.b16 %v3609_v38  ;;  %v2157_v26 = vld [vmem:[%s4198_s21 + $0x8] sm:$0xff]  ;;  %v5055_v60 = vld [vmem:[%s4198_s21 + $0x18] sm:$0xff] }
 0x1f5   : > { %v2062_v62 = vunpack.c.l.b16 %v3610_v59  ;;  %v2063_v34 = vunpack.c.l.b16 %v3611_v8  ;;  %v2064_v20 = vunpack.c.l.b16 %v3612_v1  ;;  %v3614_v16 = vpack.c.bf16 %v2026_v37, %v2026_v37  ;;  %v2160_v37 = vld [vmem:[%s4198_s21 + $0x20] sm:$0xff]  ;;  %v5058_v8 = vld [vmem:[%s4198_s21 + $0x28] sm:$0xff]  ;;  %v5061_v1 = vld [vmem:[%s4198_s21 + $0x38] sm:$0xff]  ;;  %s3968_s21 = smov 17  }
 0x1f6   : > { %2151 = vrot.lane.b32.xlu1 %v2150_v33, %s3953_s24  ;;  %v2068_v55 = vrot.slane %v2060_v25, 6  ;;  %v2065_v4 = vunpack.c.l.b16 %v3613_v35  ;;  %v2067_v23 = vunpack.c.l.b16 %v3615_v15  ;;  %v2069_v50 = vrot.slane %v2061_v18, 5  ;;  %s3966_s24 = smov 73  }
 0x1f7   : > { %v2071_v36 = vrot.slane %v2062_v62, 4  ;;  %v2073_v58 = vrot.slane %v2063_v34, 3  ;;  %v2075_v42 = vrot.slane %v2064_v20, 2  ;;  %v2066_v41 = vunpack.c.l.b16 %v3614_v16 }
 0x1f8   : > { %v2070_v17 = vsel %vm652_vm1, %v2069_v50, %v2068_v55  ;;  %v3954_v44 = vmov 0   ;;  %v2077_v63 = vrot.slane %v2065_v4, 1  ;;  %v2080_v45 = vrot.slane %v2067_v23, 7 }
 0x1f9   : > { %v2072_v22 = vsel %vm655_vm2, %v2071_v36, %v2070_v17  ;;  %421 = vst [vmem:[#allocation2] sm:$0xff] %v3954_v44  ;;  %424 = vst [vmem:[#allocation3] sm:$0xff] %v3954_v44  ;;  %2595 = vmatprep.mubr.bf16.mxu1 %v3954_v44  ;;  %3804 = vset.pattern.permute.xlu0 %v3954_v44  ;;  %v1323_v6 = vrot.slane %v1322_v40, 4  ;;  %v1988_v2 = vrot.slane %v4969_v39, 4  ;;  %v3958_v32 = vmov 0.0  }
 0x1fa   : > { %v2074_v24 = vsel %vm658_vm3, %v2073_v58, %v2072_v22  ;;  %677 = vst.msk [vmem:[#allocation2] sm:$0xf] %vm676_vm8, %v674_v11  ;;  %vm1621_vm8 = vcmask 568736   ;;  %3673 = vmatprep.subr.bf16.mxu0 %v3958_v32  ;;  %v3624_v31 = vpack.c.bf16 %v2156_v0, %v2156_v0  ;;  %v3625_v3 = vpack.c.bf16 %v2158_v47, %v2158_v47  ;;  %v2544_v22 = vld [vmem:[%s5557_s5] sm:$0xf] }
 0x1fb   : > { %v2076_v61 = vsel %vm661_vm4, %v2075_v42, %v2074_v24  ;;  %785 = vst.msk [vmem:[#allocation2] sm:$0xf] %vm784_vm9, %v782_v12  ;;  %vm1216_vm4 = vcmask 1027936   ;;  %v1325_v14 = vsel %vm5651_vm0, %v1323_v6, %v1322_v40  ;;  %vm1713_vm9 = vcmask 716336  }
 0x1fc   : > { %v2078_v43 = vsel %vm664_vm6, %v2077_v63, %v2076_v61  ;;  %893 = vst.msk [vmem:[#allocation2] sm:$0xf] %vm892_vm10, %v890_v54  ;;  %vm1437_vm6 = vcmask 273536   ;;  %vm1992_vm10 = vcmask 1044448   ;;  %v3626_v38 = vpack.c.bf16 %v2160_v37, %v2160_v37 }
 0x1fd   : > { %v2079_v49 = vsel %vm667_vm5, %v2066_v41, %v2078_v43  ;;  %1001 = vst.msk [vmem:[#allocation2] sm:$0xf] %vm1000_vm11, %v998_v56  ;;  %vm1329_vm5 = vmor %vm1328_vm15, %vm1327_vm14  ;;  %vm1993_vm11 = vcmask 113668   ;;  %vm1897_vm14 = vcmask 1011536   ;;  %v3627_v59 = vpack.c.bf16 %v2162_v53, %v2162_v53 }
 0x1fe   : > { %v2081_v29 = vsel %vm670_vm7, %v2080_v45, %v2079_v49  ;;  %423 = vst.msk [vmem:[#allocation2 + $0x8] sm:$0xf] %vm422_vm12, %v3954_v44  ;;  %425 = vst.msk [vmem:[#allocation3 + $0x8] sm:$0xf] %vm422_vm12, %v3954_v44  ;;  %vm1529_vm7 = vcmask 421136   ;;  %vm1805_vm12 = vcmask 863936   ;;  %v3628_v35 = vpack.c.bf16 %v2157_v26, %v2157_v26 }
 0x1ff   : > { %v2082_v46 = vpack.c.b16 %v2081_v29, %v2081_v29  ;;  %vm1994_vm15 = vmor %vm1993_vm11, %vm1992_vm10  ;;  %v5067_v11 = vunpack.c.l.b16 %v3624_v31  ;;  %v5069_v33 = vunpack.c.l.b16 %v3625_v3  ;;  %v3629_v15 = vpack.c.bf16 %v5055_v60, %v5055_v60 }
 0x200   : > { %v3630_v25 = vpack.c.bf16 %v5058_v8, %v5058_v8  ;;  %v5075_v18 = vunpack.c.l.b16 %v3626_v38  ;;  %v5077_v62 = vunpack.c.l.b16 %v3627_v59  ;;  %v3631_v34 = vpack.c.bf16 %v5061_v1, %v5061_v1 }
 0x201   : > { %2083 = vrot.lane.b32.xlu0 %v2082_v46, %s3955_s11  ;;  %v5081_v20 = vunpack.c.l.b16 %v3628_v35  ;;  %v2184_v54 = vrot.slane %v5069_v33, 7  ;;  %v2196_v16 = vrot.slane %v5067_v11, 1  ;;  %v2208_v55 = vrot.slane %v5067_v11, 2  ;;  %s3967_s11 = smov 35  }
 0x202   : > { %v2209_v4 = vrot.slane %v5069_v33, 1  ;;  %v2186_v23 = vrot.slane %v5075_v18, 6  ;;  %v2188_v50 = vrot.slane %v5077_v62, 5  ;;  %v2198_v36 = vrot.slane %v5075_v18, 7 }
 0x203   : > { %v2200_v58 = vrot.slane %v5077_v62, 6  ;;  %v2185_v42 = vsel %vm652_vm1, %v2184_v54, %v5067_v11  ;;  %v2197_v17 = vsel %vm652_vm1, %v5069_v33, %v2196_v16  ;;  %v2212_v41 = vrot.slane %v5077_v62, 7 }
 0x204   : > { %v1106_v51 = vpop.permute.xlu1 %1105  ;;  %v2210_v12 = vsel %vm652_vm1, %v2209_v4, %v2208_v55  ;;  %v2187_v24 = vsel %vm655_vm2, %v2186_v23, %v2185_v42  ;;  %v2199_v63 = vsel %vm655_vm2, %v2198_v36, %v2197_v17  ;;  %v2220_v56 = vrot.slane %v5067_v11, 3 }
 0x205   : > { %1109 = vst.msk [vmem:[#allocation2] sm:$0xf] %vm1108_vm13, %v1106_v51  ;;  %vm1989_vm13 = vcmask 1014784   ;;  %v2211_v45 = vsel %vm655_vm2, %v5075_v18, %v2210_v12  ;;  %v2189_v61 = vsel %vm658_vm3, %v2188_v50, %v2187_v24  ;;  %v2201_v43 = vsel %vm658_vm3, %v2200_v58, %v2199_v63 }
 0x206   : > { %v1990_v48 = vsel %vm1989_vm13, %v1988_v2, %v4969_v39  ;;  %v2213_v49 = vsel %vm658_vm3, %v2212_v41, %v2211_v45  ;;  %v2221_v29 = vrot.slane %v5069_v33, 2  ;;  %v2190_v46 = vpack.c.b16 %v2189_v61, %v2189_v61 }
 0x207   : > { %v2202_v51 = vpack.c.b16 %v2201_v43, %v2201_v43  ;;  %v2214_v40 = vpack.c.b16 %v2213_v49, %v2213_v49  ;;  %v2223_v6 = vrot.slane %v5075_v18, 1  ;;  %v2232_v2 = vrot.slane %v5067_v11, 4 }
 0x208   : > { %v2245_v37 = vrot.slane %v5067_v11, 5  ;;  %v2246_v3 = vrot.slane %v5069_v33, 4  ;;  %v2248_v26 = vrot.slane %v5075_v18, 3  ;;  %v2250_v35 = vrot.slane %v5077_v62, 2 }
 0x209   : > { %v2276_v54 = vrot.slane %v5067_v11, 7  ;;  %v2277_v4 = vrot.slane %v5069_v33, 6  ;;  %v2279_v23 = vrot.slane %v5075_v18, 5  ;;  %v2281_v36 = vrot.slane %v5077_v62, 4 }
 0x20a   : > { %v2247_v55 = vsel %vm652_vm1, %v2246_v3, %v2245_v37  ;;  %v5144_v58 = vunpack.c.l.b16 %v3629_v15  ;;  %v2321_v60 = vrot.slane %v5081_v20, 1  ;;  %v2333_v24 = vrot.slane %v5081_v20, 2 }
 0x20b   : > { %v2249_v50 = vsel %vm655_vm2, %v2248_v26, %v2247_v55  ;;  %vm2483_vm10 = vcmask 744448   ;;  %vm2456_vm11 = vcmask 891904   ;;  %vm5650_vm13 = vcmask 900096  }
 0x20c   : > { %v2322_v1 = vsel %vm652_vm1, %v5144_v58, %v2321_v60 }
 0x214   : > { %v1214_v27 = vpop.permute.xlu0 %1213 }
 0x215   : > { %1217 = vst.msk [vmem:[#allocation2] sm:$0xf] %vm1216_vm4, %v1214_v27  ;;  %vm2086_vm4 = vcmask 257136   ;;  %v2222_v27 = vsel %vm652_vm1, %v2221_v29, %v2220_v56  ;;  %v2334_v56 = vrot.slane %v5144_v58, 1 }
 0x216   : > { %1330 = vst.msk [vmem:[#allocation2] sm:$0xff] %vm1329_vm5, %v1325_v14  ;;  %vm2154_vm5 = vcmask 404736   ;;  %v2258_v14 = vrot.slane %v5067_v11, 6  ;;  %v5149_v11 = vunpack.c.l.b16 %v3630_v25  ;;  %v2309_v25 = vrot.slane %v5144_v58, 7 }
 0x218   : > { %v2311_v42 = vrot.slane %v5149_v11, 6  ;;  %v2310_v41 = vsel %vm652_vm1, %v2309_v25, %v5081_v20 }
 0x21a   : > { %v2312_v63 = vsel %vm655_vm2, %v2311_v42, %v2310_v41 }
 0x223   : > { %v1435_v7 = vpop.permute.xlu1 %1434 }
 0x224   : > { %1438 = vst.msk [vmem:[#allocation2 + $0x4] sm:$0xf] %vm1437_vm6, %v1435_v7  ;;  %vm5648_vm6 = vmmov 0   ;;  %v2259_v7 = vrot.slane %v5069_v33, 5 }
 0x225   : > { %3683 = vmatprep.mubr.msk.bf16.mxu0 %vm5648_vm6, %v3958_v32 }
 0x22f   : > { %v1527_v57 = vpop.permute.xlu0 %1526 }
 0x230   : > { %1530 = vst.msk [vmem:[#allocation2 + $0x4] sm:$0xf] %vm1529_vm7, %v1527_v57  ;;  %v2261_v57 = vrot.slane %v5075_v18, 4  ;;  %vm2492_vm7 = vcmask 736256  }
 0x23b   : > { %v1619_v52 = vpop.permute.xlu1 %1618 }
 0x23c   : > { %1622 = vst.msk [vmem:[#allocation2 + $0x4] sm:$0xf] %vm1621_vm8, %v1619_v52  ;;  %v2224_v52 = vsel %vm655_vm2, %v2223_v6, %v2222_v27  ;;  %vm5654_vm8 = vcmask 1043456  }
 0x247   : > { %v1711_v10 = vpop.permute.xlu0 %1710 }
 0x248   : > { %1714 = vst.msk [vmem:[#allocation2 + $0x4] sm:$0xf] %vm1713_vm9, %v1711_v10  ;;  %v2263_v10 = vrot.slane %v5077_v62, 3  ;;  %vm2474_vm9 = vcmask 752640  }
 0x252   : > { %v1895_v21 = vpop.permute.xlu1 %1894 }
 0x25e   : > { %v1803_v28 = vpop.permute.xlu0 %1802 }
 0x25f   : > { %1806 = vst.msk [vmem:[#allocation2 + $0x4] sm:$0xf] %vm1805_vm12, %v1803_v28  ;;  %v2233_v28 = vrot.slane %v5069_v33, 3  ;;  %v2251_v33 = vsel %vm658_vm3, %v2250_v35, %v2249_v50  ;;  %vm2465_vm12 = vcmask 883712  }
 0x260   : > { %1898 = vst.msk [vmem:[#allocation2 + $0x4] sm:$0xf] %vm1897_vm14, %v1895_v21  ;;  %v2225_v21 = vsel %vm658_vm3, %v5077_v62, %v2224_v52  ;;  %v2252_v15 = vpack.c.b16 %v2251_v33, %v2251_v33  ;;  %vm5653_vm14 = vcmask 1039360  }
 0x261   : > { %1995 = vst.msk [vmem:[#allocation2 + $0x4] sm:$0xff] %vm1994_vm15, %v1990_v48  ;;  %v2260_v48 = vsel %vm652_vm1, %v2259_v7, %v2258_v14  ;;  %v2234_v47 = vsel %vm652_vm1, %v2233_v28, %v2232_v2  ;;  %vm5649_vm15 = vcmask 588800  }
 0x262   : > { %v2262_v0 = vsel %vm655_vm2, %v2261_v57, %v2260_v48 }
 0x263   : > { %v2264_v53 = vsel %vm658_vm3, %v2263_v10, %v2262_v0 }
 0x264   : > { %v2265_v38 = vpack.c.b16 %v2264_v53, %v2264_v53 }
 0x268   : > { %v2415_v19 = vld [vmem:[#allocation2] sm:$0xff]  ;;  %v2152_v13 = vpop.permute.xlu1 %2151 }
 0x269   : > { %v4998_v30 = vcombine.high %v2415_v19, %v2415_v19  ;;  %v5000_v9 = vcombine.low %v2415_v19, %v2415_v19  ;;  %v2235_v19 = vrot.slane %v5075_v18, 2  ;;  %v2278_v18 = vsel %vm652_vm1, %v2277_v4, %v2276_v54 }
 0x26a   : > { %v2280_v8 = vsel %vm655_vm2, %v2279_v23, %v2278_v18 }
 0x26b   : > { %2488 = vrot.lane.b32.xlu1 %v4998_v30, %s3945_s15  ;;  %2486 = vrot.lane.b32.xlu0 %v5000_v9, %s3945_s15  ;;  %v2236_v31 = vsel %vm655_vm2, %v2235_v19, %v2234_v47  ;;  %v2282_v17 = vsel %vm658_vm3, %v2281_v36, %v2280_v8 }
 0x26c   : > { %v2283_v43 = vpack.c.b16 %v2282_v17, %v2282_v17 }
 0x26f   : > { %2470 = vrot.lane.b32.xlu1 %v4998_v30, %s3956_s12  ;;  %2477 = vrot.lane.b32.xlu0 %v5000_v9, %s3957_s0 }
 0x273   : > { %2479 = vrot.lane.b32.xlu1 %v4998_v30, %s3957_s0  ;;  %2459 = vrot.lane.b32.xlu0 %v5000_v9, %s3946_s20  ;;  %v2084_v39 = vpop.permute.xlu0 %2083 }
 0x274   : > { %2087 = vst.msk [vmem:[#allocation2 + $0x8] sm:$0xf] %vm2086_vm4, %v2084_v39  ;;  %v2237_v39 = vrot.slane %v5077_v62, 1  ;;  %v5157_v62 = vunpack.c.l.b16 %v3631_v34  ;;  %v2323_v34 = vrot.slane %v5149_v11, 7  ;;  %vm2194_vm4 = vcmask 279704  }
 0x275   : > { %2155 = vst.msk [vmem:[#allocation2 + $0x8] sm:$0xf] %vm2154_vm5, %v2152_v13  ;;  %v2226_v13 = vpack.c.b16 %v2225_v21, %v2225_v21  ;;  %vm2206_vm5 = vcmask 427304  }
 0x276   : > { %v2238_v59 = vsel %vm658_vm3, %v2237_v39, %v2236_v31  ;;  %v2313_v12 = vrot.slane %v5157_v62, 5  ;;  %v2324_v45 = vsel %vm655_vm2, %v2323_v34, %v2322_v1  ;;  %v2337_v61 = vrot.slane %v5157_v62, 7 }
 0x277   : > { %2468 = vrot.lane.b32.xlu1 %v5000_v9, %s3956_s12  ;;  %2441 = vrot.lane.b32.xlu0 %v5000_v9, %s3959_s19  ;;  %v2239_v16 = vpack.c.b16 %v2238_v59, %v2238_v59 }
 0x278   : > { %v2314_v49 = vsel %vm658_vm3, %v2313_v12, %v2312_v63 }
 0x279   : > { %v2315_v29 = vpack.c.b16 %v2314_v49, %v2314_v49 }
 0x27b   : > { %2452 = vrot.lane.b32.xlu1 %v4998_v30, %s3960_s23 }
 0x27c   : > { %v5021_v5 = vld [vmem:[#allocation2 + $0x8] ss:$0 sps:$4 sm:$0xff]  }
 0x27d   : > { %2490 = vrot.lane.b32.xlu0 %v5021_v5, %s3945_s15 }
 0x27f   : > { %2461 = vrot.lane.b32.xlu1 %v4998_v30, %s3946_s20 }
 0x281   : > { %2472 = vrot.lane.b32.xlu0 %v5021_v5, %s3956_s12 }
 0x283   : > { %2450 = vrot.lane.b32.xlu1 %v5000_v9, %s3960_s23 }
 0x285   : > { %2481 = vrot.lane.b32.xlu0 %v5021_v5, %s3957_s0 }
 0x287   : > { %2435 = vrot.lane.b32.xlu1 %v4998_v30, %s3944_s27 }
 0x289   : > { %2454 = vrot.lane.b32.xlu0 %v5021_v5, %s3960_s23 }
 0x28b   : > { %2443 = vrot.lane.b32.xlu1 %v4998_v30, %s3959_s19 }
 0x28d   : > { %2463 = vrot.lane.b32.xlu0 %v5021_v5, %s3946_s20 }
 0x28f   : > { %2433 = vrot.lane.b32.xlu1 %v5000_v9, %s3944_s27 }
 0x291   : > { %2437 = vrot.lane.b32.xlu0 %v5021_v5, %s3944_s27 }
 0x293   : > { %2427 = vrot.lane.b32.xlu1 %v4998_v30, %s3961_s18 }
 0x295   : > { %2445 = vrot.lane.b32.xlu0 %v5021_v5, %s3959_s19 }
 0x297   : > { %2425 = vrot.lane.b32.xlu1 %v5000_v9, %s3961_s18 }
 0x299   : > { %2429 = vrot.lane.b32.xlu0 %v5021_v5, %s3961_s18 }
 0x29b   : > { %2191 = vrot.lane.b32.xlu1 %v2190_v46, %s3963_s26 }
 0x29d   : > { %2547 = vperm.xlu0 %3804, %v2544_v22   ;;  %v2325_v22 = vrot.slane %v5157_v62, 6 }
 0x29f   : > { %2203 = vrot.lane.b32.xlu1 %v2202_v51, %s3965_s28  ;;  %v2326_v46 = vsel %vm658_vm3, %v2325_v22, %v2324_v45  ;;  %v2335_v51 = vsel %vm652_vm1, %v2334_v56, %v2333_v24  ;;  %s3975_s28 = smov 33  }
 0x2a0   : > { %v2327_v27 = vpack.c.b16 %v2326_v46, %v2326_v46 }
 0x2a1   : > { %2215 = vrot.lane.b32.xlu0 %v2214_v40, %s3964_s29  ;;  %v2336_v40 = vsel %vm655_vm2, %v5149_v11, %v2335_v51  ;;  %s3970_s29 = smov 53  }
 0x2a2   : > { %v2338_v6 = vsel %vm658_vm3, %v2337_v61, %v2336_v40 }
 0x2a3   : > { %2227 = vrot.lane.b32.xlu1 %v2226_v13, %s3966_s24  ;;  %v2339_v14 = vpack.c.b16 %v2338_v6, %v2338_v6 }
 0x2a5   : > { %2266 = vrot.lane.b32.xlu0 %v2265_v38, %s3961_s18 }
 0x2a7   : > { %2240 = vrot.lane.b32.xlu1 %v2239_v16, %s3957_s0 }
 0x2a9   : > { %2253 = vrot.lane.b32.xlu0 %v2252_v15, %s3960_s23 }
 0x2ab   : > { %2284 = vrot.lane.b32.xlu1 %v2283_v43, %s3968_s21  ;;  %s3972_s21 = smov 89  }
 0x2ad   : > { %2316 = vrot.lane.b32.xlu0 %v2315_v29, %s3967_s11  ;;  %s3971_s11 = smov 125  }
 0x2af   : > { %2328 = vrot.lane.b32.xlu1 %v2327_v27, %s3970_s29  ;;  %s3974_s29 = smov 15  }
 0x2b1   : > { %2340 = vrot.lane.b32.xlu0 %v2339_v14, %s3969_s30  ;;  %v2414_v14 = vld [vmem:[%s5556_s4] sm:$0x3]  ;;  %s3973_s30 = smov 107  }
 0x2dd   : > { %v2489_v7 = vpop.permute.xlu1 %2488  ;;  %v2487_v57 = vpop.permute.xlu0 %2486 }
 0x2de   : > { %v2493_v39 = vsel %vm2492_vm7, %v2487_v57, %v2489_v7 }
 0x2df   : > { %v2555_v53 = vsel %vm5654_vm8, %v2493_v39, 0 }
 0x2e1   : > { %v2471_v52 = vpop.permute.xlu1 %2470  ;;  %v2478_v10 = vpop.permute.xlu0 %2477 }
 0x2e5   : > { %v2480_v2 = vpop.permute.xlu1 %2479  ;;  %v2460_v28 = vpop.permute.xlu0 %2459 }
 0x2e6   : > { %v2484_v55 = vsel %vm2483_vm10, %v2478_v10, %v2480_v2 }
 0x2e9   : > { %v2469_v21 = vpop.permute.xlu1 %2468  ;;  %v2442_v48 = vpop.permute.xlu0 %2441 }
 0x2ea   : > { %v2475_v26 = vsel %vm2474_vm9, %v2469_v21, %v2471_v52  ;;  %v2346_v21 = vrot.slane %v5144_v58, 2 }
 0x2eb   : > { %v2534_v23 = vsel %vm5654_vm8, %v2475_v26, %v2484_v55  ;;  %v2388_v26 = vrot.slane %v5081_v20, 6  ;;  %v2393_v55 = vrot.slane %v5157_v62, 3 }
 0x2ed   : > { %v2453_v19 = vpop.permute.xlu1 %2452 }
 0x2ef   : > { %v2491_v13 = vpop.permute.xlu0 %2490 }
 0x2f0   : > { %v2561_v47 = vsel %vm5654_vm8, %v2491_v13, 0  ;;  %v2494_v37 = vsel %vm2492_vm7, %v2489_v7, %v2491_v13  ;;  %v2375_v7 = vrot.slane %v5157_v62, 2  ;;  %v2358_v13 = vrot.slane %v5144_v58, 3 }
 0x2f1   : > { %v2462_v0 = vpop.permute.xlu1 %2461  ;;  %3476 = vmatprep.subr.msk.bf16.mxu1 %vm5654_vm8, %v2494_v37  ;;  %3674 = vmatpush3.bf16.msra.mxu0 %v2561_v47  ;;  %v2362_v37 = vrot.slane %v5157_v62, 1 }
 0x2f2   : > { %2570 = vmatpush1.bf16.msra.mxu1 %v2555_v53  ;;  %3675 = vmatprep.subr.bf16.mxu0 %v3958_v32  ;;  %v2466_v42 = vsel %vm2465_vm12, %v2460_v28, %v2462_v0  ;;  %v2345_v28 = vrot.slane %v5081_v20, 3 }
 0x2f3   : > { %v2473_v31 = vpop.permute.xlu0 %2472 }
 0x2f4   : > { %v2476_v35 = vsel %vm2474_vm9, %v2471_v52, %v2473_v31  ;;  %v2347_v39 = vsel %vm652_vm1, %v2346_v21, %v2345_v28 }
 0x2f5   : > { %v2451_v3 = vpop.permute.xlu1 %2450 }
 0x2f6   : > { %v2457_v33 = vsel %vm2456_vm11, %v2451_v3, %v2453_v19 }
 0x2f7   : > { %v2482_v38 = vpop.permute.xlu0 %2481  ;;  %v2522_v12 = vsel %vm5654_vm8, %v2457_v33, %v2466_v42  ;;  %v2402_v33 = vrot.slane %v5144_v58, 6 }
 0x2f8   : > { %v2485_v54 = vsel %vm2483_vm10, %v2480_v2, %v2482_v38  ;;  %v2542_v16 = vsel %vm5654_vm8, %v2473_v31, %v2482_v38  ;;  %v2389_v38 = vrot.slane %v5144_v58, 5 }
 0x2f9   : > { %v2436_v59 = vpop.permute.xlu1 %2435  ;;  %3676 = vmatpush3.bf16.msra.mxu0 %v2542_v16  ;;  %v2538_v4 = vsel %vm5654_vm8, %v2476_v35, %v2485_v54  ;;  %v2391_v16 = vrot.slane %v5149_v11, 4 }
 0x2fa   : > { %2571 = vmatprep.subr.bf16.mxu1 %v2538_v4  ;;  %3677 = vmatprep.subr.bf16.mxu0 %v3958_v32  ;;  %v2390_v54 = vsel %vm652_vm1, %v2389_v38, %v2388_v26 }
 0x2fb   : > { %2572 = vmatpush1.bf16.msra.mxu1 %v2534_v23  ;;  %v2455_v50 = vpop.permute.xlu0 %2454 }
 0x2fc   : > { %v2458_v15 = vsel %vm2456_vm11, %v2453_v19, %v2455_v50  ;;  %v2357_v19 = vrot.slane %v5081_v20, 4 }
 0x2fd   : > { %v2444_v36 = vpop.permute.xlu1 %2443 }
 0x2fe   : > { %v2448_v61 = vsel %vm5650_vm13, %v2442_v48, %v2444_v36  ;;  %v2348_v48 = vrot.slane %v5149_v11, 1  ;;  %v2359_v3 = vsel %vm652_vm1, %v2358_v13, %v2357_v19 }
 0x2ff   : > { %v2464_v18 = vpop.permute.xlu0 %2463 }
 0x300   : > { %v2467_v8 = vsel %vm2465_vm12, %v2462_v0, %v2464_v18  ;;  %v2530_v25 = vsel %vm5654_vm8, %v2455_v50, %v2464_v18  ;;  %v2360_v0 = vrot.slane %v5149_v11, 2  ;;  %v2349_v47 = vsel %vm655_vm2, %v2348_v48, %v2347_v39 }
 0x301   : > { %v2434_v60 = vpop.permute.xlu1 %2433  ;;  %3678 = vmatpush3.bf16.msra.mxu0 %v2530_v25  ;;  %v2526_v17 = vsel %vm5654_vm8, %v2458_v15, %v2467_v8  ;;  %v2350_v31 = vsel %vm658_vm3, %v5157_v62, %v2349_v47  ;;  %v2392_v50 = vsel %vm655_vm2, %v2391_v16, %v2390_v54  ;;  %v2404_v8 = vrot.slane %v5149_v11, 5 }
 0x302   : > { %2573 = vmatprep.subr.bf16.mxu1 %v2526_v17  ;;  %3679 = vmatprep.subr.bf16.mxu0 %v3958_v32  ;;  %v2439_v41 = vsel %vm5651_vm0, %v2434_v60, %v2436_v59  ;;  %v2361_v35 = vsel %vm655_vm2, %v2360_v0, %v2359_v3  ;;  %v2394_v15 = vsel %vm658_vm3, %v2393_v55, %v2392_v50  ;;  %v2406_v25 = vrot.slane %v5157_v62, 4 }
 0x303   : > { %2574 = vmatpush1.bf16.msra.mxu1 %v2522_v12  ;;  %v2438_v1 = vpop.permute.xlu0 %2437  ;;  %v2510_v29 = vsel %vm5654_vm8, %v2439_v41, %v2448_v61  ;;  %v2363_v4 = vsel %vm658_vm3, %v2362_v37, %v2361_v35  ;;  %v2395_v42 = vpack.c.b16 %v2394_v15, %v2394_v15  ;;  %v2815_v15 = vld [vmem:[%s5559_s7] sm:$0xf] }
 0x304   : > { %v2440_v63 = vsel %vm5651_vm0, %v2436_v59, %v2438_v1  ;;  %v2351_v59 = vpack.c.b16 %v2350_v31, %v2350_v31  ;;  %v2364_v23 = vpack.c.b16 %v2363_v4, %v2363_v4  ;;  %vm2343_vm0 = vcmask 706104  }
 0x305   : > { %v2428_v34 = vpop.permute.xlu1 %2427 }
 0x306   : > { %2352 = vrot.lane.b32.xlu0 %v2351_v59, %s3972_s21  ;;  %s3210_s21 = scalar_lea.sflag [#allocation7], %s4189_s22 }
 0x307   : > { %v2446_v22 = vpop.permute.xlu0 %2445 }
 0x308   : > { %v2449_v45 = vsel %vm5650_vm13, %v2444_v36, %v2446_v22  ;;  %v2518_v56 = vsel %vm5654_vm8, %v2438_v1, %v2446_v22  ;;  %v2401_v36 = vrot.slane %v5081_v20, 7  ;;  %vm2256_vm13 = vcmask 1017704  }
 0x309   : > { %v2426_v24 = vpop.permute.xlu1 %2425  ;;  %3680 = vmatpush3.bf16.msra.mxu0 %v2518_v56  ;;  %v2514_v43 = vsel %vm5654_vm8, %v2440_v63, %v2449_v45 }
 0x30a   : > { %v2431_v49 = vsel %vm5653_vm14, %v2426_v24, %v2428_v34  ;;  %2575 = vmatprep.subr.bf16.mxu1 %v2514_v43  ;;  %3681 = vmatprep.subr.bf16.mxu0 %v3958_v32  ;;  %v2403_v17 = vsel %vm652_vm1, %v2402_v33, %v2401_v36  ;;  %v2645_v43 = vlaneseq }
 0x30b   : > { %2576 = vmatpush1.bf16.msra.mxu1 %v2510_v29  ;;  %v2430_v46 = vpop.permute.xlu0 %2429  ;;  %v2498_v6 = vsel %vm5654_vm8, %v5000_v9, %v2431_v49  ;;  %v2371_v9 = vrot.slane %v5144_v58, 4  ;;  %v419_v49 = vld [vmem:[%s5555_s3] sm:$0x7] }
 0x30c   : > { %v2432_v51 = vsel %vm5653_vm14, %v2428_v34, %v2430_v46  ;;  %v2506_v40 = vsel %vm5654_vm8, %v5021_v5, %v2430_v46  ;;  %v2373_v5 = vrot.slane %v5149_v11, 3  ;;  %v5272_v29 = vshrl.u32 %v2645_v43, 7 }
 0x30d   : > { %3682 = vmatpush3.bf16.msra.mxu0 %v2506_v40  ;;  %v2502_v27 = vsel %vm5654_vm8, %v4998_v30, %v2432_v51  ;;  %v2370_v30 = vrot.slane %v5081_v20, 5  ;;  %v2192_v18 = vpop.permute.xlu1 %2191  ;;  %v2405_v20 = vsel %vm655_vm2, %v2404_v8, %v2403_v17 }
 0x30e   : > { %2577 = vmatprep.subr.bf16.mxu1 %v2502_v27  ;;  %3687 = vmatprep.subr.bf16.mxu0 %v3958_v32  ;;  %2195 = vst.msk [vmem:[#allocation3] sm:$0x3] %vm2194_vm4, %v2192_v18  ;;  %v2407_v58 = vsel %vm658_vm3, %v2406_v25, %v2405_v20  ;;  %vm2273_vm4 = vcmask 119812   ;;  %v2647_v46 = vsub.s32 0, %v5272_v29  ;;  %v2651_v51 = vsub.s32 1, %v5272_v29 }
 0x30f   : > { %2578 = vmatpush1.bf16.msra.mxu1 %v2498_v6  ;;  %v2372_v57 = vsel %vm652_vm1, %v2371_v9, %v2370_v30  ;;  %v2408_v11 = vpack.c.b16 %v2407_v58, %v2407_v58  ;;  %vm2272_vm1 = vcmask 1042424   ;;  %v2655_v40 = vsub.s32 2, %v5272_v29 }
 0x310   : > { %3684 = vmatmul.mubr.msk.bf16.vlgmr.msra.gmra.mxu0 %vm5649_vm15, %v2414_v14  ;;  %v2374_v52 = vsel %vm655_vm2, %v2373_v5, %v2372_v57  ;;  %vm2243_vm2 = vcmask 870104  }
 0x311   : > { %3697 = vmatprep.mubr.msk.bf16.mxu0 %vm5648_vm6, %v3958_v32  ;;  %v2376_v10 = vsel %vm658_vm3, %v2375_v7, %v2374_v52  ;;  %vm2218_vm6 = vcmask 574904   ;;  %v2204_v12 = vpop.permute.xlu1 %2203  ;;  %vm2274_vm3 = vmor %vm2273_vm4, %vm2272_vm1  ;;  %vm2355_vm1 = vcmask 853704   ;;  %vm2384_vm4 = vcmask 1042408  }
 0x312   : > { %3477 = vmatmul.mubr.msk.bf16.vlgmr.msra.gmra.mxu1 %vm5649_vm15, %v2414_v14  ;;  %v2377_v2 = vpack.c.b16 %v2376_v10, %v2376_v10  ;;  %2207 = vst.msk [vmem:[#allocation3] sm:$0x3] %vm2206_vm5, %v2204_v12  ;;  %vm2230_vm15 = vcmask 722504   ;;  %vm2287_vm5 = vcmask 263304  }
 0x313   : > { %2865 = vmatprep.mubr.bf16.mxu1 %v3954_v44 }
 0x314   : > { %2378 = vrot.lane.b32.xlu1 %v2377_v2, %s3971_s11 }
 0x315   : > { %v2228_v62 = vpop.permute.xlu1 %2227 }
 0x318   : > { %v5247_v53 = vpop.permute.xlu0 %2547  ;;  %2365 = vrot.lane.b32.xlu1 %v2364_v23, %s3973_s30 }
 0x319   : > { %v2241_v24 = vpop.permute.xlu1 %2240 }
 0x31c   : > { %v2216_v60 = vpop.permute.xlu0 %2215  ;;  %2396 = vrot.lane.b32.xlu1 %v2395_v42, %s3974_s29 }
 0x31d   : > { %2219 = vst.msk [vmem:[#allocation3] sm:$0x3] %vm2218_vm6, %v2216_v60  ;;  %vm2319_vm6 = vcmask 410904   ;;  %v2285_v45 = vpop.permute.xlu1 %2284 }
 0x31e   : > { %2231 = vst.msk [vmem:[#allocation3] sm:$0x3] %vm2230_vm15, %v2228_v62  ;;  %vm2331_vm15 = vcmask 558504  }
 0x31f   : > { %2244 = vst.msk [vmem:[#allocation3] sm:$0x3] %vm2243_vm2, %v2241_v24  ;;  %vm2385_vm2 = vcmask 103428  }
 0x320   : > { %v2267_v1 = vpop.permute.xlu0 %2266  ;;  %2409 = vrot.lane.b32.xlu1 %v2408_v11, %s3975_s28 }
 0x321   : > { %v2268_v34 = vrot.slane %v2267_v1, 4  ;;  %v2329_v61 = vpop.permute.xlu1 %2328 }
 0x323   : > { %v2270_v22 = vsel %vm5653_vm14, %v2268_v34, %v2267_v1 }
 0x324   : > { %v2254_v41 = vpop.permute.xlu0 %2253 }
 0x325   : > { %2257 = vst.msk [vmem:[#allocation3] sm:$0x3] %vm2256_vm13, %v2254_v41  ;;  %vm420_vm13 = vcmp.gt.f32.partialorder %v419_v49, 0.5 }
 0x326   : > { %2275 = vst.msk [vmem:[#allocation3] sm:$0x33] %vm2274_vm3, %v2270_v22  ;;  %v2644_v6 = vsel %vm420_vm13, 1, %v3954_v44  ;;  %vm2368_vm3 = vcmask 1001304   ;;  %vm2386_vm13 = vmor %vm2385_vm2, %vm2384_vm4  ;;  %vm2686_vm4 = vcmask 1043610   ;;  %vm2687_vm2 = vcmask 1047558  }
 0x327   : > { %2288 = vst.msk [vmem:[#allocation3 + $0x4] sm:$0x3] %vm2287_vm5, %v2285_v45  ;;  %v5278_v14 = vrot.slane %v2644_v6, %v2647_v46  ;;  %v5280_v30 = vrot.slane %v2644_v6, %v2651_v51  ;;  %v5282_v5 = vrot.slane %v2644_v6, %v2655_v40 }
 0x328   : > { %v2317_v63 = vpop.permute.xlu0 %2316 }
 0x329   : > { %2320 = vst.msk [vmem:[#allocation3 + $0x4] sm:$0x3] %vm2319_vm6, %v2317_v63  ;;  %vm2657_vm5 = vcmp.eq.s32.totalorder %v5278_v14, 1  ;;  %vm5652_vm6 = vcmp.eq.s32.totalorder %v5280_v30, 1 }
 0x32a   : > { %2332 = vst.msk [vmem:[#allocation3 + $0x4] sm:$0x3] %vm2331_vm15, %v2329_v61  ;;  %vm2659_vm15 = vcmp.eq.s32.totalorder %v5282_v5, 1 }
 0x32c   : > { %v2341_v56 = vpop.permute.xlu0 %2340 }
 0x32d   : > { %2344 = vst.msk [vmem:[#allocation3 + $0x4] sm:$0x3] %vm2343_vm0, %v2341_v56  ;;  %vm2381_vm0 = vcmask 1022976  }
 0x378   : > { %v2353_v57 = vpop.permute.xlu0 %2352 }
 0x379   : > { %2356 = vst.msk [vmem:[#allocation3 + $0x4] sm:$0x3] %vm2355_vm1, %v2353_v57  ;;  %vm2399_vm1 = vcmask 246904  }
 0x386   : > { %v2379_v27 = vpop.permute.xlu1 %2378 }
 0x387   : > { %v2380_v7 = vrot.slane %v2379_v27, 4 }
 0x389   : > { %v2382_v19 = vsel %vm2381_vm0, %v2380_v7, %v2379_v27  ;;  %vm2412_vm0 = vcmask 394504  }
 0x38a   : > { %v2366_v13 = vpop.permute.xlu1 %2365 }
 0x38b   : > { %2369 = vst.msk [vmem:[#allocation3 + $0x4] sm:$0x3] %vm2368_vm3, %v2366_v13  ;;  %vm2681_vm3 = vcmask 154624  }
 0x38c   : > { %2387 = vst.msk [vmem:[#allocation3 + $0x4] sm:$0x33] %vm2386_vm13, %v2382_v19  ;;  %vm5833_vm13 = vcmask 900096  }
 0x38e   : > { %v2397_v59 = vpop.permute.xlu1 %2396 }
 0x38f   : > { %2400 = vst.msk [vmem:[#allocation3 + $0x8] sm:$0x3] %vm2399_vm1, %v2397_v59 }
 0x392   : > { %v2410_v54 = vpop.permute.xlu1 %2409 }
 0x393   : > { %2413 = vst.msk [vmem:[#allocation3 + $0x8] sm:$0x3] %vm2412_vm0, %v2410_v54  ;;  %vm5835_vm0 = vmmov %vm5833_vm13 }
 0x39a   : > { %v5307_v60 = vld [vmem:[#allocation3 + $0x8] ss:$0 sps:$4 sm:$0xff]  }
 0x3d0   : > { %v2638_v9 = vpop.f32.mrf.mxu0 }
 0x3d1   : > { %v2639_v28 = vadd.f32 %v2638_v9, %v5247_v53 }
 0x3d2   : > { %v2597_v52 = vpop.f32.mrf.mxu1  ;;  %v3685_v10 = vpop.f32.mrf.mxu0 }
 0x3d3   : > { %v2598_v2 = vadd.f32 %v2597_v52, %v5247_v53  ;;  %v2662_v3 = vsel %vm2659_vm15, %v2639_v28, 0.0 }
 0x3d4   : > { %v2599_v21 = vpop.f32.mrf.mxu1  ;;  %v2641_v48 = vpop.f32.mrf.mxu0  ;;  %v3633_v35 = vpack.c.bf16 %v2662_v3, %v2662_v3 }
 0x3d5   : > { %v2600_v39 = vadd.f32 %v2599_v21, %v5247_v53  ;;  %v2660_v37 = vsel %vm2657_vm5, %v2598_v2, 0.0 }
 0x3d6   : > { %v2601_v0 = vpop.f32.mrf.mxu1  ;;  %v3686_v47 = vpop.f32.mrf.mxu0  ;;  %v2675_v16 = vrot.slane %v3633_v35, 6 }
 0x3d7   : > { %v2661_v31 = vsel %vm5652_vm6, %v2600_v39, 0.0  ;;  %vm2688_vm6 = vmor %vm2687_vm2, %vm2686_vm4  ;;  %vm5836_vm4 = vcmask 588800   ;;  %vm5837_vm2 = vmmov 0  }
 0x3d8   : > { %v3632_v26 = vpack.c.bf16 %v2661_v31, %v2660_v37  ;;  %v2602_v38 = vpop.f32.mrf.mxu1 }
 0x3da   : > { %v2674_v53 = vrot.slane %v3632_v26, 6 }
 0x3dc   : > { %2676 = vrot.lane.b32.xlu0 %v2674_v53, %s3963_s26 }
 0x3e0   : > { %2678 = vrot.lane.b32.xlu0 %v2675_v16, %s3963_s26 }
 0x44e   : > { %v2677_v55 = vpop.permute.xlu0 %2676 }
 0x44f   : > { %v2680_v4 = vrot.slane %v2677_v55, 4 }
 0x451   : > { %v2682_v23 = vsel %vm2681_vm3, %v2680_v4, %v2677_v55 }
 0x452   : > { %2689 = vst.msk [vmem:[#allocation3] sm:$0xcc] %vm2688_vm6, %v2682_v23  ;;  %v2679_v50 = vpop.permute.xlu0 %2678  ;;  %vm5832_vm6 = vcmask 1031168  }
 0x453   : > { %vm5834_vm1 = vmmov %vm5832_vm6 }
 0x459   : > { %v2693_v36 = vld [vmem:[#allocation3] sm:$0xff] }
 0x45a   : > { %v5299_v33 = vcombine.high %v2693_v36, %v2693_v36  ;;  %v5301_v18 = vcombine.low %v2693_v36, %v2693_v36 }
 0x45c   : > { %2761 = vrot.lane.b32.xlu1 %v5299_v33, %s3945_s15  ;;  %2759 = vrot.lane.b32.xlu0 %v5301_v18, %s3945_s15 }
 0x460   : > { %2745 = vrot.lane.b32.xlu1 %v5299_v33, %s3956_s12  ;;  %2763 = vrot.lane.b32.xlu0 %v5307_v60, %s3945_s15 }
 0x464   : > { %2753 = vrot.lane.b32.xlu1 %v5299_v33, %s3957_s0  ;;  %2747 = vrot.lane.b32.xlu0 %v5307_v60, %s3956_s12 }
 0x468   : > { %2743 = vrot.lane.b32.xlu1 %v5301_v18, %s3956_s12  ;;  %2755 = vrot.lane.b32.xlu0 %v5307_v60, %s3957_s0 }
 0x46c   : > { %2729 = vrot.lane.b32.xlu1 %v5299_v33, %s3960_s23  ;;  %2751 = vrot.lane.b32.xlu0 %v5301_v18, %s3957_s0 }
 0x470   : > { %2737 = vrot.lane.b32.xlu1 %v5299_v33, %s3946_s20  ;;  %2731 = vrot.lane.b32.xlu0 %v5307_v60, %s3960_s23 }
 0x474   : > { %2727 = vrot.lane.b32.xlu1 %v5301_v18, %s3960_s23  ;;  %2739 = vrot.lane.b32.xlu0 %v5307_v60, %s3946_s20 }
 0x478   : > { %2713 = vrot.lane.b32.xlu1 %v5299_v33, %s3944_s27  ;;  %2735 = vrot.lane.b32.xlu0 %v5301_v18, %s3946_s20 }
 0x47c   : > { %2721 = vrot.lane.b32.xlu1 %v5299_v33, %s3959_s19  ;;  %2715 = vrot.lane.b32.xlu0 %v5307_v60, %s3944_s27 }
 0x480   : > { %2711 = vrot.lane.b32.xlu1 %v5301_v18, %s3944_s27  ;;  %2723 = vrot.lane.b32.xlu0 %v5307_v60, %s3959_s19 }
 0x484   : > { %2705 = vrot.lane.b32.xlu1 %v5299_v33, %s3961_s18  ;;  %2719 = vrot.lane.b32.xlu0 %v5301_v18, %s3959_s19 }
 0x488   : > { %2703 = vrot.lane.b32.xlu1 %v5301_v18, %s3961_s18  ;;  %2707 = vrot.lane.b32.xlu0 %v5307_v60, %s3961_s18 }
 0x48c   : > { %2818 = vperm.xlu0 %3804, %v2815_v15   ;;  %v2692_v15 = vld [vmem:[%s5558_s6] sm:$0x3] }
 0x4ce   : > { %v2762_v8 = vpop.permute.xlu1 %2761  ;;  %v2760_v25 = vpop.permute.xlu0 %2759 }
 0x4cf   : > { %v2765_v42 = vsel %vm2492_vm7, %v2760_v25, %v2762_v8 }
 0x4d0   : > { %v2825_v1 = vsel %vm5654_vm8, %v2765_v42, 0 }
 0x4d2   : > { %v2746_v17 = vpop.permute.xlu1 %2745  ;;  %v2764_v20 = vpop.permute.xlu0 %2763 }
 0x4d3   : > { %v2766_v58 = vsel %vm2492_vm7, %v2762_v8, %v2764_v20  ;;  %v2831_v12 = vsel %vm5654_vm8, %v2764_v20, 0 }
 0x4d4   : > { %3484 = vmatprep.subr.msk.bf16.mxu1 %vm5654_vm8, %v2766_v58  ;;  %3688 = vmatpush3.bf16.msra.mxu0 %v2831_v12 }
 0x4d5   : > { %2840 = vmatpush1.bf16.msra.mxu1 %v2825_v1  ;;  %3689 = vmatprep.subr.bf16.mxu0 %v3958_v32 }
 0x4d6   : > { %v2754_v11 = vpop.permute.xlu1 %2753  ;;  %v2748_v62 = vpop.permute.xlu0 %2747 }
 0x4d7   : > { %v2750_v22 = vsel %vm2474_vm9, %v2746_v17, %v2748_v62 }
 0x4da   : > { %v2744_v34 = vpop.permute.xlu1 %2743  ;;  %v2756_v41 = vpop.permute.xlu0 %2755 }
 0x4db   : > { %v2758_v24 = vsel %vm2483_vm10, %v2754_v11, %v2756_v41  ;;  %v2813_v63 = vsel %vm5654_vm8, %v2748_v62, %v2756_v41  ;;  %v2749_v43 = vsel %vm2474_vm9, %v2744_v34, %v2746_v17 }
 0x4dc   : > { %3690 = vmatpush3.bf16.msra.mxu0 %v2813_v63  ;;  %v2809_v45 = vsel %vm5654_vm8, %v2750_v22, %v2758_v24 }
 0x4dd   : > { %2841 = vmatprep.subr.bf16.mxu1 %v2809_v45  ;;  %3691 = vmatprep.subr.bf16.mxu0 %v3958_v32 }
 0x4de   : > { %v2730_v56 = vpop.permute.xlu1 %2729  ;;  %v2752_v61 = vpop.permute.xlu0 %2751 }
 0x4df   : > { %v2757_v49 = vsel %vm2483_vm10, %v2752_v61, %v2754_v11 }
 0x4e0   : > { %v2805_v46 = vsel %vm5654_vm8, %v2749_v43, %v2757_v49 }
 0x4e1   : > { %2842 = vmatpush1.bf16.msra.mxu1 %v2805_v46 }
 0x4e2   : > { %v2738_v51 = vpop.permute.xlu1 %2737  ;;  %v2732_v40 = vpop.permute.xlu0 %2731 }
 0x4e3   : > { %v2734_v9 = vsel %vm2456_vm11, %v2730_v56, %v2732_v40 }
 0x4e6   : > { %v2728_v6 = vpop.permute.xlu1 %2727  ;;  %v2740_v27 = vpop.permute.xlu0 %2739 }
 0x4e7   : > { %v2742_v7 = vsel %vm2465_vm12, %v2738_v51, %v2740_v27  ;;  %v2801_v57 = vsel %vm5654_vm8, %v2732_v40, %v2740_v27  ;;  %v2733_v28 = vsel %vm2456_vm11, %v2728_v6, %v2730_v56 }
 0x4e8   : > { %3692 = vmatpush3.bf16.msra.mxu0 %v2801_v57  ;;  %v2797_v52 = vsel %vm5654_vm8, %v2734_v9, %v2742_v7 }
 0x4e9   : > { %2843 = vmatprep.subr.bf16.mxu1 %v2797_v52  ;;  %3693 = vmatprep.subr.bf16.mxu0 %v3958_v32 }
 0x4ea   : > { %v2714_v10 = vpop.permute.xlu1 %2713  ;;  %v2736_v2 = vpop.permute.xlu0 %2735 }
 0x4eb   : > { %v2741_v21 = vsel %vm2465_vm12, %v2736_v2, %v2738_v51 }
 0x4ec   : > { %v2793_v48 = vsel %vm5654_vm8, %v2733_v28, %v2741_v21 }
 0x4ed   : > { %2844 = vmatpush1.bf16.msra.mxu1 %v2793_v48 }
 0x4ee   : > { %v2722_v19 = vpop.permute.xlu1 %2721  ;;  %v2716_v39 = vpop.permute.xlu0 %2715 }
 0x4ef   : > { %v2718_v47 = vsel %vm5832_vm6, %v2714_v10, %v2716_v39  ;;  %vm5838_vm6 = vmmov %vm5836_vm4 }
 0x4f2   : > { %v2712_v13 = vpop.permute.xlu1 %2711  ;;  %v2724_v0 = vpop.permute.xlu0 %2723 }
 0x4f3   : > { %v2726_v37 = vsel %vm5833_vm13, %v2722_v19, %v2724_v0  ;;  %v2789_v31 = vsel %vm5654_vm8, %v2716_v39, %v2724_v0  ;;  %v2717_v59 = vsel %vm5834_vm1, %v2712_v13, %v2714_v10  ;;  %vm426_vm13 = vcmask 1041408   ;;  %v3096_v13 = vld [vmem:[%s5561_s9] sm:$0xf] }
 0x4f4   : > { %3694 = vmatpush3.bf16.msra.mxu0 %v2789_v31  ;;  %v2785_v3 = vsel %vm5654_vm8, %v2718_v47, %v2726_v37  ;;  %vm427_vm1 = vcmask 1043458  }
 0x4f5   : > { %2845 = vmatprep.subr.bf16.mxu1 %v2785_v3  ;;  %3695 = vmatprep.subr.bf16.mxu0 %v3958_v32 }
 0x4f6   : > { %v2706_v26 = vpop.permute.xlu1 %2705  ;;  %v2720_v38 = vpop.permute.xlu0 %2719 }
 0x4f7   : > { %v2725_v35 = vsel %vm5835_vm0, %v2720_v38, %v2722_v19  ;;  %vm429_vm0 = vcmask 570372  }
 0x4f8   : > { %v2781_v53 = vsel %vm5654_vm8, %v2717_v59, %v2725_v35 }
 0x4f9   : > { %2846 = vmatpush1.bf16.msra.mxu1 %v2781_v53 }
 0x4fa   : > { %v2704_v54 = vpop.permute.xlu1 %2703  ;;  %v2708_v16 = vpop.permute.xlu0 %2707 }
 0x4fb   : > { %v2709_v55 = vsel %vm5653_vm14, %v2704_v54, %v2706_v26  ;;  %v2710_v4 = vsel %vm5653_vm14, %v2706_v26, %v2708_v16  ;;  %v2777_v23 = vsel %vm5654_vm8, %v5307_v60, %v2708_v16  ;;  %vm428_vm14 = vmor %vm427_vm1, %vm426_vm13  ;;  %v3976_v60 = vmov 1983009808  }
 0x4fc   : > { %3696 = vmatpush3.bf16.msra.mxu0 %v2777_v23  ;;  %v2773_v50 = vsel %vm5654_vm8, %v5299_v33, %v2710_v4  ;;  %v2769_v36 = vsel %vm5654_vm8, %v5301_v18, %v2709_v55  ;;  %vm430_vm8 = vmor %vm429_vm0, %vm428_vm14  ;;  %v2928_v8 = vunpack.c.l.s4 %v3976_v60  ;;  %vm2947_vm14 = vcmask 1041560  }
 0x4fd   : > { %2847 = vmatprep.subr.bf16.mxu1 %v2773_v50  ;;  %3701 = vmatprep.subr.bf16.mxu0 %v3958_v32  ;;  %431 = vst.msk [vmem:[#allocation4] sm:$0x3f] %vm430_vm8, %v3954_v44  ;;  %vm5839_vm8 = vcmp.eq.s32.totalorder %v5280_v30, 1 }
 0x4fe   : > { %2848 = vmatpush1.bf16.msra.mxu1 %v2769_v36  ;;  %v2929_v12 = vunpack.c.0.s8 %v2928_v8 }
 0x4ff   : > { %3698 = vmatmul.mubr.msk.bf16.vlgmr.msra.gmra.mxu0 %vm5836_vm4, %v2692_v15  ;;  %vm2948_vm4 = vmor %vm427_vm1, %vm2947_vm14 }
 0x500   : > { %3707 = vmatprep.mubr.msk.bf16.mxu0 %vm5837_vm2, %v3958_v32  ;;  %v2932_v45 = vsub.s32 %v2929_v12, %v5272_v29  ;;  %vm2949_vm2 = vcmask 414724  }
 0x501   : > { %3485 = vmatmul.mubr.msk.bf16.vlgmr.msra.gmra.mxu1 %vm5838_vm6, %v2692_v15  ;;  %vm2950_vm6 = vmor %vm2949_vm2, %vm2948_vm4  ;;  %vm5849_vm4 = vcmask 900096  }
 0x502   : > { %3147 = vmatprep.mubr.bf16.mxu1 %v3954_v44  ;;  %vm5850_vm2 = vmmov %vm5849_vm4 }
 0x507   : > { %v2819_v33 = vpop.permute.xlu0 %2818 }
 0x5bf   : > { %v2908_v18 = vpop.f32.mrf.mxu0 }
 0x5c0   : > { %v2909_v25 = vadd.f32 %v2908_v18, %v2819_v33 }
 0x5c1   : > { %v2867_v42 = vpop.f32.mrf.mxu1  ;;  %v3699_v17 = vpop.f32.mrf.mxu0 }
 0x5c2   : > { %v2916_v20 = vmax.f32 %v2909_v25, 0.0  ;;  %v2868_v58 = vadd.f32 %v2867_v42, %v2819_v33 }
 0x5c3   : > { %v2869_v1 = vpop.f32.mrf.mxu1  ;;  %v2911_v11 = vpop.f32.mrf.mxu0 }
 0x5c4   : > { %v2919_v62 = vsel %vm2659_vm15, %v2916_v20, 0.0  ;;  %v2914_v34 = vmax.f32 %v2868_v58, 0.0  ;;  %v2870_v41 = vadd.f32 %v2869_v1, %v2819_v33 }
 0x5c5   : > { %v2871_v22 = vpop.f32.mrf.mxu1  ;;  %v3700_v24 = vpop.f32.mrf.mxu0  ;;  %v2922_v63 = vpack.c.bf16 %v2919_v62, %v2919_v62 }
 0x5c6   : > { %v2915_v44 = vmax.f32 %v2870_v41, 0.0  ;;  %v2917_v61 = vsel %vm2657_vm5, %v2914_v34, 0.0 }
 0x5c7   : > { %v2872_v56 = vpop.f32.mrf.mxu1  ;;  %v2940_v46 = vrot.slane %v2922_v63, %v2932_v45 }
 0x5c8   : > { %v2918_v43 = vsel %vm5839_vm8, %v2915_v44, 0.0  ;;  %vm5845_vm8 = vcmask 1031168  }
 0x5c9   : > { %v3487_v49 = vpack.c.bf16 %v2918_v43, %v2917_v61 }
 0x5cb   : > { %v2933_v51 = vrot.slane %v3487_v49, %v2932_v45 }
 0x5cd   : > { %v2941_v40 = vcombine.low %v2933_v51, %v2940_v46 }
 0x5cf   : > { %2942 = vrot.lane.b32.xlu1 %v2941_v40, %s3963_s26 }
 0x641   : > { %v2943_v6 = vpop.permute.xlu1 %2942 }
 0x642   : > { %v2944_v29 = vrot.slane %v2943_v6, 6 }
 0x644   : > { %v2945_v27 = vsel %vm2681_vm3, %v2944_v29, %v2943_v6  ;;  %vm5840_vm3 = vcmask 1043456  }
 0x645   : > { %2951 = vst.msk [vmem:[#allocation4] sm:$0x3f] %vm2950_vm6, %v2945_v27  ;;  %vm5842_vm1 = vmmov %vm5840_vm3 }
 0x646   : > { %vm5844_vm0 = vmmov %vm5842_vm1 }
 0x647   : > { %vm5847_vm14 = vmmov %vm5844_vm0 }
 0x648   : > { %vm5851_vm6 = vmmov %vm5844_vm0 }
 0x64c   : > { %v2953_v9 = vld [vmem:[#allocation4] sm:$0x3f] }
 0x64d   : > { %v5416_v7 = vrot.slane %v2953_v9, %v2932_v45  ;;  %v2955_v52 = vcombine.high %v2953_v9, %v2953_v9  ;;  %v2971_v28 = vcombine.low %v2953_v9, %v2953_v9 }
 0x64f   : > { %3007 = vrot.lane.b32.xlu1 %v5416_v7, %s3960_s23  ;;  %3039 = vrot.lane.b32.xlu0 %v5416_v7, %s3945_s15  ;;  %v5428_v57 = vcombine.high %v5416_v7, %v5416_v7  ;;  %v2988_v10 = vcombine.low %v5416_v7, %v5416_v7  ;;  %v5440_v2 = vrot.slane %v2955_v52, %v2932_v45 }
 0x650   : > { %v2978_v21 = vrot.slane %v2971_v28, %v2932_v45 }
 0x651   : > { %v2989_v19 = vcombine.low %v5440_v2, %v5440_v2 }
 0x652   : > { %v2979_v48 = vcombine.high %v2978_v21, %v2978_v21  ;;  %v2998_v39 = vcombine.low %v2978_v21, %v2978_v21 }
 0x653   : > { %3025 = vrot.lane.b32.xlu1 %v5416_v7, %s3956_s12  ;;  %3019 = vrot.lane.b32.xlu0 %v5416_v7, %s3946_s20 }
 0x657   : > { %2984 = vrot.lane.b32.xlu0 %v5416_v7, %s3961_s18  ;;  %3041 = vrot.lane.b32.xlu1 %v5428_v57, %s3945_s15 }
 0x65b   : > { %2992 = vrot.lane.b32.xlu0 %v5416_v7, %s3944_s27  ;;  %3009 = vrot.lane.b32.xlu1 %v5428_v57, %s3960_s23 }
 0x65f   : > { %3023 = vrot.lane.b32.xlu1 %v2988_v10, %s3956_s12  ;;  %3043 = vrot.lane.b32.xlu0 %v5440_v2, %s3945_s15 }
 0x663   : > { %3035 = vrot.lane.b32.xlu1 %v2988_v10, %s3957_s0  ;;  %3011 = vrot.lane.b32.xlu0 %v5440_v2, %s3960_s23  ;;  %s3712_s23 = smul.u32 192, %s4054_s17  ;;  %s3977_s17 = smov [#allocation10]  }
 0x664   : > { %s3869_s29 = sshll.u32 %s3977_s17, 4  ;;  %s3870_s29 = int_to_ptr.vmem [resolvable:$false] %s3869_s29 }
 0x665   : > { %s3222_s11 = scalar_lea.hbm %s5562_s10, %s3712_s23  ;;  %s3871_s28 = scalar_lea.vmem %s3870_s29, 384 }
 0x667   : > { %2980 = vrot.lane.b32.xlu1 %v2978_v21, %s3961_s18  ;;  %3015 = vrot.lane.b32.xlu0 %v2978_v21, %s3946_s20 }
 0x66b   : > { %3001 = vrot.lane.b32.xlu1 %v2978_v21, %s3959_s19  ;;  %3033 = vrot.lane.b32.xlu0 %v2978_v21, %s3957_s0 }
 0x66f   : > { %3017 = vrot.lane.b32.xlu1 %v2979_v48, %s3946_s20  ;;  %2990 = vrot.lane.b32.xlu0 %v2988_v10, %s3944_s27 }
 0x673   : > { %2982 = vrot.lane.b32.xlu1 %v2979_v48, %s3961_s18  ;;  %3027 = vrot.lane.b32.xlu0 %v2989_v19, %s3956_s12 }
 0x677   : > { %2994 = vrot.lane.b32.xlu1 %v2989_v19, %s3944_s27  ;;  %3031 = vrot.lane.b32.xlu0 %v2998_v39, %s3957_s0  ;;  %s3711_s0 = smul.u32 12, %s4189_s22 }
 0x67b   : > { %2999 = vrot.lane.b32.xlu1 %v2998_v39, %s3959_s19  ;;  %3003 = vrot.lane.b32.xlu0 %v2988_v10, %s3959_s19  ;;  %s417_s19 = scalar_lea.vmem [#allocation10], %s3711_s0 }
 0x67c   : > { %s3224_s18 = sshll.u32 %s417_s19, 4  ;;  %s3225_s18 = int_to_ptr.vmem [resolvable:$true] %s3224_s18 }
 0x67d   : > { %s3865_s30 = scalar_lea.vmem %s3225_s18, 192  ;;  %p3872_p10 = scmp.lt.s32.totalorder %s3225_s18, %s3870_s29 }
 0x67e   : > { %p3866_p13 = scmp.ne.s32.totalorder %s3225_s18, %s3865_s30  ;;  %p3873_p0 = scmp.lt.s32.totalorder %s3871_s28, %s3865_s30 }
 0x67f   : > { %3099 = vperm.xlu0 %3804, %v3096_v13   ;;  %v2952_v13 = vld [vmem:[%s5560_s8] sm:$0x3] }
 0x680   : > { %p3867_p12 = pnand %p3866_p13, %p5853_p1  ;;  %p3874_p2 = por %p3873_p0, %p3872_p10 }
 0x682   : > { %p3868_p7 = pneg %p3867_p12 }
 0x684   : > { %p3875_p4 = pnand %p3874_p2, %p3868_p7 }
 0x6c1   : > { %v3008_v0 = vpop.permute.xlu1 %3007  ;;  %v3040_v47 = vpop.permute.xlu0 %3039 }
 0x6c5   : > { %v3026_v37 = vpop.permute.xlu1 %3025  ;;  %v3020_v31 = vpop.permute.xlu0 %3019 }
 0x6c9   : > { %v2985_v3 = vpop.permute.xlu0 %2984  ;;  %v3042_v26 = vpop.permute.xlu1 %3041 }
 0x6ca   : > { %v3045_v35 = vsel %vm2492_vm7, %v3040_v47, %v3042_v26  ;;  %v3055_v27 = vsel %vm426_vm13, %v5440_v2, %v2985_v3 }
 0x6cb   : > { %v3107_v4 = vsel %vm426_vm13, %v3045_v35, 0 }
 0x6cd   : > { %v2993_v38 = vpop.permute.xlu0 %2992  ;;  %v3010_v59 = vpop.permute.xlu1 %3009 }
 0x6ce   : > { %v3013_v17 = vsel %vm2456_vm11, %v3008_v0, %v3010_v59 }
 0x6d1   : > { %v3024_v53 = vpop.permute.xlu1 %3023  ;;  %v3044_v54 = vpop.permute.xlu0 %3043 }
 0x6d2   : > { %v3046_v16 = vsel %vm2492_vm7, %v3042_v26, %v3044_v54  ;;  %v3113_v55 = vsel %vm426_vm13, %v3044_v54, 0  ;;  %vm3062_vm7 = vcmask 1045504   ;;  %v3029_v56 = vsel %vm2474_vm9, %v3024_v53, %v3026_v37 }
 0x6d3   : > { %3488 = vmatprep.subr.msk.bf16.mxu1 %vm426_vm13, %v3046_v16  ;;  %3702 = vmatpush3.bf16.msra.mxu0 %v3113_v55 }
 0x6d4   : > { %3126 = vmatpush1.bf16.msra.mxu1 %v3107_v4  ;;  %3703 = vmatprep.subr.bf16.mxu0 %v3958_v32 }
 0x6d5   : > { %v3036_v23 = vpop.permute.xlu1 %3035  ;;  %v3012_v50 = vpop.permute.xlu0 %3011 }
 0x6d6   : > { %v3014_v20 = vsel %vm2456_vm11, %v3010_v59, %v3012_v50  ;;  %v3080_v58 = vsel %vm426_vm13, %v3012_v50, %v3020_v31 }
 0x6d9   : > { %v2981_v36 = vpop.permute.xlu1 %2980  ;;  %v3016_v15 = vpop.permute.xlu0 %3015 }
 0x6dd   : > { %v3002_v33 = vpop.permute.xlu1 %3001  ;;  %v3034_v18 = vpop.permute.xlu0 %3033 }
 0x6de   : > { %v3038_v11 = vsel %vm2483_vm10, %v3034_v18, %v3036_v23 }
 0x6e1   : > { %v3018_v60 = vpop.permute.xlu1 %3017  ;;  %v2991_v8 = vpop.permute.xlu0 %2990 }
 0x6e2   : > { %v3022_v25 = vsel %vm2465_vm12, %v3018_v60, %v3020_v31  ;;  %v3021_v42 = vsel %vm2465_vm12, %v3016_v15, %v3018_v60  ;;  %vm5841_vm12 = vcmask 1039360  }
 0x6e3   : > { %v3077_v62 = vsel %vm426_vm13, %v3014_v20, %v3022_v25  ;;  %v3074_v22 = vsel %vm426_vm13, %v3013_v17, %v3021_v42  ;;  %vm5843_vm11 = vmmov %vm5841_vm12 }
 0x6e4   : > { %v3082_v40 = vsel %vm5844_vm0, %v3074_v22, %v3029_v56 }
 0x6e5   : > { %v2983_v12 = vpop.permute.xlu1 %2982  ;;  %v3028_v1 = vpop.permute.xlu0 %3027 }
 0x6e6   : > { %v3030_v34 = vsel %vm2474_vm9, %v3026_v37, %v3028_v1  ;;  %v3086_v41 = vsel %vm5840_vm3, %v3080_v58, %v3028_v1  ;;  %v2986_v24 = vsel %vm5841_vm12, %v2981_v36, %v2983_v12  ;;  %v2987_v49 = vsel %vm5843_vm11, %v2983_v12, %v2985_v3  ;;  %vm5846_vm9 = vmmov %vm5845_vm8 }
 0x6e7   : > { %v3094_v44 = vsel %vm3062_vm7, %v3086_v41, %v3036_v23  ;;  %v3084_v63 = vsel %vm5842_vm1, %v3077_v62, %v3030_v34  ;;  %v3049_v46 = vsel %vm426_vm13, %v5416_v7, %v2986_v24  ;;  %v2996_v9 = vsel %vm5846_vm9, %v2991_v8, %v2993_v38 }
 0x6e8   : > { %3704 = vmatpush3.bf16.msra.mxu0 %v3094_v44  ;;  %v3091_v45 = vsel %vm3062_vm7, %v3084_v63, %v3038_v11  ;;  %vm3207_vm3 = vcmask 257024  }
 0x6e9   : > { %v2995_v61 = vpop.permute.xlu1 %2994  ;;  %3127 = vmatprep.subr.bf16.mxu1 %v3091_v45  ;;  %v3032_v43 = vpop.permute.xlu0 %3031  ;;  %3705 = vmatprep.subr.bf16.mxu0 %v3958_v32  ;;  %v3052_v32 = vsel %vm426_vm13, %v5428_v57, %v2987_v49  ;;  %vm3102_vm13 = vcmask 293888  }
 0x6ea   : > { %v3037_v51 = vsel %vm2483_vm10, %v3032_v43, %v3034_v18  ;;  %v2997_v6 = vsel %vm5845_vm8, %v2993_v38, %v2995_v61  ;;  %v3061_v52 = vsel %vm5847_vm14, %v3055_v27, %v2995_v61  ;;  %vm5848_vm10 = vmmov %vm5844_vm0 }
 0x6eb   : > { %v3088_v29 = vsel %vm3062_vm7, %v3082_v40, %v3037_v51  ;;  %v3057_v28 = vsel %vm5848_vm10, %v3049_v46, %v2996_v9  ;;  %v3059_v2 = vsel %vm5851_vm6, %v3052_v32, %v2997_v6 }
 0x6ec   : > { %3128 = vmatpush1.bf16.msra.mxu1 %v3088_v29 }
 0x6ed   : > { %v3000_v7 = vpop.permute.xlu1 %2999  ;;  %v3004_v10 = vpop.permute.xlu0 %3003 }
 0x6ee   : > { %v3005_v21 = vsel %vm5849_vm4, %v3000_v7, %v3002_v33  ;;  %v3006_v48 = vsel %vm5850_vm2, %v3002_v33, %v3004_v10  ;;  %v3070_v19 = vsel %vm3062_vm7, %v3061_v52, %v3004_v10 }
 0x6ef   : > { %3706 = vmatpush3.bf16.msra.mxu0 %v3070_v19  ;;  %v3067_v39 = vsel %vm3062_vm7, %v3059_v2, %v3006_v48  ;;  %v3064_v57 = vsel %vm3062_vm7, %v3057_v28, %v3005_v21  ;;  %vm5852_vm7 = vcmp.eq.s32.totalorder %v5280_v30, 1 }
 0x6f0   : > { %3129 = vmatprep.subr.bf16.mxu1 %v3067_v39 }
 0x6f1   : > { %3130 = vmatpush1.bf16.msra.mxu1 %v3064_v57 }
 0x6f2   : > { %3708 = vmatmul.mubr.msk.bf16.vlgmr.msra.gmra.mxu0 %vm3102_vm13, %v2952_v13 }
 0x6f4   : > { %3489 = vmatmul.mubr.msk.bf16.vlgmr.msra.gmra.mxu1 %vm3102_vm13, %v2952_v13 }
 0x6fa   : > { %v3100_v0 = vpop.permute.xlu0 %3099 }
 0x7b2   : > { %v3190_v47 = vpop.f32.mrf.mxu0 }
 0x7b3   : > { %v3191_v37 = vadd.f32 %v3190_v47, %v3100_v0 }
 0x7b4   : > { %v3149_v31 = vpop.f32.mrf.mxu1  ;;  %v3709_v3 = vpop.f32.mrf.mxu0 }
 0x7b5   : > { %v3198_v26 = vmax.f32 %v3191_v37, 0.0  ;;  %v3150_v38 = vadd.f32 %v3149_v31, %v3100_v0 }
 0x7b6   : > { %v3151_v59 = vpop.f32.mrf.mxu1  ;;  %v3193_v35 = vpop.f32.mrf.mxu0 }
 0x7b7   : > { %v3201_v53 = vsel %vm2659_vm15, %v3198_v26, 0.0  ;;  %v3196_v54 = vmax.f32 %v3150_v38, 0.0  ;;  %v3152_v16 = vadd.f32 %v3151_v59, %v3100_v0 }
 0x7b8   : > { %3208 = vst.msk [vmem:[%s417_s19 + $0x8] sm:$0xf] %vm3207_vm3, %v3201_v53  ;;  %v3153_v55 = vpop.f32.mrf.mxu1  ;;  %v3710_v4 = vpop.f32.mrf.mxu0 }
 0x7b9   : > { %v3197_v23 = vmax.f32 %v3152_v16, 0.0  ;;  %v3199_v36 = vsel %vm2657_vm5, %v3196_v54, 0.0 }
 0x7ba   : > { %v3154_v50 = vpop.f32.mrf.mxu1 }
 0x7bb   : > { %v3200_v15 = vsel %vm5852_vm7, %v3197_v23, 0.0 }
 0x7bc   : > { %v3204_v5 = vcombine.low %v3199_v36, %v3200_v15 }
 0x7be   : > { %3206 = vst [vmem:[%s417_s19] sm:$0xff] %v3204_v5 }
 0x7bf   : > { %3878 = shalt.err (!%p3875_p4)
}
 0x7c0   : > { %s3879_s15 = scalar_lea.hbm %s3222_s11, 192  ;;  %s3883_s27 = scalar_lea.hbm %s5562_s10, 384 }
 0x7c1   : > { %p3880_p9 = scmp.ne.s32.totalorder %s3222_s11, %s3879_s15  ;;  %p3884_p5 = scmp.lt.s32.totalorder %s3222_s11, %s5562_s10 }
 0x7c2   : > { %p3885_p8 = scmp.lt.s32.totalorder %s3883_s27, %s3879_s15 }
 0x7c3   : > { %p3881_p11 = pnand %p3880_p9, %p5853_p1 }
 0x7c4   : > { %p3886_p6 = por %p3885_p8, %p3884_p5 }
 0x7c5   : > { %p3882_p3 = pneg %p3881_p11 }
 0x7c7   : > { %p3887_p13 = pnand %p3886_p6, %p3882_p3 }
 0x7c9   : > { %3890 = shalt.err (!%p3887_p13)
}
 0x7ca   : > { %3717 = dma.vmem_to_hbm [thread:$0]  (%p5853_p1), %s3225_s18, 192, %s3222_s11, %s3210_s21  }
 0x7cb PF: > { %s5854_s19 = sld [smem:[#allocation17_spill]]  ;;  %s3236_s23 = sand.u32 1, %s3921_s13  }
 0x7cc   : > { %p5856_p7 = scmp.ge.s32.totalorder %s3933_s16, 2  ;;  %s3237_s26 = scalar_lea.sflag [#allocation7], %s3236_s23 }
 0x7d1   : > { %p5855_p12 = scmp.ne.s32.totalorder %s5854_s19, 0 }
 0x7d3   : > { %p3727_p10 = pnand %p5856_p7, %p5855_p12 }
 0x7d5   : > { %p3728_p0 = pneg %p3727_p10 }
 0x7d7   : > { %3916 = dma.done.wait (%p3728_p0), %s3237_s26, 192  }
 0x7d8   : > { %3918 = vsyncadd (%p3728_p0), %s3237_s26, 4294967104  ;;  %s5857_s16 = sld [smem:[#allocation15_spill]]  ;;  %s5860_s13 = smov %s3925_s14 }
 0x7d9   : > { %s5858_s24 = sld [smem:[#allocation14_spill]] }
 0x7da   : > { %s5859_s15 = sld [smem:[#allocation16_spill]] }
 0x7de   : > { %p26_p2 = scmp.ge.s32.totalorder %s5857_s16, 4  }
 0x7df   : > { %s5861_s14 = smov %s5858_s24 }
 0x7e0   :  { %28 = sbr.rel (!%p26_p2) target bundleno = 9 (0x9), region = 118 }
 0x7e5   :  { %3242 = vsyncpa [#allocation6], 1 }
 0x7e6   :  { %3244 = vsyncpa [#allocation6 + $0x1], 1 }
 0x7e7   :  { %3245 = vsyncpa [#allocation9], 1 }
 0x7e8   :  { %3247 = vsyncpa [#allocation9 + $0x1], 1 }
 0x7e9   :  { %3248 = vsyncpa [#allocation7], 1 }
 0x7ea   :  { %3250 = vsyncpa [#allocation7 + $0x1], 1 }

</bundles_post_ra>
